<compile_context>
chip_gen: v5e
topology: v5e:2x2
jax: 0.10.0
libtpu: 0.0.40
codegen_flags: <defaults>
</compile_context>

<pallas_src>
import jax
import jax.numpy as jnp
from jax import lax
from jax.experimental import pallas as pl
from jax.experimental.pallas import tpu as pltpu

# (fan_in, fan_out) per layer, matching net_deep.__init__ (PyTorch nn.Linear).
LAYER_DIMS = [(1, 8), (8, 8), (8, 8), (8, 8), (8, 8), (8, 4), (4, 4), (4, 4), (4, 1)]

SUB_ROWS = 8             # sublanes per in-kernel working sub-tile
MAX_SUBS_PER_BLOCK = 32  # up to 32 x (8, 256) f32 = 256 KiB per grid-step block


def net_deep_kernel(w_ref, b_ref, x_ref, o_ref):
    """w_ref/b_ref: flat f32 params in SMEM. x_ref/o_ref: (rows, lane) VMEM block.

    The MLP is purely elementwise over the batch, so each activation feature is
    one dense (8, lane) sub-tile and every layer is an unrolled set of
    scalar*tile FMAs on the VPU. The kernel loops over the (rows // 8)
    sub-tiles of its block to amortize grid-step overhead while keeping the
    live working set at ~2 vregs per feature (no spills).
    """
    rows, _ = x_ref.shape
    subs = rows // SUB_ROWS
    n_layers = len(LAYER_DIMS)

    def compute_sub(s):
        r = s * SUB_ROWS
        if not isinstance(r, int):
            r = pl.multiple_of(r, SUB_ROWS)
        h = [x_ref[pl.ds(r, SUB_ROWS), :]]     # single input feature
        w_off = 0
        b_off = 0
        for li, (fan_in, fan_out) in enumerate(LAYER_DIMS):
            new_h = []
            for j in range(fan_out):
                # PyTorch layout W[j, i] flattened row-major; start the
                # accumulator with the first FMA (no bias splat).
                acc = w_ref[w_off + j * fan_in] * h[0]
                for i in range(1, fan_in):
                    acc = acc + w_ref[w_off + j * fan_in + i] * h[i]
                acc = acc + b_ref[b_off + j]   # scalar-operand bias add
                if li < n_layers - 1:          # ReLU on all but the last layer
                    acc = jnp.maximum(acc, 0.0)
                new_h.append(acc)
            h = new_h
            w_off += fan_in * fan_out
            b_off += fan_out
        o_ref[pl.ds(r, SUB_ROWS), :] = h[0]    # dense, lane-aligned store

    if subs == 1:
        compute_sub(0)
    else:
        def body(s, carry):
            compute_sub(s)
            return carry
        lax.fori_loop(0, subs, body, 0)


def net_deep_forward(x, params):
    """x: (N, 1) float32. params: list of (W, b), PyTorch layout W:(out,in), b:(out,)."""
    n = x.shape[0]

    # Pack every layer's parameters into two flat f32 slabs (SMEM-resident).
    w_flat = jnp.concatenate([w.reshape(-1) for w, _ in params]).astype(jnp.float32)
    b_flat = jnp.concatenate([b.reshape(-1) for _, b in params]).astype(jnp.float32)

    # ---- Right-size the layout to the batch ------------------------------
    # Working sub-tile is (8, lane): lane = 128 for small batches (min
    # lane-dense tile), 256 otherwise (keeps vreg pressure ~32 regs).
    lane = 128 if n <= SUB_ROWS * 128 else 256
    sub_elems = SUB_ROWS * lane
    n_sub = max(1, pl.cdiv(n, sub_elems))      # total (8, lane) sub-tiles

    # Sub-tiles per grid block: amortize the ~0.35us/step overhead with big
    # blocks, but keep the grid length >= 2 when possible so the "parallel"
    # axis shards across both TensorCores on v7x.
    if n_sub >= 2:
        subs_per_block = min(MAX_SUBS_PER_BLOCK, pl.cdiv(n_sub, 2))
    else:
        subs_per_block = 1
    num_blocks = pl.cdiv(n_sub, subs_per_block)
    n_sub_padded = num_blocks * subs_per_block
    block_rows = subs_per_block * SUB_ROWS

    # Lane-dense batch layout: pad and reshape so each grid step sees a dense
    # (block_rows, lane) block of batch elements.
    n_pad = n_sub_padded * sub_elems
    x_flat = jnp.pad(x.reshape(-1).astype(jnp.float32), (0, n_pad - n))
    x2d = x_flat.reshape(n_sub_padded * SUB_ROWS, lane)

    out2d = pl.pallas_call(
        net_deep_kernel,
        out_shape=jax.ShapeDtypeStruct(x2d.shape, jnp.float32),
        grid_spec=pltpu.PrefetchScalarGridSpec(
            num_scalar_prefetch=0,
            grid=(num_blocks,),
            in_specs=[
                pl.BlockSpec(memory_space=pltpu.MemorySpace.SMEM),  # packed weights
                pl.BlockSpec(memory_space=pltpu.MemorySpace.SMEM),  # packed biases
                pl.BlockSpec((block_rows, lane), lambda i: (i, 0)),
            ],
            out_specs=pl.BlockSpec((block_rows, lane), lambda i: (i, 0)),
        ),
        compiler_params=pltpu.CompilerParams(
            dimension_semantics=("parallel",),
        ),
    )(w_flat, b_flat, x2d)

    return out2d.reshape(-1)[:n].reshape(n, 1)


def init_params(key):
    """Deterministic PyTorch-style init: W:(out,in), b:(out,), U(-1/sqrt(fan_in), +)."""
    params = []
    for li, (fan_in, fan_out) in enumerate(LAYER_DIMS):
        kw, kb, key = jax.random.split(jax.random.fold_in(key, li), 3)
        bound = 1.0 / jnp.sqrt(jnp.float32(fan_in))
        w = jax.random.uniform(kw, (fan_out, fan_in), jnp.float32, -bound, bound)
        b = jax.random.uniform(kb, (fan_out,), jnp.float32, -bound, bound)
        params.append((w, b))
    return params


def net_deep_ref(x, params):
    """Pure-JAX reference (PyTorch semantics: y = x @ W.T + b, ReLU between layers)."""
    h = x
    for li, (w, b) in enumerate(params):
        h = h @ w.T + b
        if li < len(params) - 1:
            h = jnp.maximum(h, 0.0)
    return h


if __name__ == "__main__":
    key = jax.random.PRNGKey(0)
    pkey, xkey = jax.random.split(key)

    params = init_params(pkey)
    N = 64
    x = jax.random.normal(xkey, (N, 1), jnp.float32)

    out = net_deep_forward(x, params)
    out = jax.block_until_ready(out)

    ref = net_deep_ref(x, params)
    assert out.shape == (N, 1), out.shape
    assert jnp.allclose(out, ref, atol=1e-5, rtol=1e-5), (out, ref)

    print("KERNEL_OK")
</pallas_src>

<mosaic_0001>
module attributes {stable_mosaic.version = 11 : i64} {
  func.func @net_deep_kernel(%arg0: i32, %arg1: memref<332xf32, #tpu.memory_space<smem>>, %arg2: memref<53xf32, #tpu.memory_space<smem>>, %arg3: memref<8x128xf32, #tpu.memory_space<vmem>>, %arg4: memref<8x128xf32, #tpu.memory_space<vmem>>) attributes {dimension_semantics = [#tpu.dimension_semantics<parallel>], iteration_bounds = array<i64: 1>, scalar_prefetch = 0 : i64, scratch_operands = 0 : i64, tpu.core_type = #tpu.core_type<tc>, window_params = [{transform_indices = @transform_0, window_bounds = array<i64: 332>}, {transform_indices = @transform_1, window_bounds = array<i64: 53>}, {transform_indices = @transform_2, window_bounds = array<i64: 8, 128>}, {transform_indices = @transform_3, window_bounds = array<i64: 8, 128>}]} {
    %c0 = arith.constant 0 : index
    %c0_0 = arith.constant 0 : index
    %0 = vector.load %arg3[%c0, %c0_0] : memref<8x128xf32, #tpu.memory_space<vmem>>, vector<8x128xf32>
    %c0_1 = arith.constant 0 : index
    %1 = memref.load %arg1[%c0_1] : memref<332xf32, #tpu.memory_space<smem>>
    %2 = vector.broadcast %1 : f32 to vector<8x128xf32>
    %3 = arith.mulf %2, %0 : vector<8x128xf32>
    %c0_2 = arith.constant 0 : index
    %4 = memref.load %arg2[%c0_2] : memref<53xf32, #tpu.memory_space<smem>>
    %5 = vector.broadcast %4 : f32 to vector<8x128xf32>
    %6 = arith.addf %3, %5 : vector<8x128xf32>
    %cst = arith.constant 0.000000e+00 : f32
    %7 = vector.broadcast %cst : f32 to vector<8x128xf32>
    %8 = arith.maximumf %6, %7 : vector<8x128xf32>
    %c1 = arith.constant 1 : index
    %9 = memref.load %arg1[%c1] : memref<332xf32, #tpu.memory_space<smem>>
    %10 = vector.broadcast %9 : f32 to vector<8x128xf32>
    %11 = arith.mulf %10, %0 : vector<8x128xf32>
    %c1_3 = arith.constant 1 : index
    %12 = memref.load %arg2[%c1_3] : memref<53xf32, #tpu.memory_space<smem>>
    %13 = vector.broadcast %12 : f32 to vector<8x128xf32>
    %14 = arith.addf %11, %13 : vector<8x128xf32>
    %cst_4 = arith.constant 0.000000e+00 : f32
    %15 = vector.broadcast %cst_4 : f32 to vector<8x128xf32>
    %16 = arith.maximumf %14, %15 : vector<8x128xf32>
    %c2 = arith.constant 2 : index
    %17 = memref.load %arg1[%c2] : memref<332xf32, #tpu.memory_space<smem>>
    %18 = vector.broadcast %17 : f32 to vector<8x128xf32>
    %19 = arith.mulf %18, %0 : vector<8x128xf32>
    %c2_5 = arith.constant 2 : index
    %20 = memref.load %arg2[%c2_5] : memref<53xf32, #tpu.memory_space<smem>>
    %21 = vector.broadcast %20 : f32 to vector<8x128xf32>
    %22 = arith.addf %19, %21 : vector<8x128xf32>
    %cst_6 = arith.constant 0.000000e+00 : f32
    %23 = vector.broadcast %cst_6 : f32 to vector<8x128xf32>
    %24 = arith.maximumf %22, %23 : vector<8x128xf32>
    %c3 = arith.constant 3 : index
    %25 = memref.load %arg1[%c3] : memref<332xf32, #tpu.memory_space<smem>>
    %26 = vector.broadcast %25 : f32 to vector<8x128xf32>
    %27 = arith.mulf %26, %0 : vector<8x128xf32>
    %c3_7 = arith.constant 3 : index
    %28 = memref.load %arg2[%c3_7] : memref<53xf32, #tpu.memory_space<smem>>
    %29 = vector.broadcast %28 : f32 to vector<8x128xf32>
    %30 = arith.addf %27, %29 : vector<8x128xf32>
    %cst_8 = arith.constant 0.000000e+00 : f32
    %31 = vector.broadcast %cst_8 : f32 to vector<8x128xf32>
    %32 = arith.maximumf %30, %31 : vector<8x128xf32>
    %c4 = arith.constant 4 : index
    %33 = memref.load %arg1[%c4] : memref<332xf32, #tpu.memory_space<smem>>
    %34 = vector.broadcast %33 : f32 to vector<8x128xf32>
    %35 = arith.mulf %34, %0 : vector<8x128xf32>
    %c4_9 = arith.constant 4 : index
    %36 = memref.load %arg2[%c4_9] : memref<53xf32, #tpu.memory_space<smem>>
    %37 = vector.broadcast %36 : f32 to vector<8x128xf32>
    %38 = arith.addf %35, %37 : vector<8x128xf32>
    %cst_10 = arith.constant 0.000000e+00 : f32
    %39 = vector.broadcast %cst_10 : f32 to vector<8x128xf32>
    %40 = arith.maximumf %38, %39 : vector<8x128xf32>
    %c5 = arith.constant 5 : index
    %41 = memref.load %arg1[%c5] : memref<332xf32, #tpu.memory_space<smem>>
    %42 = vector.broadcast %41 : f32 to vector<8x128xf32>
    %43 = arith.mulf %42, %0 : vector<8x128xf32>
    %c5_11 = arith.constant 5 : index
    %44 = memref.load %arg2[%c5_11] : memref<53xf32, #tpu.memory_space<smem>>
    %45 = vector.broadcast %44 : f32 to vector<8x128xf32>
    %46 = arith.addf %43, %45 : vector<8x128xf32>
    %cst_12 = arith.constant 0.000000e+00 : f32
    %47 = vector.broadcast %cst_12 : f32 to vector<8x128xf32>
    %48 = arith.maximumf %46, %47 : vector<8x128xf32>
    %c6 = arith.constant 6 : index
    %49 = memref.load %arg1[%c6] : memref<332xf32, #tpu.memory_space<smem>>
    %50 = vector.broadcast %49 : f32 to vector<8x128xf32>
    %51 = arith.mulf %50, %0 : vector<8x128xf32>
    %c6_13 = arith.constant 6 : index
    %52 = memref.load %arg2[%c6_13] : memref<53xf32, #tpu.memory_space<smem>>
    %53 = vector.broadcast %52 : f32 to vector<8x128xf32>
    %54 = arith.addf %51, %53 : vector<8x128xf32>
    %cst_14 = arith.constant 0.000000e+00 : f32
    %55 = vector.broadcast %cst_14 : f32 to vector<8x128xf32>
    %56 = arith.maximumf %54, %55 : vector<8x128xf32>
    %c7 = arith.constant 7 : index
    %57 = memref.load %arg1[%c7] : memref<332xf32, #tpu.memory_space<smem>>
    %58 = vector.broadcast %57 : f32 to vector<8x128xf32>
    %59 = arith.mulf %58, %0 : vector<8x128xf32>
    %c7_15 = arith.constant 7 : index
    %60 = memref.load %arg2[%c7_15] : memref<53xf32, #tpu.memory_space<smem>>
    %61 = vector.broadcast %60 : f32 to vector<8x128xf32>
    %62 = arith.addf %59, %61 : vector<8x128xf32>
    %cst_16 = arith.constant 0.000000e+00 : f32
    %63 = vector.broadcast %cst_16 : f32 to vector<8x128xf32>
    %64 = arith.maximumf %62, %63 : vector<8x128xf32>
    %c8 = arith.constant 8 : index
    %65 = memref.load %arg1[%c8] : memref<332xf32, #tpu.memory_space<smem>>
    %66 = vector.broadcast %65 : f32 to vector<8x128xf32>
    %67 = arith.mulf %66, %8 : vector<8x128xf32>
    %c9 = arith.constant 9 : index
    %68 = memref.load %arg1[%c9] : memref<332xf32, #tpu.memory_space<smem>>
    %69 = vector.broadcast %68 : f32 to vector<8x128xf32>
    %70 = arith.mulf %69, %16 : vector<8x128xf32>
    %71 = arith.addf %67, %70 : vector<8x128xf32>
    %c10 = arith.constant 10 : index
    %72 = memref.load %arg1[%c10] : memref<332xf32, #tpu.memory_space<smem>>
    %73 = vector.broadcast %72 : f32 to vector<8x128xf32>
    %74 = arith.mulf %73, %24 : vector<8x128xf32>
    %75 = arith.addf %71, %74 : vector<8x128xf32>
    %c11 = arith.constant 11 : index
    %76 = memref.load %arg1[%c11] : memref<332xf32, #tpu.memory_space<smem>>
    %77 = vector.broadcast %76 : f32 to vector<8x128xf32>
    %78 = arith.mulf %77, %32 : vector<8x128xf32>
    %79 = arith.addf %75, %78 : vector<8x128xf32>
    %c12 = arith.constant 12 : index
    %80 = memref.load %arg1[%c12] : memref<332xf32, #tpu.memory_space<smem>>
    %81 = vector.broadcast %80 : f32 to vector<8x128xf32>
    %82 = arith.mulf %81, %40 : vector<8x128xf32>
    %83 = arith.addf %79, %82 : vector<8x128xf32>
    %c13 = arith.constant 13 : index
    %84 = memref.load %arg1[%c13] : memref<332xf32, #tpu.memory_space<smem>>
    %85 = vector.broadcast %84 : f32 to vector<8x128xf32>
    %86 = arith.mulf %85, %48 : vector<8x128xf32>
    %87 = arith.addf %83, %86 : vector<8x128xf32>
    %c14 = arith.constant 14 : index
    %88 = memref.load %arg1[%c14] : memref<332xf32, #tpu.memory_space<smem>>
    %89 = vector.broadcast %88 : f32 to vector<8x128xf32>
    %90 = arith.mulf %89, %56 : vector<8x128xf32>
    %91 = arith.addf %87, %90 : vector<8x128xf32>
    %c15 = arith.constant 15 : index
    %92 = memref.load %arg1[%c15] : memref<332xf32, #tpu.memory_space<smem>>
    %93 = vector.broadcast %92 : f32 to vector<8x128xf32>
    %94 = arith.mulf %93, %64 : vector<8x128xf32>
    %95 = arith.addf %91, %94 : vector<8x128xf32>
    %c8_17 = arith.constant 8 : index
    %96 = memref.load %arg2[%c8_17] : memref<53xf32, #tpu.memory_space<smem>>
    %97 = vector.broadcast %96 : f32 to vector<8x128xf32>
    %98 = arith.addf %95, %97 : vector<8x128xf32>
    %cst_18 = arith.constant 0.000000e+00 : f32
    %99 = vector.broadcast %cst_18 : f32 to vector<8x128xf32>
    %100 = arith.maximumf %98, %99 : vector<8x128xf32>
    %c16 = arith.constant 16 : index
    %101 = memref.load %arg1[%c16] : memref<332xf32, #tpu.memory_space<smem>>
    %102 = vector.broadcast %101 : f32 to vector<8x128xf32>
    %103 = arith.mulf %102, %8 : vector<8x128xf32>
    %c17 = arith.constant 17 : index
    %104 = memref.load %arg1[%c17] : memref<332xf32, #tpu.memory_space<smem>>
    %105 = vector.broadcast %104 : f32 to vector<8x128xf32>
    %106 = arith.mulf %105, %16 : vector<8x128xf32>
    %107 = arith.addf %103, %106 : vector<8x128xf32>
    %c18 = arith.constant 18 : index
    %108 = memref.load %arg1[%c18] : memref<332xf32, #tpu.memory_space<smem>>
    %109 = vector.broadcast %108 : f32 to vector<8x128xf32>
    %110 = arith.mulf %109, %24 : vector<8x128xf32>
    %111 = arith.addf %107, %110 : vector<8x128xf32>
    %c19 = arith.constant 19 : index
    %112 = memref.load %arg1[%c19] : memref<332xf32, #tpu.memory_space<smem>>
    %113 = vector.broadcast %112 : f32 to vector<8x128xf32>
    %114 = arith.mulf %113, %32 : vector<8x128xf32>
    %115 = arith.addf %111, %114 : vector<8x128xf32>
    %c20 = arith.constant 20 : index
    %116 = memref.load %arg1[%c20] : memref<332xf32, #tpu.memory_space<smem>>
    %117 = vector.broadcast %116 : f32 to vector<8x128xf32>
    %118 = arith.mulf %117, %40 : vector<8x128xf32>
    %119 = arith.addf %115, %118 : vector<8x128xf32>
    %c21 = arith.constant 21 : index
    %120 = memref.load %arg1[%c21] : memref<332xf32, #tpu.memory_space<smem>>
    %121 = vector.broadcast %120 : f32 to vector<8x128xf32>
    %122 = arith.mulf %121, %48 : vector<8x128xf32>
    %123 = arith.addf %119, %122 : vector<8x128xf32>
    %c22 = arith.constant 22 : index
    %124 = memref.load %arg1[%c22] : memref<332xf32, #tpu.memory_space<smem>>
    %125 = vector.broadcast %124 : f32 to vector<8x128xf32>
    %126 = arith.mulf %125, %56 : vector<8x128xf32>
    %127 = arith.addf %123, %126 : vector<8x128xf32>
    %c23 = arith.constant 23 : index
    %128 = memref.load %arg1[%c23] : memref<332xf32, #tpu.memory_space<smem>>
    %129 = vector.broadcast %128 : f32 to vector<8x128xf32>
    %130 = arith.mulf %129, %64 : vector<8x128xf32>
    %131 = arith.addf %127, %130 : vector<8x128xf32>
    %c9_19 = arith.constant 9 : index
    %132 = memref.load %arg2[%c9_19] : memref<53xf32, #tpu.memory_space<smem>>
    %133 = vector.broadcast %132 : f32 to vector<8x128xf32>
    %134 = arith.addf %131, %133 : vector<8x128xf32>
    %cst_20 = arith.constant 0.000000e+00 : f32
    %135 = vector.broadcast %cst_20 : f32 to vector<8x128xf32>
    %136 = arith.maximumf %134, %135 : vector<8x128xf32>
    %c24 = arith.constant 24 : index
    %137 = memref.load %arg1[%c24] : memref<332xf32, #tpu.memory_space<smem>>
    %138 = vector.broadcast %137 : f32 to vector<8x128xf32>
    %139 = arith.mulf %138, %8 : vector<8x128xf32>
    %c25 = arith.constant 25 : index
    %140 = memref.load %arg1[%c25] : memref<332xf32, #tpu.memory_space<smem>>
    %141 = vector.broadcast %140 : f32 to vector<8x128xf32>
    %142 = arith.mulf %141, %16 : vector<8x128xf32>
    %143 = arith.addf %139, %142 : vector<8x128xf32>
    %c26 = arith.constant 26 : index
    %144 = memref.load %arg1[%c26] : memref<332xf32, #tpu.memory_space<smem>>
    %145 = vector.broadcast %144 : f32 to vector<8x128xf32>
    %146 = arith.mulf %145, %24 : vector<8x128xf32>
    %147 = arith.addf %143, %146 : vector<8x128xf32>
    %c27 = arith.constant 27 : index
    %148 = memref.load %arg1[%c27] : memref<332xf32, #tpu.memory_space<smem>>
    %149 = vector.broadcast %148 : f32 to vector<8x128xf32>
    %150 = arith.mulf %149, %32 : vector<8x128xf32>
    %151 = arith.addf %147, %150 : vector<8x128xf32>
    %c28 = arith.constant 28 : index
    %152 = memref.load %arg1[%c28] : memref<332xf32, #tpu.memory_space<smem>>
    %153 = vector.broadcast %152 : f32 to vector<8x128xf32>
    %154 = arith.mulf %153, %40 : vector<8x128xf32>
    %155 = arith.addf %151, %154 : vector<8x128xf32>
    %c29 = arith.constant 29 : index
    %156 = memref.load %arg1[%c29] : memref<332xf32, #tpu.memory_space<smem>>
    %157 = vector.broadcast %156 : f32 to vector<8x128xf32>
    %158 = arith.mulf %157, %48 : vector<8x128xf32>
    %159 = arith.addf %155, %158 : vector<8x128xf32>
    %c30 = arith.constant 30 : index
    %160 = memref.load %arg1[%c30] : memref<332xf32, #tpu.memory_space<smem>>
    %161 = vector.broadcast %160 : f32 to vector<8x128xf32>
    %162 = arith.mulf %161, %56 : vector<8x128xf32>
    %163 = arith.addf %159, %162 : vector<8x128xf32>
    %c31 = arith.constant 31 : index
    %164 = memref.load %arg1[%c31] : memref<332xf32, #tpu.memory_space<smem>>
    %165 = vector.broadcast %164 : f32 to vector<8x128xf32>
    %166 = arith.mulf %165, %64 : vector<8x128xf32>
    %167 = arith.addf %163, %166 : vector<8x128xf32>
    %c10_21 = arith.constant 10 : index
    %168 = memref.load %arg2[%c10_21] : memref<53xf32, #tpu.memory_space<smem>>
    %169 = vector.broadcast %168 : f32 to vector<8x128xf32>
    %170 = arith.addf %167, %169 : vector<8x128xf32>
    %cst_22 = arith.constant 0.000000e+00 : f32
    %171 = vector.broadcast %cst_22 : f32 to vector<8x128xf32>
    %172 = arith.maximumf %170, %171 : vector<8x128xf32>
    %c32 = arith.constant 32 : index
    %173 = memref.load %arg1[%c32] : memref<332xf32, #tpu.memory_space<smem>>
    %174 = vector.broadcast %173 : f32 to vector<8x128xf32>
    %175 = arith.mulf %174, %8 : vector<8x128xf32>
    %c33 = arith.constant 33 : index
    %176 = memref.load %arg1[%c33] : memref<332xf32, #tpu.memory_space<smem>>
    %177 = vector.broadcast %176 : f32 to vector<8x128xf32>
    %178 = arith.mulf %177, %16 : vector<8x128xf32>
    %179 = arith.addf %175, %178 : vector<8x128xf32>
    %c34 = arith.constant 34 : index
    %180 = memref.load %arg1[%c34] : memref<332xf32, #tpu.memory_space<smem>>
    %181 = vector.broadcast %180 : f32 to vector<8x128xf32>
    %182 = arith.mulf %181, %24 : vector<8x128xf32>
    %183 = arith.addf %179, %182 : vector<8x128xf32>
    %c35 = arith.constant 35 : index
    %184 = memref.load %arg1[%c35] : memref<332xf32, #tpu.memory_space<smem>>
    %185 = vector.broadcast %184 : f32 to vector<8x128xf32>
    %186 = arith.mulf %185, %32 : vector<8x128xf32>
    %187 = arith.addf %183, %186 : vector<8x128xf32>
    %c36 = arith.constant 36 : index
    %188 = memref.load %arg1[%c36] : memref<332xf32, #tpu.memory_space<smem>>
    %189 = vector.broadcast %188 : f32 to vector<8x128xf32>
    %190 = arith.mulf %189, %40 : vector<8x128xf32>
    %191 = arith.addf %187, %190 : vector<8x128xf32>
    %c37 = arith.constant 37 : index
    %192 = memref.load %arg1[%c37] : memref<332xf32, #tpu.memory_space<smem>>
    %193 = vector.broadcast %192 : f32 to vector<8x128xf32>
    %194 = arith.mulf %193, %48 : vector<8x128xf32>
    %195 = arith.addf %191, %194 : vector<8x128xf32>
    %c38 = arith.constant 38 : index
    %196 = memref.load %arg1[%c38] : memref<332xf32, #tpu.memory_space<smem>>
    %197 = vector.broadcast %196 : f32 to vector<8x128xf32>
    %198 = arith.mulf %197, %56 : vector<8x128xf32>
    %199 = arith.addf %195, %198 : vector<8x128xf32>
    %c39 = arith.constant 39 : index
    %200 = memref.load %arg1[%c39] : memref<332xf32, #tpu.memory_space<smem>>
    %201 = vector.broadcast %200 : f32 to vector<8x128xf32>
    %202 = arith.mulf %201, %64 : vector<8x128xf32>
    %203 = arith.addf %199, %202 : vector<8x128xf32>
    %c11_23 = arith.constant 11 : index
    %204 = memref.load %arg2[%c11_23] : memref<53xf32, #tpu.memory_space<smem>>
    %205 = vector.broadcast %204 : f32 to vector<8x128xf32>
    %206 = arith.addf %203, %205 : vector<8x128xf32>
    %cst_24 = arith.constant 0.000000e+00 : f32
    %207 = vector.broadcast %cst_24 : f32 to vector<8x128xf32>
    %208 = arith.maximumf %206, %207 : vector<8x128xf32>
    %c40 = arith.constant 40 : index
    %209 = memref.load %arg1[%c40] : memref<332xf32, #tpu.memory_space<smem>>
    %210 = vector.broadcast %209 : f32 to vector<8x128xf32>
    %211 = arith.mulf %210, %8 : vector<8x128xf32>
    %c41 = arith.constant 41 : index
    %212 = memref.load %arg1[%c41] : memref<332xf32, #tpu.memory_space<smem>>
    %213 = vector.broadcast %212 : f32 to vector<8x128xf32>
    %214 = arith.mulf %213, %16 : vector<8x128xf32>
    %215 = arith.addf %211, %214 : vector<8x128xf32>
    %c42 = arith.constant 42 : index
    %216 = memref.load %arg1[%c42] : memref<332xf32, #tpu.memory_space<smem>>
    %217 = vector.broadcast %216 : f32 to vector<8x128xf32>
    %218 = arith.mulf %217, %24 : vector<8x128xf32>
    %219 = arith.addf %215, %218 : vector<8x128xf32>
    %c43 = arith.constant 43 : index
    %220 = memref.load %arg1[%c43] : memref<332xf32, #tpu.memory_space<smem>>
    %221 = vector.broadcast %220 : f32 to vector<8x128xf32>
    %222 = arith.mulf %221, %32 : vector<8x128xf32>
    %223 = arith.addf %219, %222 : vector<8x128xf32>
    %c44 = arith.constant 44 : index
    %224 = memref.load %arg1[%c44] : memref<332xf32, #tpu.memory_space<smem>>
    %225 = vector.broadcast %224 : f32 to vector<8x128xf32>
    %226 = arith.mulf %225, %40 : vector<8x128xf32>
    %227 = arith.addf %223, %226 : vector<8x128xf32>
    %c45 = arith.constant 45 : index
    %228 = memref.load %arg1[%c45] : memref<332xf32, #tpu.memory_space<smem>>
    %229 = vector.broadcast %228 : f32 to vector<8x128xf32>
    %230 = arith.mulf %229, %48 : vector<8x128xf32>
    %231 = arith.addf %227, %230 : vector<8x128xf32>
    %c46 = arith.constant 46 : index
    %232 = memref.load %arg1[%c46] : memref<332xf32, #tpu.memory_space<smem>>
    %233 = vector.broadcast %232 : f32 to vector<8x128xf32>
    %234 = arith.mulf %233, %56 : vector<8x128xf32>
    %235 = arith.addf %231, %234 : vector<8x128xf32>
    %c47 = arith.constant 47 : index
    %236 = memref.load %arg1[%c47] : memref<332xf32, #tpu.memory_space<smem>>
    %237 = vector.broadcast %236 : f32 to vector<8x128xf32>
    %238 = arith.mulf %237, %64 : vector<8x128xf32>
    %239 = arith.addf %235, %238 : vector<8x128xf32>
    %c12_25 = arith.constant 12 : index
    %240 = memref.load %arg2[%c12_25] : memref<53xf32, #tpu.memory_space<smem>>
    %241 = vector.broadcast %240 : f32 to vector<8x128xf32>
    %242 = arith.addf %239, %241 : vector<8x128xf32>
    %cst_26 = arith.constant 0.000000e+00 : f32
    %243 = vector.broadcast %cst_26 : f32 to vector<8x128xf32>
    %244 = arith.maximumf %242, %243 : vector<8x128xf32>
    %c48 = arith.constant 48 : index
    %245 = memref.load %arg1[%c48] : memref<332xf32, #tpu.memory_space<smem>>
    %246 = vector.broadcast %245 : f32 to vector<8x128xf32>
    %247 = arith.mulf %246, %8 : vector<8x128xf32>
    %c49 = arith.constant 49 : index
    %248 = memref.load %arg1[%c49] : memref<332xf32, #tpu.memory_space<smem>>
    %249 = vector.broadcast %248 : f32 to vector<8x128xf32>
    %250 = arith.mulf %249, %16 : vector<8x128xf32>
    %251 = arith.addf %247, %250 : vector<8x128xf32>
    %c50 = arith.constant 50 : index
    %252 = memref.load %arg1[%c50] : memref<332xf32, #tpu.memory_space<smem>>
    %253 = vector.broadcast %252 : f32 to vector<8x128xf32>
    %254 = arith.mulf %253, %24 : vector<8x128xf32>
    %255 = arith.addf %251, %254 : vector<8x128xf32>
    %c51 = arith.constant 51 : index
    %256 = memref.load %arg1[%c51] : memref<332xf32, #tpu.memory_space<smem>>
    %257 = vector.broadcast %256 : f32 to vector<8x128xf32>
    %258 = arith.mulf %257, %32 : vector<8x128xf32>
    %259 = arith.addf %255, %258 : vector<8x128xf32>
    %c52 = arith.constant 52 : index
    %260 = memref.load %arg1[%c52] : memref<332xf32, #tpu.memory_space<smem>>
    %261 = vector.broadcast %260 : f32 to vector<8x128xf32>
    %262 = arith.mulf %261, %40 : vector<8x128xf32>
    %263 = arith.addf %259, %262 : vector<8x128xf32>
    %c53 = arith.constant 53 : index
    %264 = memref.load %arg1[%c53] : memref<332xf32, #tpu.memory_space<smem>>
    %265 = vector.broadcast %264 : f32 to vector<8x128xf32>
    %266 = arith.mulf %265, %48 : vector<8x128xf32>
    %267 = arith.addf %263, %266 : vector<8x128xf32>
    %c54 = arith.constant 54 : index
    %268 = memref.load %arg1[%c54] : memref<332xf32, #tpu.memory_space<smem>>
    %269 = vector.broadcast %268 : f32 to vector<8x128xf32>
    %270 = arith.mulf %269, %56 : vector<8x128xf32>
    %271 = arith.addf %267, %270 : vector<8x128xf32>
    %c55 = arith.constant 55 : index
    %272 = memref.load %arg1[%c55] : memref<332xf32, #tpu.memory_space<smem>>
    %273 = vector.broadcast %272 : f32 to vector<8x128xf32>
    %274 = arith.mulf %273, %64 : vector<8x128xf32>
    %275 = arith.addf %271, %274 : vector<8x128xf32>
    %c13_27 = arith.constant 13 : index
    %276 = memref.load %arg2[%c13_27] : memref<53xf32, #tpu.memory_space<smem>>
    %277 = vector.broadcast %276 : f32 to vector<8x128xf32>
    %278 = arith.addf %275, %277 : vector<8x128xf32>
    %cst_28 = arith.constant 0.000000e+00 : f32
    %279 = vector.broadcast %cst_28 : f32 to vector<8x128xf32>
    %280 = arith.maximumf %278, %279 : vector<8x128xf32>
    %c56 = arith.constant 56 : index
    %281 = memref.load %arg1[%c56] : memref<332xf32, #tpu.memory_space<smem>>
    %282 = vector.broadcast %281 : f32 to vector<8x128xf32>
    %283 = arith.mulf %282, %8 : vector<8x128xf32>
    %c57 = arith.constant 57 : index
    %284 = memref.load %arg1[%c57] : memref<332xf32, #tpu.memory_space<smem>>
    %285 = vector.broadcast %284 : f32 to vector<8x128xf32>
    %286 = arith.mulf %285, %16 : vector<8x128xf32>
    %287 = arith.addf %283, %286 : vector<8x128xf32>
    %c58 = arith.constant 58 : index
    %288 = memref.load %arg1[%c58] : memref<332xf32, #tpu.memory_space<smem>>
    %289 = vector.broadcast %288 : f32 to vector<8x128xf32>
    %290 = arith.mulf %289, %24 : vector<8x128xf32>
    %291 = arith.addf %287, %290 : vector<8x128xf32>
    %c59 = arith.constant 59 : index
    %292 = memref.load %arg1[%c59] : memref<332xf32, #tpu.memory_space<smem>>
    %293 = vector.broadcast %292 : f32 to vector<8x128xf32>
    %294 = arith.mulf %293, %32 : vector<8x128xf32>
    %295 = arith.addf %291, %294 : vector<8x128xf32>
    %c60 = arith.constant 60 : index
    %296 = memref.load %arg1[%c60] : memref<332xf32, #tpu.memory_space<smem>>
    %297 = vector.broadcast %296 : f32 to vector<8x128xf32>
    %298 = arith.mulf %297, %40 : vector<8x128xf32>
    %299 = arith.addf %295, %298 : vector<8x128xf32>
    %c61 = arith.constant 61 : index
    %300 = memref.load %arg1[%c61] : memref<332xf32, #tpu.memory_space<smem>>
    %301 = vector.broadcast %300 : f32 to vector<8x128xf32>
    %302 = arith.mulf %301, %48 : vector<8x128xf32>
    %303 = arith.addf %299, %302 : vector<8x128xf32>
    %c62 = arith.constant 62 : index
    %304 = memref.load %arg1[%c62] : memref<332xf32, #tpu.memory_space<smem>>
    %305 = vector.broadcast %304 : f32 to vector<8x128xf32>
    %306 = arith.mulf %305, %56 : vector<8x128xf32>
    %307 = arith.addf %303, %306 : vector<8x128xf32>
    %c63 = arith.constant 63 : index
    %308 = memref.load %arg1[%c63] : memref<332xf32, #tpu.memory_space<smem>>
    %309 = vector.broadcast %308 : f32 to vector<8x128xf32>
    %310 = arith.mulf %309, %64 : vector<8x128xf32>
    %311 = arith.addf %307, %310 : vector<8x128xf32>
    %c14_29 = arith.constant 14 : index
    %312 = memref.load %arg2[%c14_29] : memref<53xf32, #tpu.memory_space<smem>>
    %313 = vector.broadcast %312 : f32 to vector<8x128xf32>
    %314 = arith.addf %311, %313 : vector<8x128xf32>
    %cst_30 = arith.constant 0.000000e+00 : f32
    %315 = vector.broadcast %cst_30 : f32 to vector<8x128xf32>
    %316 = arith.maximumf %314, %315 : vector<8x128xf32>
    %c64 = arith.constant 64 : index
    %317 = memref.load %arg1[%c64] : memref<332xf32, #tpu.memory_space<smem>>
    %318 = vector.broadcast %317 : f32 to vector<8x128xf32>
    %319 = arith.mulf %318, %8 : vector<8x128xf32>
    %c65 = arith.constant 65 : index
    %320 = memref.load %arg1[%c65] : memref<332xf32, #tpu.memory_space<smem>>
    %321 = vector.broadcast %320 : f32 to vector<8x128xf32>
    %322 = arith.mulf %321, %16 : vector<8x128xf32>
    %323 = arith.addf %319, %322 : vector<8x128xf32>
    %c66 = arith.constant 66 : index
    %324 = memref.load %arg1[%c66] : memref<332xf32, #tpu.memory_space<smem>>
    %325 = vector.broadcast %324 : f32 to vector<8x128xf32>
    %326 = arith.mulf %325, %24 : vector<8x128xf32>
    %327 = arith.addf %323, %326 : vector<8x128xf32>
    %c67 = arith.constant 67 : index
    %328 = memref.load %arg1[%c67] : memref<332xf32, #tpu.memory_space<smem>>
    %329 = vector.broadcast %328 : f32 to vector<8x128xf32>
    %330 = arith.mulf %329, %32 : vector<8x128xf32>
    %331 = arith.addf %327, %330 : vector<8x128xf32>
    %c68 = arith.constant 68 : index
    %332 = memref.load %arg1[%c68] : memref<332xf32, #tpu.memory_space<smem>>
    %333 = vector.broadcast %332 : f32 to vector<8x128xf32>
    %334 = arith.mulf %333, %40 : vector<8x128xf32>
    %335 = arith.addf %331, %334 : vector<8x128xf32>
    %c69 = arith.constant 69 : index
    %336 = memref.load %arg1[%c69] : memref<332xf32, #tpu.memory_space<smem>>
    %337 = vector.broadcast %336 : f32 to vector<8x128xf32>
    %338 = arith.mulf %337, %48 : vector<8x128xf32>
    %339 = arith.addf %335, %338 : vector<8x128xf32>
    %c70 = arith.constant 70 : index
    %340 = memref.load %arg1[%c70] : memref<332xf32, #tpu.memory_space<smem>>
    %341 = vector.broadcast %340 : f32 to vector<8x128xf32>
    %342 = arith.mulf %341, %56 : vector<8x128xf32>
    %343 = arith.addf %339, %342 : vector<8x128xf32>
    %c71 = arith.constant 71 : index
    %344 = memref.load %arg1[%c71] : memref<332xf32, #tpu.memory_space<smem>>
    %345 = vector.broadcast %344 : f32 to vector<8x128xf32>
    %346 = arith.mulf %345, %64 : vector<8x128xf32>
    %347 = arith.addf %343, %346 : vector<8x128xf32>
    %c15_31 = arith.constant 15 : index
    %348 = memref.load %arg2[%c15_31] : memref<53xf32, #tpu.memory_space<smem>>
    %349 = vector.broadcast %348 : f32 to vector<8x128xf32>
    %350 = arith.addf %347, %349 : vector<8x128xf32>
    %cst_32 = arith.constant 0.000000e+00 : f32
    %351 = vector.broadcast %cst_32 : f32 to vector<8x128xf32>
    %352 = arith.maximumf %350, %351 : vector<8x128xf32>
    %c72 = arith.constant 72 : index
    %353 = memref.load %arg1[%c72] : memref<332xf32, #tpu.memory_space<smem>>
    %354 = vector.broadcast %353 : f32 to vector<8x128xf32>
    %355 = arith.mulf %354, %100 : vector<8x128xf32>
    %c73 = arith.constant 73 : index
    %356 = memref.load %arg1[%c73] : memref<332xf32, #tpu.memory_space<smem>>
    %357 = vector.broadcast %356 : f32 to vector<8x128xf32>
    %358 = arith.mulf %357, %136 : vector<8x128xf32>
    %359 = arith.addf %355, %358 : vector<8x128xf32>
    %c74 = arith.constant 74 : index
    %360 = memref.load %arg1[%c74] : memref<332xf32, #tpu.memory_space<smem>>
    %361 = vector.broadcast %360 : f32 to vector<8x128xf32>
    %362 = arith.mulf %361, %172 : vector<8x128xf32>
    %363 = arith.addf %359, %362 : vector<8x128xf32>
    %c75 = arith.constant 75 : index
    %364 = memref.load %arg1[%c75] : memref<332xf32, #tpu.memory_space<smem>>
    %365 = vector.broadcast %364 : f32 to vector<8x128xf32>
    %366 = arith.mulf %365, %208 : vector<8x128xf32>
    %367 = arith.addf %363, %366 : vector<8x128xf32>
    %c76 = arith.constant 76 : index
    %368 = memref.load %arg1[%c76] : memref<332xf32, #tpu.memory_space<smem>>
    %369 = vector.broadcast %368 : f32 to vector<8x128xf32>
    %370 = arith.mulf %369, %244 : vector<8x128xf32>
    %371 = arith.addf %367, %370 : vector<8x128xf32>
    %c77 = arith.constant 77 : index
    %372 = memref.load %arg1[%c77] : memref<332xf32, #tpu.memory_space<smem>>
    %373 = vector.broadcast %372 : f32 to vector<8x128xf32>
    %374 = arith.mulf %373, %280 : vector<8x128xf32>
    %375 = arith.addf %371, %374 : vector<8x128xf32>
    %c78 = arith.constant 78 : index
    %376 = memref.load %arg1[%c78] : memref<332xf32, #tpu.memory_space<smem>>
    %377 = vector.broadcast %376 : f32 to vector<8x128xf32>
    %378 = arith.mulf %377, %316 : vector<8x128xf32>
    %379 = arith.addf %375, %378 : vector<8x128xf32>
    %c79 = arith.constant 79 : index
    %380 = memref.load %arg1[%c79] : memref<332xf32, #tpu.memory_space<smem>>
    %381 = vector.broadcast %380 : f32 to vector<8x128xf32>
    %382 = arith.mulf %381, %352 : vector<8x128xf32>
    %383 = arith.addf %379, %382 : vector<8x128xf32>
    %c16_33 = arith.constant 16 : index
    %384 = memref.load %arg2[%c16_33] : memref<53xf32, #tpu.memory_space<smem>>
    %385 = vector.broadcast %384 : f32 to vector<8x128xf32>
    %386 = arith.addf %383, %385 : vector<8x128xf32>
    %cst_34 = arith.constant 0.000000e+00 : f32
    %387 = vector.broadcast %cst_34 : f32 to vector<8x128xf32>
    %388 = arith.maximumf %386, %387 : vector<8x128xf32>
    %c80 = arith.constant 80 : index
    %389 = memref.load %arg1[%c80] : memref<332xf32, #tpu.memory_space<smem>>
    %390 = vector.broadcast %389 : f32 to vector<8x128xf32>
    %391 = arith.mulf %390, %100 : vector<8x128xf32>
    %c81 = arith.constant 81 : index
    %392 = memref.load %arg1[%c81] : memref<332xf32, #tpu.memory_space<smem>>
    %393 = vector.broadcast %392 : f32 to vector<8x128xf32>
    %394 = arith.mulf %393, %136 : vector<8x128xf32>
    %395 = arith.addf %391, %394 : vector<8x128xf32>
    %c82 = arith.constant 82 : index
    %396 = memref.load %arg1[%c82] : memref<332xf32, #tpu.memory_space<smem>>
    %397 = vector.broadcast %396 : f32 to vector<8x128xf32>
    %398 = arith.mulf %397, %172 : vector<8x128xf32>
    %399 = arith.addf %395, %398 : vector<8x128xf32>
    %c83 = arith.constant 83 : index
    %400 = memref.load %arg1[%c83] : memref<332xf32, #tpu.memory_space<smem>>
    %401 = vector.broadcast %400 : f32 to vector<8x128xf32>
    %402 = arith.mulf %401, %208 : vector<8x128xf32>
    %403 = arith.addf %399, %402 : vector<8x128xf32>
    %c84 = arith.constant 84 : index
    %404 = memref.load %arg1[%c84] : memref<332xf32, #tpu.memory_space<smem>>
    %405 = vector.broadcast %404 : f32 to vector<8x128xf32>
    %406 = arith.mulf %405, %244 : vector<8x128xf32>
    %407 = arith.addf %403, %406 : vector<8x128xf32>
    %c85 = arith.constant 85 : index
    %408 = memref.load %arg1[%c85] : memref<332xf32, #tpu.memory_space<smem>>
    %409 = vector.broadcast %408 : f32 to vector<8x128xf32>
    %410 = arith.mulf %409, %280 : vector<8x128xf32>
    %411 = arith.addf %407, %410 : vector<8x128xf32>
    %c86 = arith.constant 86 : index
    %412 = memref.load %arg1[%c86] : memref<332xf32, #tpu.memory_space<smem>>
    %413 = vector.broadcast %412 : f32 to vector<8x128xf32>
    %414 = arith.mulf %413, %316 : vector<8x128xf32>
    %415 = arith.addf %411, %414 : vector<8x128xf32>
    %c87 = arith.constant 87 : index
    %416 = memref.load %arg1[%c87] : memref<332xf32, #tpu.memory_space<smem>>
    %417 = vector.broadcast %416 : f32 to vector<8x128xf32>
    %418 = arith.mulf %417, %352 : vector<8x128xf32>
    %419 = arith.addf %415, %418 : vector<8x128xf32>
    %c17_35 = arith.constant 17 : index
    %420 = memref.load %arg2[%c17_35] : memref<53xf32, #tpu.memory_space<smem>>
    %421 = vector.broadcast %420 : f32 to vector<8x128xf32>
    %422 = arith.addf %419, %421 : vector<8x128xf32>
    %cst_36 = arith.constant 0.000000e+00 : f32
    %423 = vector.broadcast %cst_36 : f32 to vector<8x128xf32>
    %424 = arith.maximumf %422, %423 : vector<8x128xf32>
    %c88 = arith.constant 88 : index
    %425 = memref.load %arg1[%c88] : memref<332xf32, #tpu.memory_space<smem>>
    %426 = vector.broadcast %425 : f32 to vector<8x128xf32>
    %427 = arith.mulf %426, %100 : vector<8x128xf32>
    %c89 = arith.constant 89 : index
    %428 = memref.load %arg1[%c89] : memref<332xf32, #tpu.memory_space<smem>>
    %429 = vector.broadcast %428 : f32 to vector<8x128xf32>
    %430 = arith.mulf %429, %136 : vector<8x128xf32>
    %431 = arith.addf %427, %430 : vector<8x128xf32>
    %c90 = arith.constant 90 : index
    %432 = memref.load %arg1[%c90] : memref<332xf32, #tpu.memory_space<smem>>
    %433 = vector.broadcast %432 : f32 to vector<8x128xf32>
    %434 = arith.mulf %433, %172 : vector<8x128xf32>
    %435 = arith.addf %431, %434 : vector<8x128xf32>
    %c91 = arith.constant 91 : index
    %436 = memref.load %arg1[%c91] : memref<332xf32, #tpu.memory_space<smem>>
    %437 = vector.broadcast %436 : f32 to vector<8x128xf32>
    %438 = arith.mulf %437, %208 : vector<8x128xf32>
    %439 = arith.addf %435, %438 : vector<8x128xf32>
    %c92 = arith.constant 92 : index
    %440 = memref.load %arg1[%c92] : memref<332xf32, #tpu.memory_space<smem>>
    %441 = vector.broadcast %440 : f32 to vector<8x128xf32>
    %442 = arith.mulf %441, %244 : vector<8x128xf32>
    %443 = arith.addf %439, %442 : vector<8x128xf32>
    %c93 = arith.constant 93 : index
    %444 = memref.load %arg1[%c93] : memref<332xf32, #tpu.memory_space<smem>>
    %445 = vector.broadcast %444 : f32 to vector<8x128xf32>
    %446 = arith.mulf %445, %280 : vector<8x128xf32>
    %447 = arith.addf %443, %446 : vector<8x128xf32>
    %c94 = arith.constant 94 : index
    %448 = memref.load %arg1[%c94] : memref<332xf32, #tpu.memory_space<smem>>
    %449 = vector.broadcast %448 : f32 to vector<8x128xf32>
    %450 = arith.mulf %449, %316 : vector<8x128xf32>
    %451 = arith.addf %447, %450 : vector<8x128xf32>
    %c95 = arith.constant 95 : index
    %452 = memref.load %arg1[%c95] : memref<332xf32, #tpu.memory_space<smem>>
    %453 = vector.broadcast %452 : f32 to vector<8x128xf32>
    %454 = arith.mulf %453, %352 : vector<8x128xf32>
    %455 = arith.addf %451, %454 : vector<8x128xf32>
    %c18_37 = arith.constant 18 : index
    %456 = memref.load %arg2[%c18_37] : memref<53xf32, #tpu.memory_space<smem>>
    %457 = vector.broadcast %456 : f32 to vector<8x128xf32>
    %458 = arith.addf %455, %457 : vector<8x128xf32>
    %cst_38 = arith.constant 0.000000e+00 : f32
    %459 = vector.broadcast %cst_38 : f32 to vector<8x128xf32>
    %460 = arith.maximumf %458, %459 : vector<8x128xf32>
    %c96 = arith.constant 96 : index
    %461 = memref.load %arg1[%c96] : memref<332xf32, #tpu.memory_space<smem>>
    %462 = vector.broadcast %461 : f32 to vector<8x128xf32>
    %463 = arith.mulf %462, %100 : vector<8x128xf32>
    %c97 = arith.constant 97 : index
    %464 = memref.load %arg1[%c97] : memref<332xf32, #tpu.memory_space<smem>>
    %465 = vector.broadcast %464 : f32 to vector<8x128xf32>
    %466 = arith.mulf %465, %136 : vector<8x128xf32>
    %467 = arith.addf %463, %466 : vector<8x128xf32>
    %c98 = arith.constant 98 : index
    %468 = memref.load %arg1[%c98] : memref<332xf32, #tpu.memory_space<smem>>
    %469 = vector.broadcast %468 : f32 to vector<8x128xf32>
    %470 = arith.mulf %469, %172 : vector<8x128xf32>
    %471 = arith.addf %467, %470 : vector<8x128xf32>
    %c99 = arith.constant 99 : index
    %472 = memref.load %arg1[%c99] : memref<332xf32, #tpu.memory_space<smem>>
    %473 = vector.broadcast %472 : f32 to vector<8x128xf32>
    %474 = arith.mulf %473, %208 : vector<8x128xf32>
    %475 = arith.addf %471, %474 : vector<8x128xf32>
    %c100 = arith.constant 100 : index
    %476 = memref.load %arg1[%c100] : memref<332xf32, #tpu.memory_space<smem>>
    %477 = vector.broadcast %476 : f32 to vector<8x128xf32>
    %478 = arith.mulf %477, %244 : vector<8x128xf32>
    %479 = arith.addf %475, %478 : vector<8x128xf32>
    %c101 = arith.constant 101 : index
    %480 = memref.load %arg1[%c101] : memref<332xf32, #tpu.memory_space<smem>>
    %481 = vector.broadcast %480 : f32 to vector<8x128xf32>
    %482 = arith.mulf %481, %280 : vector<8x128xf32>
    %483 = arith.addf %479, %482 : vector<8x128xf32>
    %c102 = arith.constant 102 : index
    %484 = memref.load %arg1[%c102] : memref<332xf32, #tpu.memory_space<smem>>
    %485 = vector.broadcast %484 : f32 to vector<8x128xf32>
    %486 = arith.mulf %485, %316 : vector<8x128xf32>
    %487 = arith.addf %483, %486 : vector<8x128xf32>
    %c103 = arith.constant 103 : index
    %488 = memref.load %arg1[%c103] : memref<332xf32, #tpu.memory_space<smem>>
    %489 = vector.broadcast %488 : f32 to vector<8x128xf32>
    %490 = arith.mulf %489, %352 : vector<8x128xf32>
    %491 = arith.addf %487, %490 : vector<8x128xf32>
    %c19_39 = arith.constant 19 : index
    %492 = memref.load %arg2[%c19_39] : memref<53xf32, #tpu.memory_space<smem>>
    %493 = vector.broadcast %492 : f32 to vector<8x128xf32>
    %494 = arith.addf %491, %493 : vector<8x128xf32>
    %cst_40 = arith.constant 0.000000e+00 : f32
    %495 = vector.broadcast %cst_40 : f32 to vector<8x128xf32>
    %496 = arith.maximumf %494, %495 : vector<8x128xf32>
    %c104 = arith.constant 104 : index
    %497 = memref.load %arg1[%c104] : memref<332xf32, #tpu.memory_space<smem>>
    %498 = vector.broadcast %497 : f32 to vector<8x128xf32>
    %499 = arith.mulf %498, %100 : vector<8x128xf32>
    %c105 = arith.constant 105 : index
    %500 = memref.load %arg1[%c105] : memref<332xf32, #tpu.memory_space<smem>>
    %501 = vector.broadcast %500 : f32 to vector<8x128xf32>
    %502 = arith.mulf %501, %136 : vector<8x128xf32>
    %503 = arith.addf %499, %502 : vector<8x128xf32>
    %c106 = arith.constant 106 : index
    %504 = memref.load %arg1[%c106] : memref<332xf32, #tpu.memory_space<smem>>
    %505 = vector.broadcast %504 : f32 to vector<8x128xf32>
    %506 = arith.mulf %505, %172 : vector<8x128xf32>
    %507 = arith.addf %503, %506 : vector<8x128xf32>
    %c107 = arith.constant 107 : index
    %508 = memref.load %arg1[%c107] : memref<332xf32, #tpu.memory_space<smem>>
    %509 = vector.broadcast %508 : f32 to vector<8x128xf32>
    %510 = arith.mulf %509, %208 : vector<8x128xf32>
    %511 = arith.addf %507, %510 : vector<8x128xf32>
    %c108 = arith.constant 108 : index
    %512 = memref.load %arg1[%c108] : memref<332xf32, #tpu.memory_space<smem>>
    %513 = vector.broadcast %512 : f32 to vector<8x128xf32>
    %514 = arith.mulf %513, %244 : vector<8x128xf32>
    %515 = arith.addf %511, %514 : vector<8x128xf32>
    %c109 = arith.constant 109 : index
    %516 = memref.load %arg1[%c109] : memref<332xf32, #tpu.memory_space<smem>>
    %517 = vector.broadcast %516 : f32 to vector<8x128xf32>
    %518 = arith.mulf %517, %280 : vector<8x128xf32>
    %519 = arith.addf %515, %518 : vector<8x128xf32>
    %c110 = arith.constant 110 : index
    %520 = memref.load %arg1[%c110] : memref<332xf32, #tpu.memory_space<smem>>
    %521 = vector.broadcast %520 : f32 to vector<8x128xf32>
    %522 = arith.mulf %521, %316 : vector<8x128xf32>
    %523 = arith.addf %519, %522 : vector<8x128xf32>
    %c111 = arith.constant 111 : index
    %524 = memref.load %arg1[%c111] : memref<332xf32, #tpu.memory_space<smem>>
    %525 = vector.broadcast %524 : f32 to vector<8x128xf32>
    %526 = arith.mulf %525, %352 : vector<8x128xf32>
    %527 = arith.addf %523, %526 : vector<8x128xf32>
    %c20_41 = arith.constant 20 : index
    %528 = memref.load %arg2[%c20_41] : memref<53xf32, #tpu.memory_space<smem>>
    %529 = vector.broadcast %528 : f32 to vector<8x128xf32>
    %530 = arith.addf %527, %529 : vector<8x128xf32>
    %cst_42 = arith.constant 0.000000e+00 : f32
    %531 = vector.broadcast %cst_42 : f32 to vector<8x128xf32>
    %532 = arith.maximumf %530, %531 : vector<8x128xf32>
    %c112 = arith.constant 112 : index
    %533 = memref.load %arg1[%c112] : memref<332xf32, #tpu.memory_space<smem>>
    %534 = vector.broadcast %533 : f32 to vector<8x128xf32>
    %535 = arith.mulf %534, %100 : vector<8x128xf32>
    %c113 = arith.constant 113 : index
    %536 = memref.load %arg1[%c113] : memref<332xf32, #tpu.memory_space<smem>>
    %537 = vector.broadcast %536 : f32 to vector<8x128xf32>
    %538 = arith.mulf %537, %136 : vector<8x128xf32>
    %539 = arith.addf %535, %538 : vector<8x128xf32>
    %c114 = arith.constant 114 : index
    %540 = memref.load %arg1[%c114] : memref<332xf32, #tpu.memory_space<smem>>
    %541 = vector.broadcast %540 : f32 to vector<8x128xf32>
    %542 = arith.mulf %541, %172 : vector<8x128xf32>
    %543 = arith.addf %539, %542 : vector<8x128xf32>
    %c115 = arith.constant 115 : index
    %544 = memref.load %arg1[%c115] : memref<332xf32, #tpu.memory_space<smem>>
    %545 = vector.broadcast %544 : f32 to vector<8x128xf32>
    %546 = arith.mulf %545, %208 : vector<8x128xf32>
    %547 = arith.addf %543, %546 : vector<8x128xf32>
    %c116 = arith.constant 116 : index
    %548 = memref.load %arg1[%c116] : memref<332xf32, #tpu.memory_space<smem>>
    %549 = vector.broadcast %548 : f32 to vector<8x128xf32>
    %550 = arith.mulf %549, %244 : vector<8x128xf32>
    %551 = arith.addf %547, %550 : vector<8x128xf32>
    %c117 = arith.constant 117 : index
    %552 = memref.load %arg1[%c117] : memref<332xf32, #tpu.memory_space<smem>>
    %553 = vector.broadcast %552 : f32 to vector<8x128xf32>
    %554 = arith.mulf %553, %280 : vector<8x128xf32>
    %555 = arith.addf %551, %554 : vector<8x128xf32>
    %c118 = arith.constant 118 : index
    %556 = memref.load %arg1[%c118] : memref<332xf32, #tpu.memory_space<smem>>
    %557 = vector.broadcast %556 : f32 to vector<8x128xf32>
    %558 = arith.mulf %557, %316 : vector<8x128xf32>
    %559 = arith.addf %555, %558 : vector<8x128xf32>
    %c119 = arith.constant 119 : index
    %560 = memref.load %arg1[%c119] : memref<332xf32, #tpu.memory_space<smem>>
    %561 = vector.broadcast %560 : f32 to vector<8x128xf32>
    %562 = arith.mulf %561, %352 : vector<8x128xf32>
    %563 = arith.addf %559, %562 : vector<8x128xf32>
    %c21_43 = arith.constant 21 : index
    %564 = memref.load %arg2[%c21_43] : memref<53xf32, #tpu.memory_space<smem>>
    %565 = vector.broadcast %564 : f32 to vector<8x128xf32>
    %566 = arith.addf %563, %565 : vector<8x128xf32>
    %cst_44 = arith.constant 0.000000e+00 : f32
    %567 = vector.broadcast %cst_44 : f32 to vector<8x128xf32>
    %568 = arith.maximumf %566, %567 : vector<8x128xf32>
    %c120 = arith.constant 120 : index
    %569 = memref.load %arg1[%c120] : memref<332xf32, #tpu.memory_space<smem>>
    %570 = vector.broadcast %569 : f32 to vector<8x128xf32>
    %571 = arith.mulf %570, %100 : vector<8x128xf32>
    %c121 = arith.constant 121 : index
    %572 = memref.load %arg1[%c121] : memref<332xf32, #tpu.memory_space<smem>>
    %573 = vector.broadcast %572 : f32 to vector<8x128xf32>
    %574 = arith.mulf %573, %136 : vector<8x128xf32>
    %575 = arith.addf %571, %574 : vector<8x128xf32>
    %c122 = arith.constant 122 : index
    %576 = memref.load %arg1[%c122] : memref<332xf32, #tpu.memory_space<smem>>
    %577 = vector.broadcast %576 : f32 to vector<8x128xf32>
    %578 = arith.mulf %577, %172 : vector<8x128xf32>
    %579 = arith.addf %575, %578 : vector<8x128xf32>
    %c123 = arith.constant 123 : index
    %580 = memref.load %arg1[%c123] : memref<332xf32, #tpu.memory_space<smem>>
    %581 = vector.broadcast %580 : f32 to vector<8x128xf32>
    %582 = arith.mulf %581, %208 : vector<8x128xf32>
    %583 = arith.addf %579, %582 : vector<8x128xf32>
    %c124 = arith.constant 124 : index
    %584 = memref.load %arg1[%c124] : memref<332xf32, #tpu.memory_space<smem>>
    %585 = vector.broadcast %584 : f32 to vector<8x128xf32>
    %586 = arith.mulf %585, %244 : vector<8x128xf32>
    %587 = arith.addf %583, %586 : vector<8x128xf32>
    %c125 = arith.constant 125 : index
    %588 = memref.load %arg1[%c125] : memref<332xf32, #tpu.memory_space<smem>>
    %589 = vector.broadcast %588 : f32 to vector<8x128xf32>
    %590 = arith.mulf %589, %280 : vector<8x128xf32>
    %591 = arith.addf %587, %590 : vector<8x128xf32>
    %c126 = arith.constant 126 : index
    %592 = memref.load %arg1[%c126] : memref<332xf32, #tpu.memory_space<smem>>
    %593 = vector.broadcast %592 : f32 to vector<8x128xf32>
    %594 = arith.mulf %593, %316 : vector<8x128xf32>
    %595 = arith.addf %591, %594 : vector<8x128xf32>
    %c127 = arith.constant 127 : index
    %596 = memref.load %arg1[%c127] : memref<332xf32, #tpu.memory_space<smem>>
    %597 = vector.broadcast %596 : f32 to vector<8x128xf32>
    %598 = arith.mulf %597, %352 : vector<8x128xf32>
    %599 = arith.addf %595, %598 : vector<8x128xf32>
    %c22_45 = arith.constant 22 : index
    %600 = memref.load %arg2[%c22_45] : memref<53xf32, #tpu.memory_space<smem>>
    %601 = vector.broadcast %600 : f32 to vector<8x128xf32>
    %602 = arith.addf %599, %601 : vector<8x128xf32>
    %cst_46 = arith.constant 0.000000e+00 : f32
    %603 = vector.broadcast %cst_46 : f32 to vector<8x128xf32>
    %604 = arith.maximumf %602, %603 : vector<8x128xf32>
    %c128 = arith.constant 128 : index
    %605 = memref.load %arg1[%c128] : memref<332xf32, #tpu.memory_space<smem>>
    %606 = vector.broadcast %605 : f32 to vector<8x128xf32>
    %607 = arith.mulf %606, %100 : vector<8x128xf32>
    %c129 = arith.constant 129 : index
    %608 = memref.load %arg1[%c129] : memref<332xf32, #tpu.memory_space<smem>>
    %609 = vector.broadcast %608 : f32 to vector<8x128xf32>
    %610 = arith.mulf %609, %136 : vector<8x128xf32>
    %611 = arith.addf %607, %610 : vector<8x128xf32>
    %c130 = arith.constant 130 : index
    %612 = memref.load %arg1[%c130] : memref<332xf32, #tpu.memory_space<smem>>
    %613 = vector.broadcast %612 : f32 to vector<8x128xf32>
    %614 = arith.mulf %613, %172 : vector<8x128xf32>
    %615 = arith.addf %611, %614 : vector<8x128xf32>
    %c131 = arith.constant 131 : index
    %616 = memref.load %arg1[%c131] : memref<332xf32, #tpu.memory_space<smem>>
    %617 = vector.broadcast %616 : f32 to vector<8x128xf32>
    %618 = arith.mulf %617, %208 : vector<8x128xf32>
    %619 = arith.addf %615, %618 : vector<8x128xf32>
    %c132 = arith.constant 132 : index
    %620 = memref.load %arg1[%c132] : memref<332xf32, #tpu.memory_space<smem>>
    %621 = vector.broadcast %620 : f32 to vector<8x128xf32>
    %622 = arith.mulf %621, %244 : vector<8x128xf32>
    %623 = arith.addf %619, %622 : vector<8x128xf32>
    %c133 = arith.constant 133 : index
    %624 = memref.load %arg1[%c133] : memref<332xf32, #tpu.memory_space<smem>>
    %625 = vector.broadcast %624 : f32 to vector<8x128xf32>
    %626 = arith.mulf %625, %280 : vector<8x128xf32>
    %627 = arith.addf %623, %626 : vector<8x128xf32>
    %c134 = arith.constant 134 : index
    %628 = memref.load %arg1[%c134] : memref<332xf32, #tpu.memory_space<smem>>
    %629 = vector.broadcast %628 : f32 to vector<8x128xf32>
    %630 = arith.mulf %629, %316 : vector<8x128xf32>
    %631 = arith.addf %627, %630 : vector<8x128xf32>
    %c135 = arith.constant 135 : index
    %632 = memref.load %arg1[%c135] : memref<332xf32, #tpu.memory_space<smem>>
    %633 = vector.broadcast %632 : f32 to vector<8x128xf32>
    %634 = arith.mulf %633, %352 : vector<8x128xf32>
    %635 = arith.addf %631, %634 : vector<8x128xf32>
    %c23_47 = arith.constant 23 : index
    %636 = memref.load %arg2[%c23_47] : memref<53xf32, #tpu.memory_space<smem>>
    %637 = vector.broadcast %636 : f32 to vector<8x128xf32>
    %638 = arith.addf %635, %637 : vector<8x128xf32>
    %cst_48 = arith.constant 0.000000e+00 : f32
    %639 = vector.broadcast %cst_48 : f32 to vector<8x128xf32>
    %640 = arith.maximumf %638, %639 : vector<8x128xf32>
    %c136 = arith.constant 136 : index
    %641 = memref.load %arg1[%c136] : memref<332xf32, #tpu.memory_space<smem>>
    %642 = vector.broadcast %641 : f32 to vector<8x128xf32>
    %643 = arith.mulf %642, %388 : vector<8x128xf32>
    %c137 = arith.constant 137 : index
    %644 = memref.load %arg1[%c137] : memref<332xf32, #tpu.memory_space<smem>>
    %645 = vector.broadcast %644 : f32 to vector<8x128xf32>
    %646 = arith.mulf %645, %424 : vector<8x128xf32>
    %647 = arith.addf %643, %646 : vector<8x128xf32>
    %c138 = arith.constant 138 : index
    %648 = memref.load %arg1[%c138] : memref<332xf32, #tpu.memory_space<smem>>
    %649 = vector.broadcast %648 : f32 to vector<8x128xf32>
    %650 = arith.mulf %649, %460 : vector<8x128xf32>
    %651 = arith.addf %647, %650 : vector<8x128xf32>
    %c139 = arith.constant 139 : index
    %652 = memref.load %arg1[%c139] : memref<332xf32, #tpu.memory_space<smem>>
    %653 = vector.broadcast %652 : f32 to vector<8x128xf32>
    %654 = arith.mulf %653, %496 : vector<8x128xf32>
    %655 = arith.addf %651, %654 : vector<8x128xf32>
    %c140 = arith.constant 140 : index
    %656 = memref.load %arg1[%c140] : memref<332xf32, #tpu.memory_space<smem>>
    %657 = vector.broadcast %656 : f32 to vector<8x128xf32>
    %658 = arith.mulf %657, %532 : vector<8x128xf32>
    %659 = arith.addf %655, %658 : vector<8x128xf32>
    %c141 = arith.constant 141 : index
    %660 = memref.load %arg1[%c141] : memref<332xf32, #tpu.memory_space<smem>>
    %661 = vector.broadcast %660 : f32 to vector<8x128xf32>
    %662 = arith.mulf %661, %568 : vector<8x128xf32>
    %663 = arith.addf %659, %662 : vector<8x128xf32>
    %c142 = arith.constant 142 : index
    %664 = memref.load %arg1[%c142] : memref<332xf32, #tpu.memory_space<smem>>
    %665 = vector.broadcast %664 : f32 to vector<8x128xf32>
    %666 = arith.mulf %665, %604 : vector<8x128xf32>
    %667 = arith.addf %663, %666 : vector<8x128xf32>
    %c143 = arith.constant 143 : index
    %668 = memref.load %arg1[%c143] : memref<332xf32, #tpu.memory_space<smem>>
    %669 = vector.broadcast %668 : f32 to vector<8x128xf32>
    %670 = arith.mulf %669, %640 : vector<8x128xf32>
    %671 = arith.addf %667, %670 : vector<8x128xf32>
    %c24_49 = arith.constant 24 : index
    %672 = memref.load %arg2[%c24_49] : memref<53xf32, #tpu.memory_space<smem>>
    %673 = vector.broadcast %672 : f32 to vector<8x128xf32>
    %674 = arith.addf %671, %673 : vector<8x128xf32>
    %cst_50 = arith.constant 0.000000e+00 : f32
    %675 = vector.broadcast %cst_50 : f32 to vector<8x128xf32>
    %676 = arith.maximumf %674, %675 : vector<8x128xf32>
    %c144 = arith.constant 144 : index
    %677 = memref.load %arg1[%c144] : memref<332xf32, #tpu.memory_space<smem>>
    %678 = vector.broadcast %677 : f32 to vector<8x128xf32>
    %679 = arith.mulf %678, %388 : vector<8x128xf32>
    %c145 = arith.constant 145 : index
    %680 = memref.load %arg1[%c145] : memref<332xf32, #tpu.memory_space<smem>>
    %681 = vector.broadcast %680 : f32 to vector<8x128xf32>
    %682 = arith.mulf %681, %424 : vector<8x128xf32>
    %683 = arith.addf %679, %682 : vector<8x128xf32>
    %c146 = arith.constant 146 : index
    %684 = memref.load %arg1[%c146] : memref<332xf32, #tpu.memory_space<smem>>
    %685 = vector.broadcast %684 : f32 to vector<8x128xf32>
    %686 = arith.mulf %685, %460 : vector<8x128xf32>
    %687 = arith.addf %683, %686 : vector<8x128xf32>
    %c147 = arith.constant 147 : index
    %688 = memref.load %arg1[%c147] : memref<332xf32, #tpu.memory_space<smem>>
    %689 = vector.broadcast %688 : f32 to vector<8x128xf32>
    %690 = arith.mulf %689, %496 : vector<8x128xf32>
    %691 = arith.addf %687, %690 : vector<8x128xf32>
    %c148 = arith.constant 148 : index
    %692 = memref.load %arg1[%c148] : memref<332xf32, #tpu.memory_space<smem>>
    %693 = vector.broadcast %692 : f32 to vector<8x128xf32>
    %694 = arith.mulf %693, %532 : vector<8x128xf32>
    %695 = arith.addf %691, %694 : vector<8x128xf32>
    %c149 = arith.constant 149 : index
    %696 = memref.load %arg1[%c149] : memref<332xf32, #tpu.memory_space<smem>>
    %697 = vector.broadcast %696 : f32 to vector<8x128xf32>
    %698 = arith.mulf %697, %568 : vector<8x128xf32>
    %699 = arith.addf %695, %698 : vector<8x128xf32>
    %c150 = arith.constant 150 : index
    %700 = memref.load %arg1[%c150] : memref<332xf32, #tpu.memory_space<smem>>
    %701 = vector.broadcast %700 : f32 to vector<8x128xf32>
    %702 = arith.mulf %701, %604 : vector<8x128xf32>
    %703 = arith.addf %699, %702 : vector<8x128xf32>
    %c151 = arith.constant 151 : index
    %704 = memref.load %arg1[%c151] : memref<332xf32, #tpu.memory_space<smem>>
    %705 = vector.broadcast %704 : f32 to vector<8x128xf32>
    %706 = arith.mulf %705, %640 : vector<8x128xf32>
    %707 = arith.addf %703, %706 : vector<8x128xf32>
    %c25_51 = arith.constant 25 : index
    %708 = memref.load %arg2[%c25_51] : memref<53xf32, #tpu.memory_space<smem>>
    %709 = vector.broadcast %708 : f32 to vector<8x128xf32>
    %710 = arith.addf %707, %709 : vector<8x128xf32>
    %cst_52 = arith.constant 0.000000e+00 : f32
    %711 = vector.broadcast %cst_52 : f32 to vector<8x128xf32>
    %712 = arith.maximumf %710, %711 : vector<8x128xf32>
    %c152 = arith.constant 152 : index
    %713 = memref.load %arg1[%c152] : memref<332xf32, #tpu.memory_space<smem>>
    %714 = vector.broadcast %713 : f32 to vector<8x128xf32>
    %715 = arith.mulf %714, %388 : vector<8x128xf32>
    %c153 = arith.constant 153 : index
    %716 = memref.load %arg1[%c153] : memref<332xf32, #tpu.memory_space<smem>>
    %717 = vector.broadcast %716 : f32 to vector<8x128xf32>
    %718 = arith.mulf %717, %424 : vector<8x128xf32>
    %719 = arith.addf %715, %718 : vector<8x128xf32>
    %c154 = arith.constant 154 : index
    %720 = memref.load %arg1[%c154] : memref<332xf32, #tpu.memory_space<smem>>
    %721 = vector.broadcast %720 : f32 to vector<8x128xf32>
    %722 = arith.mulf %721, %460 : vector<8x128xf32>
    %723 = arith.addf %719, %722 : vector<8x128xf32>
    %c155 = arith.constant 155 : index
    %724 = memref.load %arg1[%c155] : memref<332xf32, #tpu.memory_space<smem>>
    %725 = vector.broadcast %724 : f32 to vector<8x128xf32>
    %726 = arith.mulf %725, %496 : vector<8x128xf32>
    %727 = arith.addf %723, %726 : vector<8x128xf32>
    %c156 = arith.constant 156 : index
    %728 = memref.load %arg1[%c156] : memref<332xf32, #tpu.memory_space<smem>>
    %729 = vector.broadcast %728 : f32 to vector<8x128xf32>
    %730 = arith.mulf %729, %532 : vector<8x128xf32>
    %731 = arith.addf %727, %730 : vector<8x128xf32>
    %c157 = arith.constant 157 : index
    %732 = memref.load %arg1[%c157] : memref<332xf32, #tpu.memory_space<smem>>
    %733 = vector.broadcast %732 : f32 to vector<8x128xf32>
    %734 = arith.mulf %733, %568 : vector<8x128xf32>
    %735 = arith.addf %731, %734 : vector<8x128xf32>
    %c158 = arith.constant 158 : index
    %736 = memref.load %arg1[%c158] : memref<332xf32, #tpu.memory_space<smem>>
    %737 = vector.broadcast %736 : f32 to vector<8x128xf32>
    %738 = arith.mulf %737, %604 : vector<8x128xf32>
    %739 = arith.addf %735, %738 : vector<8x128xf32>
    %c159 = arith.constant 159 : index
    %740 = memref.load %arg1[%c159] : memref<332xf32, #tpu.memory_space<smem>>
    %741 = vector.broadcast %740 : f32 to vector<8x128xf32>
    %742 = arith.mulf %741, %640 : vector<8x128xf32>
    %743 = arith.addf %739, %742 : vector<8x128xf32>
    %c26_53 = arith.constant 26 : index
    %744 = memref.load %arg2[%c26_53] : memref<53xf32, #tpu.memory_space<smem>>
    %745 = vector.broadcast %744 : f32 to vector<8x128xf32>
    %746 = arith.addf %743, %745 : vector<8x128xf32>
    %cst_54 = arith.constant 0.000000e+00 : f32
    %747 = vector.broadcast %cst_54 : f32 to vector<8x128xf32>
    %748 = arith.maximumf %746, %747 : vector<8x128xf32>
    %c160 = arith.constant 160 : index
    %749 = memref.load %arg1[%c160] : memref<332xf32, #tpu.memory_space<smem>>
    %750 = vector.broadcast %749 : f32 to vector<8x128xf32>
    %751 = arith.mulf %750, %388 : vector<8x128xf32>
    %c161 = arith.constant 161 : index
    %752 = memref.load %arg1[%c161] : memref<332xf32, #tpu.memory_space<smem>>
    %753 = vector.broadcast %752 : f32 to vector<8x128xf32>
    %754 = arith.mulf %753, %424 : vector<8x128xf32>
    %755 = arith.addf %751, %754 : vector<8x128xf32>
    %c162 = arith.constant 162 : index
    %756 = memref.load %arg1[%c162] : memref<332xf32, #tpu.memory_space<smem>>
    %757 = vector.broadcast %756 : f32 to vector<8x128xf32>
    %758 = arith.mulf %757, %460 : vector<8x128xf32>
    %759 = arith.addf %755, %758 : vector<8x128xf32>
    %c163 = arith.constant 163 : index
    %760 = memref.load %arg1[%c163] : memref<332xf32, #tpu.memory_space<smem>>
    %761 = vector.broadcast %760 : f32 to vector<8x128xf32>
    %762 = arith.mulf %761, %496 : vector<8x128xf32>
    %763 = arith.addf %759, %762 : vector<8x128xf32>
    %c164 = arith.constant 164 : index
    %764 = memref.load %arg1[%c164] : memref<332xf32, #tpu.memory_space<smem>>
    %765 = vector.broadcast %764 : f32 to vector<8x128xf32>
    %766 = arith.mulf %765, %532 : vector<8x128xf32>
    %767 = arith.addf %763, %766 : vector<8x128xf32>
    %c165 = arith.constant 165 : index
    %768 = memref.load %arg1[%c165] : memref<332xf32, #tpu.memory_space<smem>>
    %769 = vector.broadcast %768 : f32 to vector<8x128xf32>
    %770 = arith.mulf %769, %568 : vector<8x128xf32>
    %771 = arith.addf %767, %770 : vector<8x128xf32>
    %c166 = arith.constant 166 : index
    %772 = memref.load %arg1[%c166] : memref<332xf32, #tpu.memory_space<smem>>
    %773 = vector.broadcast %772 : f32 to vector<8x128xf32>
    %774 = arith.mulf %773, %604 : vector<8x128xf32>
    %775 = arith.addf %771, %774 : vector<8x128xf32>
    %c167 = arith.constant 167 : index
    %776 = memref.load %arg1[%c167] : memref<332xf32, #tpu.memory_space<smem>>
    %777 = vector.broadcast %776 : f32 to vector<8x128xf32>
    %778 = arith.mulf %777, %640 : vector<8x128xf32>
    %779 = arith.addf %775, %778 : vector<8x128xf32>
    %c27_55 = arith.constant 27 : index
    %780 = memref.load %arg2[%c27_55] : memref<53xf32, #tpu.memory_space<smem>>
    %781 = vector.broadcast %780 : f32 to vector<8x128xf32>
    %782 = arith.addf %779, %781 : vector<8x128xf32>
    %cst_56 = arith.constant 0.000000e+00 : f32
    %783 = vector.broadcast %cst_56 : f32 to vector<8x128xf32>
    %784 = arith.maximumf %782, %783 : vector<8x128xf32>
    %c168 = arith.constant 168 : index
    %785 = memref.load %arg1[%c168] : memref<332xf32, #tpu.memory_space<smem>>
    %786 = vector.broadcast %785 : f32 to vector<8x128xf32>
    %787 = arith.mulf %786, %388 : vector<8x128xf32>
    %c169 = arith.constant 169 : index
    %788 = memref.load %arg1[%c169] : memref<332xf32, #tpu.memory_space<smem>>
    %789 = vector.broadcast %788 : f32 to vector<8x128xf32>
    %790 = arith.mulf %789, %424 : vector<8x128xf32>
    %791 = arith.addf %787, %790 : vector<8x128xf32>
    %c170 = arith.constant 170 : index
    %792 = memref.load %arg1[%c170] : memref<332xf32, #tpu.memory_space<smem>>
    %793 = vector.broadcast %792 : f32 to vector<8x128xf32>
    %794 = arith.mulf %793, %460 : vector<8x128xf32>
    %795 = arith.addf %791, %794 : vector<8x128xf32>
    %c171 = arith.constant 171 : index
    %796 = memref.load %arg1[%c171] : memref<332xf32, #tpu.memory_space<smem>>
    %797 = vector.broadcast %796 : f32 to vector<8x128xf32>
    %798 = arith.mulf %797, %496 : vector<8x128xf32>
    %799 = arith.addf %795, %798 : vector<8x128xf32>
    %c172 = arith.constant 172 : index
    %800 = memref.load %arg1[%c172] : memref<332xf32, #tpu.memory_space<smem>>
    %801 = vector.broadcast %800 : f32 to vector<8x128xf32>
    %802 = arith.mulf %801, %532 : vector<8x128xf32>
    %803 = arith.addf %799, %802 : vector<8x128xf32>
    %c173 = arith.constant 173 : index
    %804 = memref.load %arg1[%c173] : memref<332xf32, #tpu.memory_space<smem>>
    %805 = vector.broadcast %804 : f32 to vector<8x128xf32>
    %806 = arith.mulf %805, %568 : vector<8x128xf32>
    %807 = arith.addf %803, %806 : vector<8x128xf32>
    %c174 = arith.constant 174 : index
    %808 = memref.load %arg1[%c174] : memref<332xf32, #tpu.memory_space<smem>>
    %809 = vector.broadcast %808 : f32 to vector<8x128xf32>
    %810 = arith.mulf %809, %604 : vector<8x128xf32>
    %811 = arith.addf %807, %810 : vector<8x128xf32>
    %c175 = arith.constant 175 : index
    %812 = memref.load %arg1[%c175] : memref<332xf32, #tpu.memory_space<smem>>
    %813 = vector.broadcast %812 : f32 to vector<8x128xf32>
    %814 = arith.mulf %813, %640 : vector<8x128xf32>
    %815 = arith.addf %811, %814 : vector<8x128xf32>
    %c28_57 = arith.constant 28 : index
    %816 = memref.load %arg2[%c28_57] : memref<53xf32, #tpu.memory_space<smem>>
    %817 = vector.broadcast %816 : f32 to vector<8x128xf32>
    %818 = arith.addf %815, %817 : vector<8x128xf32>
    %cst_58 = arith.constant 0.000000e+00 : f32
    %819 = vector.broadcast %cst_58 : f32 to vector<8x128xf32>
    %820 = arith.maximumf %818, %819 : vector<8x128xf32>
    %c176 = arith.constant 176 : index
    %821 = memref.load %arg1[%c176] : memref<332xf32, #tpu.memory_space<smem>>
    %822 = vector.broadcast %821 : f32 to vector<8x128xf32>
    %823 = arith.mulf %822, %388 : vector<8x128xf32>
    %c177 = arith.constant 177 : index
    %824 = memref.load %arg1[%c177] : memref<332xf32, #tpu.memory_space<smem>>
    %825 = vector.broadcast %824 : f32 to vector<8x128xf32>
    %826 = arith.mulf %825, %424 : vector<8x128xf32>
    %827 = arith.addf %823, %826 : vector<8x128xf32>
    %c178 = arith.constant 178 : index
    %828 = memref.load %arg1[%c178] : memref<332xf32, #tpu.memory_space<smem>>
    %829 = vector.broadcast %828 : f32 to vector<8x128xf32>
    %830 = arith.mulf %829, %460 : vector<8x128xf32>
    %831 = arith.addf %827, %830 : vector<8x128xf32>
    %c179 = arith.constant 179 : index
    %832 = memref.load %arg1[%c179] : memref<332xf32, #tpu.memory_space<smem>>
    %833 = vector.broadcast %832 : f32 to vector<8x128xf32>
    %834 = arith.mulf %833, %496 : vector<8x128xf32>
    %835 = arith.addf %831, %834 : vector<8x128xf32>
    %c180 = arith.constant 180 : index
    %836 = memref.load %arg1[%c180] : memref<332xf32, #tpu.memory_space<smem>>
    %837 = vector.broadcast %836 : f32 to vector<8x128xf32>
    %838 = arith.mulf %837, %532 : vector<8x128xf32>
    %839 = arith.addf %835, %838 : vector<8x128xf32>
    %c181 = arith.constant 181 : index
    %840 = memref.load %arg1[%c181] : memref<332xf32, #tpu.memory_space<smem>>
    %841 = vector.broadcast %840 : f32 to vector<8x128xf32>
    %842 = arith.mulf %841, %568 : vector<8x128xf32>
    %843 = arith.addf %839, %842 : vector<8x128xf32>
    %c182 = arith.constant 182 : index
    %844 = memref.load %arg1[%c182] : memref<332xf32, #tpu.memory_space<smem>>
    %845 = vector.broadcast %844 : f32 to vector<8x128xf32>
    %846 = arith.mulf %845, %604 : vector<8x128xf32>
    %847 = arith.addf %843, %846 : vector<8x128xf32>
    %c183 = arith.constant 183 : index
    %848 = memref.load %arg1[%c183] : memref<332xf32, #tpu.memory_space<smem>>
    %849 = vector.broadcast %848 : f32 to vector<8x128xf32>
    %850 = arith.mulf %849, %640 : vector<8x128xf32>
    %851 = arith.addf %847, %850 : vector<8x128xf32>
    %c29_59 = arith.constant 29 : index
    %852 = memref.load %arg2[%c29_59] : memref<53xf32, #tpu.memory_space<smem>>
    %853 = vector.broadcast %852 : f32 to vector<8x128xf32>
    %854 = arith.addf %851, %853 : vector<8x128xf32>
    %cst_60 = arith.constant 0.000000e+00 : f32
    %855 = vector.broadcast %cst_60 : f32 to vector<8x128xf32>
    %856 = arith.maximumf %854, %855 : vector<8x128xf32>
    %c184 = arith.constant 184 : index
    %857 = memref.load %arg1[%c184] : memref<332xf32, #tpu.memory_space<smem>>
    %858 = vector.broadcast %857 : f32 to vector<8x128xf32>
    %859 = arith.mulf %858, %388 : vector<8x128xf32>
    %c185 = arith.constant 185 : index
    %860 = memref.load %arg1[%c185] : memref<332xf32, #tpu.memory_space<smem>>
    %861 = vector.broadcast %860 : f32 to vector<8x128xf32>
    %862 = arith.mulf %861, %424 : vector<8x128xf32>
    %863 = arith.addf %859, %862 : vector<8x128xf32>
    %c186 = arith.constant 186 : index
    %864 = memref.load %arg1[%c186] : memref<332xf32, #tpu.memory_space<smem>>
    %865 = vector.broadcast %864 : f32 to vector<8x128xf32>
    %866 = arith.mulf %865, %460 : vector<8x128xf32>
    %867 = arith.addf %863, %866 : vector<8x128xf32>
    %c187 = arith.constant 187 : index
    %868 = memref.load %arg1[%c187] : memref<332xf32, #tpu.memory_space<smem>>
    %869 = vector.broadcast %868 : f32 to vector<8x128xf32>
    %870 = arith.mulf %869, %496 : vector<8x128xf32>
    %871 = arith.addf %867, %870 : vector<8x128xf32>
    %c188 = arith.constant 188 : index
    %872 = memref.load %arg1[%c188] : memref<332xf32, #tpu.memory_space<smem>>
    %873 = vector.broadcast %872 : f32 to vector<8x128xf32>
    %874 = arith.mulf %873, %532 : vector<8x128xf32>
    %875 = arith.addf %871, %874 : vector<8x128xf32>
    %c189 = arith.constant 189 : index
    %876 = memref.load %arg1[%c189] : memref<332xf32, #tpu.memory_space<smem>>
    %877 = vector.broadcast %876 : f32 to vector<8x128xf32>
    %878 = arith.mulf %877, %568 : vector<8x128xf32>
    %879 = arith.addf %875, %878 : vector<8x128xf32>
    %c190 = arith.constant 190 : index
    %880 = memref.load %arg1[%c190] : memref<332xf32, #tpu.memory_space<smem>>
    %881 = vector.broadcast %880 : f32 to vector<8x128xf32>
    %882 = arith.mulf %881, %604 : vector<8x128xf32>
    %883 = arith.addf %879, %882 : vector<8x128xf32>
    %c191 = arith.constant 191 : index
    %884 = memref.load %arg1[%c191] : memref<332xf32, #tpu.memory_space<smem>>
    %885 = vector.broadcast %884 : f32 to vector<8x128xf32>
    %886 = arith.mulf %885, %640 : vector<8x128xf32>
    %887 = arith.addf %883, %886 : vector<8x128xf32>
    %c30_61 = arith.constant 30 : index
    %888 = memref.load %arg2[%c30_61] : memref<53xf32, #tpu.memory_space<smem>>
    %889 = vector.broadcast %888 : f32 to vector<8x128xf32>
    %890 = arith.addf %887, %889 : vector<8x128xf32>
    %cst_62 = arith.constant 0.000000e+00 : f32
    %891 = vector.broadcast %cst_62 : f32 to vector<8x128xf32>
    %892 = arith.maximumf %890, %891 : vector<8x128xf32>
    %c192 = arith.constant 192 : index
    %893 = memref.load %arg1[%c192] : memref<332xf32, #tpu.memory_space<smem>>
    %894 = vector.broadcast %893 : f32 to vector<8x128xf32>
    %895 = arith.mulf %894, %388 : vector<8x128xf32>
    %c193 = arith.constant 193 : index
    %896 = memref.load %arg1[%c193] : memref<332xf32, #tpu.memory_space<smem>>
    %897 = vector.broadcast %896 : f32 to vector<8x128xf32>
    %898 = arith.mulf %897, %424 : vector<8x128xf32>
    %899 = arith.addf %895, %898 : vector<8x128xf32>
    %c194 = arith.constant 194 : index
    %900 = memref.load %arg1[%c194] : memref<332xf32, #tpu.memory_space<smem>>
    %901 = vector.broadcast %900 : f32 to vector<8x128xf32>
    %902 = arith.mulf %901, %460 : vector<8x128xf32>
    %903 = arith.addf %899, %902 : vector<8x128xf32>
    %c195 = arith.constant 195 : index
    %904 = memref.load %arg1[%c195] : memref<332xf32, #tpu.memory_space<smem>>
    %905 = vector.broadcast %904 : f32 to vector<8x128xf32>
    %906 = arith.mulf %905, %496 : vector<8x128xf32>
    %907 = arith.addf %903, %906 : vector<8x128xf32>
    %c196 = arith.constant 196 : index
    %908 = memref.load %arg1[%c196] : memref<332xf32, #tpu.memory_space<smem>>
    %909 = vector.broadcast %908 : f32 to vector<8x128xf32>
    %910 = arith.mulf %909, %532 : vector<8x128xf32>
    %911 = arith.addf %907, %910 : vector<8x128xf32>
    %c197 = arith.constant 197 : index
    %912 = memref.load %arg1[%c197] : memref<332xf32, #tpu.memory_space<smem>>
    %913 = vector.broadcast %912 : f32 to vector<8x128xf32>
    %914 = arith.mulf %913, %568 : vector<8x128xf32>
    %915 = arith.addf %911, %914 : vector<8x128xf32>
    %c198 = arith.constant 198 : index
    %916 = memref.load %arg1[%c198] : memref<332xf32, #tpu.memory_space<smem>>
    %917 = vector.broadcast %916 : f32 to vector<8x128xf32>
    %918 = arith.mulf %917, %604 : vector<8x128xf32>
    %919 = arith.addf %915, %918 : vector<8x128xf32>
    %c199 = arith.constant 199 : index
    %920 = memref.load %arg1[%c199] : memref<332xf32, #tpu.memory_space<smem>>
    %921 = vector.broadcast %920 : f32 to vector<8x128xf32>
    %922 = arith.mulf %921, %640 : vector<8x128xf32>
    %923 = arith.addf %919, %922 : vector<8x128xf32>
    %c31_63 = arith.constant 31 : index
    %924 = memref.load %arg2[%c31_63] : memref<53xf32, #tpu.memory_space<smem>>
    %925 = vector.broadcast %924 : f32 to vector<8x128xf32>
    %926 = arith.addf %923, %925 : vector<8x128xf32>
    %cst_64 = arith.constant 0.000000e+00 : f32
    %927 = vector.broadcast %cst_64 : f32 to vector<8x128xf32>
    %928 = arith.maximumf %926, %927 : vector<8x128xf32>
    %c200 = arith.constant 200 : index
    %929 = memref.load %arg1[%c200] : memref<332xf32, #tpu.memory_space<smem>>
    %930 = vector.broadcast %929 : f32 to vector<8x128xf32>
    %931 = arith.mulf %930, %676 : vector<8x128xf32>
    %c201 = arith.constant 201 : index
    %932 = memref.load %arg1[%c201] : memref<332xf32, #tpu.memory_space<smem>>
    %933 = vector.broadcast %932 : f32 to vector<8x128xf32>
    %934 = arith.mulf %933, %712 : vector<8x128xf32>
    %935 = arith.addf %931, %934 : vector<8x128xf32>
    %c202 = arith.constant 202 : index
    %936 = memref.load %arg1[%c202] : memref<332xf32, #tpu.memory_space<smem>>
    %937 = vector.broadcast %936 : f32 to vector<8x128xf32>
    %938 = arith.mulf %937, %748 : vector<8x128xf32>
    %939 = arith.addf %935, %938 : vector<8x128xf32>
    %c203 = arith.constant 203 : index
    %940 = memref.load %arg1[%c203] : memref<332xf32, #tpu.memory_space<smem>>
    %941 = vector.broadcast %940 : f32 to vector<8x128xf32>
    %942 = arith.mulf %941, %784 : vector<8x128xf32>
    %943 = arith.addf %939, %942 : vector<8x128xf32>
    %c204 = arith.constant 204 : index
    %944 = memref.load %arg1[%c204] : memref<332xf32, #tpu.memory_space<smem>>
    %945 = vector.broadcast %944 : f32 to vector<8x128xf32>
    %946 = arith.mulf %945, %820 : vector<8x128xf32>
    %947 = arith.addf %943, %946 : vector<8x128xf32>
    %c205 = arith.constant 205 : index
    %948 = memref.load %arg1[%c205] : memref<332xf32, #tpu.memory_space<smem>>
    %949 = vector.broadcast %948 : f32 to vector<8x128xf32>
    %950 = arith.mulf %949, %856 : vector<8x128xf32>
    %951 = arith.addf %947, %950 : vector<8x128xf32>
    %c206 = arith.constant 206 : index
    %952 = memref.load %arg1[%c206] : memref<332xf32, #tpu.memory_space<smem>>
    %953 = vector.broadcast %952 : f32 to vector<8x128xf32>
    %954 = arith.mulf %953, %892 : vector<8x128xf32>
    %955 = arith.addf %951, %954 : vector<8x128xf32>
    %c207 = arith.constant 207 : index
    %956 = memref.load %arg1[%c207] : memref<332xf32, #tpu.memory_space<smem>>
    %957 = vector.broadcast %956 : f32 to vector<8x128xf32>
    %958 = arith.mulf %957, %928 : vector<8x128xf32>
    %959 = arith.addf %955, %958 : vector<8x128xf32>
    %c32_65 = arith.constant 32 : index
    %960 = memref.load %arg2[%c32_65] : memref<53xf32, #tpu.memory_space<smem>>
    %961 = vector.broadcast %960 : f32 to vector<8x128xf32>
    %962 = arith.addf %959, %961 : vector<8x128xf32>
    %cst_66 = arith.constant 0.000000e+00 : f32
    %963 = vector.broadcast %cst_66 : f32 to vector<8x128xf32>
    %964 = arith.maximumf %962, %963 : vector<8x128xf32>
    %c208 = arith.constant 208 : index
    %965 = memref.load %arg1[%c208] : memref<332xf32, #tpu.memory_space<smem>>
    %966 = vector.broadcast %965 : f32 to vector<8x128xf32>
    %967 = arith.mulf %966, %676 : vector<8x128xf32>
    %c209 = arith.constant 209 : index
    %968 = memref.load %arg1[%c209] : memref<332xf32, #tpu.memory_space<smem>>
    %969 = vector.broadcast %968 : f32 to vector<8x128xf32>
    %970 = arith.mulf %969, %712 : vector<8x128xf32>
    %971 = arith.addf %967, %970 : vector<8x128xf32>
    %c210 = arith.constant 210 : index
    %972 = memref.load %arg1[%c210] : memref<332xf32, #tpu.memory_space<smem>>
    %973 = vector.broadcast %972 : f32 to vector<8x128xf32>
    %974 = arith.mulf %973, %748 : vector<8x128xf32>
    %975 = arith.addf %971, %974 : vector<8x128xf32>
    %c211 = arith.constant 211 : index
    %976 = memref.load %arg1[%c211] : memref<332xf32, #tpu.memory_space<smem>>
    %977 = vector.broadcast %976 : f32 to vector<8x128xf32>
    %978 = arith.mulf %977, %784 : vector<8x128xf32>
    %979 = arith.addf %975, %978 : vector<8x128xf32>
    %c212 = arith.constant 212 : index
    %980 = memref.load %arg1[%c212] : memref<332xf32, #tpu.memory_space<smem>>
    %981 = vector.broadcast %980 : f32 to vector<8x128xf32>
    %982 = arith.mulf %981, %820 : vector<8x128xf32>
    %983 = arith.addf %979, %982 : vector<8x128xf32>
    %c213 = arith.constant 213 : index
    %984 = memref.load %arg1[%c213] : memref<332xf32, #tpu.memory_space<smem>>
    %985 = vector.broadcast %984 : f32 to vector<8x128xf32>
    %986 = arith.mulf %985, %856 : vector<8x128xf32>
    %987 = arith.addf %983, %986 : vector<8x128xf32>
    %c214 = arith.constant 214 : index
    %988 = memref.load %arg1[%c214] : memref<332xf32, #tpu.memory_space<smem>>
    %989 = vector.broadcast %988 : f32 to vector<8x128xf32>
    %990 = arith.mulf %989, %892 : vector<8x128xf32>
    %991 = arith.addf %987, %990 : vector<8x128xf32>
    %c215 = arith.constant 215 : index
    %992 = memref.load %arg1[%c215] : memref<332xf32, #tpu.memory_space<smem>>
    %993 = vector.broadcast %992 : f32 to vector<8x128xf32>
    %994 = arith.mulf %993, %928 : vector<8x128xf32>
    %995 = arith.addf %991, %994 : vector<8x128xf32>
    %c33_67 = arith.constant 33 : index
    %996 = memref.load %arg2[%c33_67] : memref<53xf32, #tpu.memory_space<smem>>
    %997 = vector.broadcast %996 : f32 to vector<8x128xf32>
    %998 = arith.addf %995, %997 : vector<8x128xf32>
    %cst_68 = arith.constant 0.000000e+00 : f32
    %999 = vector.broadcast %cst_68 : f32 to vector<8x128xf32>
    %1000 = arith.maximumf %998, %999 : vector<8x128xf32>
    %c216 = arith.constant 216 : index
    %1001 = memref.load %arg1[%c216] : memref<332xf32, #tpu.memory_space<smem>>
    %1002 = vector.broadcast %1001 : f32 to vector<8x128xf32>
    %1003 = arith.mulf %1002, %676 : vector<8x128xf32>
    %c217 = arith.constant 217 : index
    %1004 = memref.load %arg1[%c217] : memref<332xf32, #tpu.memory_space<smem>>
    %1005 = vector.broadcast %1004 : f32 to vector<8x128xf32>
    %1006 = arith.mulf %1005, %712 : vector<8x128xf32>
    %1007 = arith.addf %1003, %1006 : vector<8x128xf32>
    %c218 = arith.constant 218 : index
    %1008 = memref.load %arg1[%c218] : memref<332xf32, #tpu.memory_space<smem>>
    %1009 = vector.broadcast %1008 : f32 to vector<8x128xf32>
    %1010 = arith.mulf %1009, %748 : vector<8x128xf32>
    %1011 = arith.addf %1007, %1010 : vector<8x128xf32>
    %c219 = arith.constant 219 : index
    %1012 = memref.load %arg1[%c219] : memref<332xf32, #tpu.memory_space<smem>>
    %1013 = vector.broadcast %1012 : f32 to vector<8x128xf32>
    %1014 = arith.mulf %1013, %784 : vector<8x128xf32>
    %1015 = arith.addf %1011, %1014 : vector<8x128xf32>
    %c220 = arith.constant 220 : index
    %1016 = memref.load %arg1[%c220] : memref<332xf32, #tpu.memory_space<smem>>
    %1017 = vector.broadcast %1016 : f32 to vector<8x128xf32>
    %1018 = arith.mulf %1017, %820 : vector<8x128xf32>
    %1019 = arith.addf %1015, %1018 : vector<8x128xf32>
    %c221 = arith.constant 221 : index
    %1020 = memref.load %arg1[%c221] : memref<332xf32, #tpu.memory_space<smem>>
    %1021 = vector.broadcast %1020 : f32 to vector<8x128xf32>
    %1022 = arith.mulf %1021, %856 : vector<8x128xf32>
    %1023 = arith.addf %1019, %1022 : vector<8x128xf32>
    %c222 = arith.constant 222 : index
    %1024 = memref.load %arg1[%c222] : memref<332xf32, #tpu.memory_space<smem>>
    %1025 = vector.broadcast %1024 : f32 to vector<8x128xf32>
    %1026 = arith.mulf %1025, %892 : vector<8x128xf32>
    %1027 = arith.addf %1023, %1026 : vector<8x128xf32>
    %c223 = arith.constant 223 : index
    %1028 = memref.load %arg1[%c223] : memref<332xf32, #tpu.memory_space<smem>>
    %1029 = vector.broadcast %1028 : f32 to vector<8x128xf32>
    %1030 = arith.mulf %1029, %928 : vector<8x128xf32>
    %1031 = arith.addf %1027, %1030 : vector<8x128xf32>
    %c34_69 = arith.constant 34 : index
    %1032 = memref.load %arg2[%c34_69] : memref<53xf32, #tpu.memory_space<smem>>
    %1033 = vector.broadcast %1032 : f32 to vector<8x128xf32>
    %1034 = arith.addf %1031, %1033 : vector<8x128xf32>
    %cst_70 = arith.constant 0.000000e+00 : f32
    %1035 = vector.broadcast %cst_70 : f32 to vector<8x128xf32>
    %1036 = arith.maximumf %1034, %1035 : vector<8x128xf32>
    %c224 = arith.constant 224 : index
    %1037 = memref.load %arg1[%c224] : memref<332xf32, #tpu.memory_space<smem>>
    %1038 = vector.broadcast %1037 : f32 to vector<8x128xf32>
    %1039 = arith.mulf %1038, %676 : vector<8x128xf32>
    %c225 = arith.constant 225 : index
    %1040 = memref.load %arg1[%c225] : memref<332xf32, #tpu.memory_space<smem>>
    %1041 = vector.broadcast %1040 : f32 to vector<8x128xf32>
    %1042 = arith.mulf %1041, %712 : vector<8x128xf32>
    %1043 = arith.addf %1039, %1042 : vector<8x128xf32>
    %c226 = arith.constant 226 : index
    %1044 = memref.load %arg1[%c226] : memref<332xf32, #tpu.memory_space<smem>>
    %1045 = vector.broadcast %1044 : f32 to vector<8x128xf32>
    %1046 = arith.mulf %1045, %748 : vector<8x128xf32>
    %1047 = arith.addf %1043, %1046 : vector<8x128xf32>
    %c227 = arith.constant 227 : index
    %1048 = memref.load %arg1[%c227] : memref<332xf32, #tpu.memory_space<smem>>
    %1049 = vector.broadcast %1048 : f32 to vector<8x128xf32>
    %1050 = arith.mulf %1049, %784 : vector<8x128xf32>
    %1051 = arith.addf %1047, %1050 : vector<8x128xf32>
    %c228 = arith.constant 228 : index
    %1052 = memref.load %arg1[%c228] : memref<332xf32, #tpu.memory_space<smem>>
    %1053 = vector.broadcast %1052 : f32 to vector<8x128xf32>
    %1054 = arith.mulf %1053, %820 : vector<8x128xf32>
    %1055 = arith.addf %1051, %1054 : vector<8x128xf32>
    %c229 = arith.constant 229 : index
    %1056 = memref.load %arg1[%c229] : memref<332xf32, #tpu.memory_space<smem>>
    %1057 = vector.broadcast %1056 : f32 to vector<8x128xf32>
    %1058 = arith.mulf %1057, %856 : vector<8x128xf32>
    %1059 = arith.addf %1055, %1058 : vector<8x128xf32>
    %c230 = arith.constant 230 : index
    %1060 = memref.load %arg1[%c230] : memref<332xf32, #tpu.memory_space<smem>>
    %1061 = vector.broadcast %1060 : f32 to vector<8x128xf32>
    %1062 = arith.mulf %1061, %892 : vector<8x128xf32>
    %1063 = arith.addf %1059, %1062 : vector<8x128xf32>
    %c231 = arith.constant 231 : index
    %1064 = memref.load %arg1[%c231] : memref<332xf32, #tpu.memory_space<smem>>
    %1065 = vector.broadcast %1064 : f32 to vector<8x128xf32>
    %1066 = arith.mulf %1065, %928 : vector<8x128xf32>
    %1067 = arith.addf %1063, %1066 : vector<8x128xf32>
    %c35_71 = arith.constant 35 : index
    %1068 = memref.load %arg2[%c35_71] : memref<53xf32, #tpu.memory_space<smem>>
    %1069 = vector.broadcast %1068 : f32 to vector<8x128xf32>
    %1070 = arith.addf %1067, %1069 : vector<8x128xf32>
    %cst_72 = arith.constant 0.000000e+00 : f32
    %1071 = vector.broadcast %cst_72 : f32 to vector<8x128xf32>
    %1072 = arith.maximumf %1070, %1071 : vector<8x128xf32>
    %c232 = arith.constant 232 : index
    %1073 = memref.load %arg1[%c232] : memref<332xf32, #tpu.memory_space<smem>>
    %1074 = vector.broadcast %1073 : f32 to vector<8x128xf32>
    %1075 = arith.mulf %1074, %676 : vector<8x128xf32>
    %c233 = arith.constant 233 : index
    %1076 = memref.load %arg1[%c233] : memref<332xf32, #tpu.memory_space<smem>>
    %1077 = vector.broadcast %1076 : f32 to vector<8x128xf32>
    %1078 = arith.mulf %1077, %712 : vector<8x128xf32>
    %1079 = arith.addf %1075, %1078 : vector<8x128xf32>
    %c234 = arith.constant 234 : index
    %1080 = memref.load %arg1[%c234] : memref<332xf32, #tpu.memory_space<smem>>
    %1081 = vector.broadcast %1080 : f32 to vector<8x128xf32>
    %1082 = arith.mulf %1081, %748 : vector<8x128xf32>
    %1083 = arith.addf %1079, %1082 : vector<8x128xf32>
    %c235 = arith.constant 235 : index
    %1084 = memref.load %arg1[%c235] : memref<332xf32, #tpu.memory_space<smem>>
    %1085 = vector.broadcast %1084 : f32 to vector<8x128xf32>
    %1086 = arith.mulf %1085, %784 : vector<8x128xf32>
    %1087 = arith.addf %1083, %1086 : vector<8x128xf32>
    %c236 = arith.constant 236 : index
    %1088 = memref.load %arg1[%c236] : memref<332xf32, #tpu.memory_space<smem>>
    %1089 = vector.broadcast %1088 : f32 to vector<8x128xf32>
    %1090 = arith.mulf %1089, %820 : vector<8x128xf32>
    %1091 = arith.addf %1087, %1090 : vector<8x128xf32>
    %c237 = arith.constant 237 : index
    %1092 = memref.load %arg1[%c237] : memref<332xf32, #tpu.memory_space<smem>>
    %1093 = vector.broadcast %1092 : f32 to vector<8x128xf32>
    %1094 = arith.mulf %1093, %856 : vector<8x128xf32>
    %1095 = arith.addf %1091, %1094 : vector<8x128xf32>
    %c238 = arith.constant 238 : index
    %1096 = memref.load %arg1[%c238] : memref<332xf32, #tpu.memory_space<smem>>
    %1097 = vector.broadcast %1096 : f32 to vector<8x128xf32>
    %1098 = arith.mulf %1097, %892 : vector<8x128xf32>
    %1099 = arith.addf %1095, %1098 : vector<8x128xf32>
    %c239 = arith.constant 239 : index
    %1100 = memref.load %arg1[%c239] : memref<332xf32, #tpu.memory_space<smem>>
    %1101 = vector.broadcast %1100 : f32 to vector<8x128xf32>
    %1102 = arith.mulf %1101, %928 : vector<8x128xf32>
    %1103 = arith.addf %1099, %1102 : vector<8x128xf32>
    %c36_73 = arith.constant 36 : index
    %1104 = memref.load %arg2[%c36_73] : memref<53xf32, #tpu.memory_space<smem>>
    %1105 = vector.broadcast %1104 : f32 to vector<8x128xf32>
    %1106 = arith.addf %1103, %1105 : vector<8x128xf32>
    %cst_74 = arith.constant 0.000000e+00 : f32
    %1107 = vector.broadcast %cst_74 : f32 to vector<8x128xf32>
    %1108 = arith.maximumf %1106, %1107 : vector<8x128xf32>
    %c240 = arith.constant 240 : index
    %1109 = memref.load %arg1[%c240] : memref<332xf32, #tpu.memory_space<smem>>
    %1110 = vector.broadcast %1109 : f32 to vector<8x128xf32>
    %1111 = arith.mulf %1110, %676 : vector<8x128xf32>
    %c241 = arith.constant 241 : index
    %1112 = memref.load %arg1[%c241] : memref<332xf32, #tpu.memory_space<smem>>
    %1113 = vector.broadcast %1112 : f32 to vector<8x128xf32>
    %1114 = arith.mulf %1113, %712 : vector<8x128xf32>
    %1115 = arith.addf %1111, %1114 : vector<8x128xf32>
    %c242 = arith.constant 242 : index
    %1116 = memref.load %arg1[%c242] : memref<332xf32, #tpu.memory_space<smem>>
    %1117 = vector.broadcast %1116 : f32 to vector<8x128xf32>
    %1118 = arith.mulf %1117, %748 : vector<8x128xf32>
    %1119 = arith.addf %1115, %1118 : vector<8x128xf32>
    %c243 = arith.constant 243 : index
    %1120 = memref.load %arg1[%c243] : memref<332xf32, #tpu.memory_space<smem>>
    %1121 = vector.broadcast %1120 : f32 to vector<8x128xf32>
    %1122 = arith.mulf %1121, %784 : vector<8x128xf32>
    %1123 = arith.addf %1119, %1122 : vector<8x128xf32>
    %c244 = arith.constant 244 : index
    %1124 = memref.load %arg1[%c244] : memref<332xf32, #tpu.memory_space<smem>>
    %1125 = vector.broadcast %1124 : f32 to vector<8x128xf32>
    %1126 = arith.mulf %1125, %820 : vector<8x128xf32>
    %1127 = arith.addf %1123, %1126 : vector<8x128xf32>
    %c245 = arith.constant 245 : index
    %1128 = memref.load %arg1[%c245] : memref<332xf32, #tpu.memory_space<smem>>
    %1129 = vector.broadcast %1128 : f32 to vector<8x128xf32>
    %1130 = arith.mulf %1129, %856 : vector<8x128xf32>
    %1131 = arith.addf %1127, %1130 : vector<8x128xf32>
    %c246 = arith.constant 246 : index
    %1132 = memref.load %arg1[%c246] : memref<332xf32, #tpu.memory_space<smem>>
    %1133 = vector.broadcast %1132 : f32 to vector<8x128xf32>
    %1134 = arith.mulf %1133, %892 : vector<8x128xf32>
    %1135 = arith.addf %1131, %1134 : vector<8x128xf32>
    %c247 = arith.constant 247 : index
    %1136 = memref.load %arg1[%c247] : memref<332xf32, #tpu.memory_space<smem>>
    %1137 = vector.broadcast %1136 : f32 to vector<8x128xf32>
    %1138 = arith.mulf %1137, %928 : vector<8x128xf32>
    %1139 = arith.addf %1135, %1138 : vector<8x128xf32>
    %c37_75 = arith.constant 37 : index
    %1140 = memref.load %arg2[%c37_75] : memref<53xf32, #tpu.memory_space<smem>>
    %1141 = vector.broadcast %1140 : f32 to vector<8x128xf32>
    %1142 = arith.addf %1139, %1141 : vector<8x128xf32>
    %cst_76 = arith.constant 0.000000e+00 : f32
    %1143 = vector.broadcast %cst_76 : f32 to vector<8x128xf32>
    %1144 = arith.maximumf %1142, %1143 : vector<8x128xf32>
    %c248 = arith.constant 248 : index
    %1145 = memref.load %arg1[%c248] : memref<332xf32, #tpu.memory_space<smem>>
    %1146 = vector.broadcast %1145 : f32 to vector<8x128xf32>
    %1147 = arith.mulf %1146, %676 : vector<8x128xf32>
    %c249 = arith.constant 249 : index
    %1148 = memref.load %arg1[%c249] : memref<332xf32, #tpu.memory_space<smem>>
    %1149 = vector.broadcast %1148 : f32 to vector<8x128xf32>
    %1150 = arith.mulf %1149, %712 : vector<8x128xf32>
    %1151 = arith.addf %1147, %1150 : vector<8x128xf32>
    %c250 = arith.constant 250 : index
    %1152 = memref.load %arg1[%c250] : memref<332xf32, #tpu.memory_space<smem>>
    %1153 = vector.broadcast %1152 : f32 to vector<8x128xf32>
    %1154 = arith.mulf %1153, %748 : vector<8x128xf32>
    %1155 = arith.addf %1151, %1154 : vector<8x128xf32>
    %c251 = arith.constant 251 : index
    %1156 = memref.load %arg1[%c251] : memref<332xf32, #tpu.memory_space<smem>>
    %1157 = vector.broadcast %1156 : f32 to vector<8x128xf32>
    %1158 = arith.mulf %1157, %784 : vector<8x128xf32>
    %1159 = arith.addf %1155, %1158 : vector<8x128xf32>
    %c252 = arith.constant 252 : index
    %1160 = memref.load %arg1[%c252] : memref<332xf32, #tpu.memory_space<smem>>
    %1161 = vector.broadcast %1160 : f32 to vector<8x128xf32>
    %1162 = arith.mulf %1161, %820 : vector<8x128xf32>
    %1163 = arith.addf %1159, %1162 : vector<8x128xf32>
    %c253 = arith.constant 253 : index
    %1164 = memref.load %arg1[%c253] : memref<332xf32, #tpu.memory_space<smem>>
    %1165 = vector.broadcast %1164 : f32 to vector<8x128xf32>
    %1166 = arith.mulf %1165, %856 : vector<8x128xf32>
    %1167 = arith.addf %1163, %1166 : vector<8x128xf32>
    %c254 = arith.constant 254 : index
    %1168 = memref.load %arg1[%c254] : memref<332xf32, #tpu.memory_space<smem>>
    %1169 = vector.broadcast %1168 : f32 to vector<8x128xf32>
    %1170 = arith.mulf %1169, %892 : vector<8x128xf32>
    %1171 = arith.addf %1167, %1170 : vector<8x128xf32>
    %c255 = arith.constant 255 : index
    %1172 = memref.load %arg1[%c255] : memref<332xf32, #tpu.memory_space<smem>>
    %1173 = vector.broadcast %1172 : f32 to vector<8x128xf32>
    %1174 = arith.mulf %1173, %928 : vector<8x128xf32>
    %1175 = arith.addf %1171, %1174 : vector<8x128xf32>
    %c38_77 = arith.constant 38 : index
    %1176 = memref.load %arg2[%c38_77] : memref<53xf32, #tpu.memory_space<smem>>
    %1177 = vector.broadcast %1176 : f32 to vector<8x128xf32>
    %1178 = arith.addf %1175, %1177 : vector<8x128xf32>
    %cst_78 = arith.constant 0.000000e+00 : f32
    %1179 = vector.broadcast %cst_78 : f32 to vector<8x128xf32>
    %1180 = arith.maximumf %1178, %1179 : vector<8x128xf32>
    %c256 = arith.constant 256 : index
    %1181 = memref.load %arg1[%c256] : memref<332xf32, #tpu.memory_space<smem>>
    %1182 = vector.broadcast %1181 : f32 to vector<8x128xf32>
    %1183 = arith.mulf %1182, %676 : vector<8x128xf32>
    %c257 = arith.constant 257 : index
    %1184 = memref.load %arg1[%c257] : memref<332xf32, #tpu.memory_space<smem>>
    %1185 = vector.broadcast %1184 : f32 to vector<8x128xf32>
    %1186 = arith.mulf %1185, %712 : vector<8x128xf32>
    %1187 = arith.addf %1183, %1186 : vector<8x128xf32>
    %c258 = arith.constant 258 : index
    %1188 = memref.load %arg1[%c258] : memref<332xf32, #tpu.memory_space<smem>>
    %1189 = vector.broadcast %1188 : f32 to vector<8x128xf32>
    %1190 = arith.mulf %1189, %748 : vector<8x128xf32>
    %1191 = arith.addf %1187, %1190 : vector<8x128xf32>
    %c259 = arith.constant 259 : index
    %1192 = memref.load %arg1[%c259] : memref<332xf32, #tpu.memory_space<smem>>
    %1193 = vector.broadcast %1192 : f32 to vector<8x128xf32>
    %1194 = arith.mulf %1193, %784 : vector<8x128xf32>
    %1195 = arith.addf %1191, %1194 : vector<8x128xf32>
    %c260 = arith.constant 260 : index
    %1196 = memref.load %arg1[%c260] : memref<332xf32, #tpu.memory_space<smem>>
    %1197 = vector.broadcast %1196 : f32 to vector<8x128xf32>
    %1198 = arith.mulf %1197, %820 : vector<8x128xf32>
    %1199 = arith.addf %1195, %1198 : vector<8x128xf32>
    %c261 = arith.constant 261 : index
    %1200 = memref.load %arg1[%c261] : memref<332xf32, #tpu.memory_space<smem>>
    %1201 = vector.broadcast %1200 : f32 to vector<8x128xf32>
    %1202 = arith.mulf %1201, %856 : vector<8x128xf32>
    %1203 = arith.addf %1199, %1202 : vector<8x128xf32>
    %c262 = arith.constant 262 : index
    %1204 = memref.load %arg1[%c262] : memref<332xf32, #tpu.memory_space<smem>>
    %1205 = vector.broadcast %1204 : f32 to vector<8x128xf32>
    %1206 = arith.mulf %1205, %892 : vector<8x128xf32>
    %1207 = arith.addf %1203, %1206 : vector<8x128xf32>
    %c263 = arith.constant 263 : index
    %1208 = memref.load %arg1[%c263] : memref<332xf32, #tpu.memory_space<smem>>
    %1209 = vector.broadcast %1208 : f32 to vector<8x128xf32>
    %1210 = arith.mulf %1209, %928 : vector<8x128xf32>
    %1211 = arith.addf %1207, %1210 : vector<8x128xf32>
    %c39_79 = arith.constant 39 : index
    %1212 = memref.load %arg2[%c39_79] : memref<53xf32, #tpu.memory_space<smem>>
    %1213 = vector.broadcast %1212 : f32 to vector<8x128xf32>
    %1214 = arith.addf %1211, %1213 : vector<8x128xf32>
    %cst_80 = arith.constant 0.000000e+00 : f32
    %1215 = vector.broadcast %cst_80 : f32 to vector<8x128xf32>
    %1216 = arith.maximumf %1214, %1215 : vector<8x128xf32>
    %c264 = arith.constant 264 : index
    %1217 = memref.load %arg1[%c264] : memref<332xf32, #tpu.memory_space<smem>>
    %1218 = vector.broadcast %1217 : f32 to vector<8x128xf32>
    %1219 = arith.mulf %1218, %964 : vector<8x128xf32>
    %c265 = arith.constant 265 : index
    %1220 = memref.load %arg1[%c265] : memref<332xf32, #tpu.memory_space<smem>>
    %1221 = vector.broadcast %1220 : f32 to vector<8x128xf32>
    %1222 = arith.mulf %1221, %1000 : vector<8x128xf32>
    %1223 = arith.addf %1219, %1222 : vector<8x128xf32>
    %c266 = arith.constant 266 : index
    %1224 = memref.load %arg1[%c266] : memref<332xf32, #tpu.memory_space<smem>>
    %1225 = vector.broadcast %1224 : f32 to vector<8x128xf32>
    %1226 = arith.mulf %1225, %1036 : vector<8x128xf32>
    %1227 = arith.addf %1223, %1226 : vector<8x128xf32>
    %c267 = arith.constant 267 : index
    %1228 = memref.load %arg1[%c267] : memref<332xf32, #tpu.memory_space<smem>>
    %1229 = vector.broadcast %1228 : f32 to vector<8x128xf32>
    %1230 = arith.mulf %1229, %1072 : vector<8x128xf32>
    %1231 = arith.addf %1227, %1230 : vector<8x128xf32>
    %c268 = arith.constant 268 : index
    %1232 = memref.load %arg1[%c268] : memref<332xf32, #tpu.memory_space<smem>>
    %1233 = vector.broadcast %1232 : f32 to vector<8x128xf32>
    %1234 = arith.mulf %1233, %1108 : vector<8x128xf32>
    %1235 = arith.addf %1231, %1234 : vector<8x128xf32>
    %c269 = arith.constant 269 : index
    %1236 = memref.load %arg1[%c269] : memref<332xf32, #tpu.memory_space<smem>>
    %1237 = vector.broadcast %1236 : f32 to vector<8x128xf32>
    %1238 = arith.mulf %1237, %1144 : vector<8x128xf32>
    %1239 = arith.addf %1235, %1238 : vector<8x128xf32>
    %c270 = arith.constant 270 : index
    %1240 = memref.load %arg1[%c270] : memref<332xf32, #tpu.memory_space<smem>>
    %1241 = vector.broadcast %1240 : f32 to vector<8x128xf32>
    %1242 = arith.mulf %1241, %1180 : vector<8x128xf32>
    %1243 = arith.addf %1239, %1242 : vector<8x128xf32>
    %c271 = arith.constant 271 : index
    %1244 = memref.load %arg1[%c271] : memref<332xf32, #tpu.memory_space<smem>>
    %1245 = vector.broadcast %1244 : f32 to vector<8x128xf32>
    %1246 = arith.mulf %1245, %1216 : vector<8x128xf32>
    %1247 = arith.addf %1243, %1246 : vector<8x128xf32>
    %c40_81 = arith.constant 40 : index
    %1248 = memref.load %arg2[%c40_81] : memref<53xf32, #tpu.memory_space<smem>>
    %1249 = vector.broadcast %1248 : f32 to vector<8x128xf32>
    %1250 = arith.addf %1247, %1249 : vector<8x128xf32>
    %cst_82 = arith.constant 0.000000e+00 : f32
    %1251 = vector.broadcast %cst_82 : f32 to vector<8x128xf32>
    %1252 = arith.maximumf %1250, %1251 : vector<8x128xf32>
    %c272 = arith.constant 272 : index
    %1253 = memref.load %arg1[%c272] : memref<332xf32, #tpu.memory_space<smem>>
    %1254 = vector.broadcast %1253 : f32 to vector<8x128xf32>
    %1255 = arith.mulf %1254, %964 : vector<8x128xf32>
    %c273 = arith.constant 273 : index
    %1256 = memref.load %arg1[%c273] : memref<332xf32, #tpu.memory_space<smem>>
    %1257 = vector.broadcast %1256 : f32 to vector<8x128xf32>
    %1258 = arith.mulf %1257, %1000 : vector<8x128xf32>
    %1259 = arith.addf %1255, %1258 : vector<8x128xf32>
    %c274 = arith.constant 274 : index
    %1260 = memref.load %arg1[%c274] : memref<332xf32, #tpu.memory_space<smem>>
    %1261 = vector.broadcast %1260 : f32 to vector<8x128xf32>
    %1262 = arith.mulf %1261, %1036 : vector<8x128xf32>
    %1263 = arith.addf %1259, %1262 : vector<8x128xf32>
    %c275 = arith.constant 275 : index
    %1264 = memref.load %arg1[%c275] : memref<332xf32, #tpu.memory_space<smem>>
    %1265 = vector.broadcast %1264 : f32 to vector<8x128xf32>
    %1266 = arith.mulf %1265, %1072 : vector<8x128xf32>
    %1267 = arith.addf %1263, %1266 : vector<8x128xf32>
    %c276 = arith.constant 276 : index
    %1268 = memref.load %arg1[%c276] : memref<332xf32, #tpu.memory_space<smem>>
    %1269 = vector.broadcast %1268 : f32 to vector<8x128xf32>
    %1270 = arith.mulf %1269, %1108 : vector<8x128xf32>
    %1271 = arith.addf %1267, %1270 : vector<8x128xf32>
    %c277 = arith.constant 277 : index
    %1272 = memref.load %arg1[%c277] : memref<332xf32, #tpu.memory_space<smem>>
    %1273 = vector.broadcast %1272 : f32 to vector<8x128xf32>
    %1274 = arith.mulf %1273, %1144 : vector<8x128xf32>
    %1275 = arith.addf %1271, %1274 : vector<8x128xf32>
    %c278 = arith.constant 278 : index
    %1276 = memref.load %arg1[%c278] : memref<332xf32, #tpu.memory_space<smem>>
    %1277 = vector.broadcast %1276 : f32 to vector<8x128xf32>
    %1278 = arith.mulf %1277, %1180 : vector<8x128xf32>
    %1279 = arith.addf %1275, %1278 : vector<8x128xf32>
    %c279 = arith.constant 279 : index
    %1280 = memref.load %arg1[%c279] : memref<332xf32, #tpu.memory_space<smem>>
    %1281 = vector.broadcast %1280 : f32 to vector<8x128xf32>
    %1282 = arith.mulf %1281, %1216 : vector<8x128xf32>
    %1283 = arith.addf %1279, %1282 : vector<8x128xf32>
    %c41_83 = arith.constant 41 : index
    %1284 = memref.load %arg2[%c41_83] : memref<53xf32, #tpu.memory_space<smem>>
    %1285 = vector.broadcast %1284 : f32 to vector<8x128xf32>
    %1286 = arith.addf %1283, %1285 : vector<8x128xf32>
    %cst_84 = arith.constant 0.000000e+00 : f32
    %1287 = vector.broadcast %cst_84 : f32 to vector<8x128xf32>
    %1288 = arith.maximumf %1286, %1287 : vector<8x128xf32>
    %c280 = arith.constant 280 : index
    %1289 = memref.load %arg1[%c280] : memref<332xf32, #tpu.memory_space<smem>>
    %1290 = vector.broadcast %1289 : f32 to vector<8x128xf32>
    %1291 = arith.mulf %1290, %964 : vector<8x128xf32>
    %c281 = arith.constant 281 : index
    %1292 = memref.load %arg1[%c281] : memref<332xf32, #tpu.memory_space<smem>>
    %1293 = vector.broadcast %1292 : f32 to vector<8x128xf32>
    %1294 = arith.mulf %1293, %1000 : vector<8x128xf32>
    %1295 = arith.addf %1291, %1294 : vector<8x128xf32>
    %c282 = arith.constant 282 : index
    %1296 = memref.load %arg1[%c282] : memref<332xf32, #tpu.memory_space<smem>>
    %1297 = vector.broadcast %1296 : f32 to vector<8x128xf32>
    %1298 = arith.mulf %1297, %1036 : vector<8x128xf32>
    %1299 = arith.addf %1295, %1298 : vector<8x128xf32>
    %c283 = arith.constant 283 : index
    %1300 = memref.load %arg1[%c283] : memref<332xf32, #tpu.memory_space<smem>>
    %1301 = vector.broadcast %1300 : f32 to vector<8x128xf32>
    %1302 = arith.mulf %1301, %1072 : vector<8x128xf32>
    %1303 = arith.addf %1299, %1302 : vector<8x128xf32>
    %c284 = arith.constant 284 : index
    %1304 = memref.load %arg1[%c284] : memref<332xf32, #tpu.memory_space<smem>>
    %1305 = vector.broadcast %1304 : f32 to vector<8x128xf32>
    %1306 = arith.mulf %1305, %1108 : vector<8x128xf32>
    %1307 = arith.addf %1303, %1306 : vector<8x128xf32>
    %c285 = arith.constant 285 : index
    %1308 = memref.load %arg1[%c285] : memref<332xf32, #tpu.memory_space<smem>>
    %1309 = vector.broadcast %1308 : f32 to vector<8x128xf32>
    %1310 = arith.mulf %1309, %1144 : vector<8x128xf32>
    %1311 = arith.addf %1307, %1310 : vector<8x128xf32>
    %c286 = arith.constant 286 : index
    %1312 = memref.load %arg1[%c286] : memref<332xf32, #tpu.memory_space<smem>>
    %1313 = vector.broadcast %1312 : f32 to vector<8x128xf32>
    %1314 = arith.mulf %1313, %1180 : vector<8x128xf32>
    %1315 = arith.addf %1311, %1314 : vector<8x128xf32>
    %c287 = arith.constant 287 : index
    %1316 = memref.load %arg1[%c287] : memref<332xf32, #tpu.memory_space<smem>>
    %1317 = vector.broadcast %1316 : f32 to vector<8x128xf32>
    %1318 = arith.mulf %1317, %1216 : vector<8x128xf32>
    %1319 = arith.addf %1315, %1318 : vector<8x128xf32>
    %c42_85 = arith.constant 42 : index
    %1320 = memref.load %arg2[%c42_85] : memref<53xf32, #tpu.memory_space<smem>>
    %1321 = vector.broadcast %1320 : f32 to vector<8x128xf32>
    %1322 = arith.addf %1319, %1321 : vector<8x128xf32>
    %cst_86 = arith.constant 0.000000e+00 : f32
    %1323 = vector.broadcast %cst_86 : f32 to vector<8x128xf32>
    %1324 = arith.maximumf %1322, %1323 : vector<8x128xf32>
    %c288 = arith.constant 288 : index
    %1325 = memref.load %arg1[%c288] : memref<332xf32, #tpu.memory_space<smem>>
    %1326 = vector.broadcast %1325 : f32 to vector<8x128xf32>
    %1327 = arith.mulf %1326, %964 : vector<8x128xf32>
    %c289 = arith.constant 289 : index
    %1328 = memref.load %arg1[%c289] : memref<332xf32, #tpu.memory_space<smem>>
    %1329 = vector.broadcast %1328 : f32 to vector<8x128xf32>
    %1330 = arith.mulf %1329, %1000 : vector<8x128xf32>
    %1331 = arith.addf %1327, %1330 : vector<8x128xf32>
    %c290 = arith.constant 290 : index
    %1332 = memref.load %arg1[%c290] : memref<332xf32, #tpu.memory_space<smem>>
    %1333 = vector.broadcast %1332 : f32 to vector<8x128xf32>
    %1334 = arith.mulf %1333, %1036 : vector<8x128xf32>
    %1335 = arith.addf %1331, %1334 : vector<8x128xf32>
    %c291 = arith.constant 291 : index
    %1336 = memref.load %arg1[%c291] : memref<332xf32, #tpu.memory_space<smem>>
    %1337 = vector.broadcast %1336 : f32 to vector<8x128xf32>
    %1338 = arith.mulf %1337, %1072 : vector<8x128xf32>
    %1339 = arith.addf %1335, %1338 : vector<8x128xf32>
    %c292 = arith.constant 292 : index
    %1340 = memref.load %arg1[%c292] : memref<332xf32, #tpu.memory_space<smem>>
    %1341 = vector.broadcast %1340 : f32 to vector<8x128xf32>
    %1342 = arith.mulf %1341, %1108 : vector<8x128xf32>
    %1343 = arith.addf %1339, %1342 : vector<8x128xf32>
    %c293 = arith.constant 293 : index
    %1344 = memref.load %arg1[%c293] : memref<332xf32, #tpu.memory_space<smem>>
    %1345 = vector.broadcast %1344 : f32 to vector<8x128xf32>
    %1346 = arith.mulf %1345, %1144 : vector<8x128xf32>
    %1347 = arith.addf %1343, %1346 : vector<8x128xf32>
    %c294 = arith.constant 294 : index
    %1348 = memref.load %arg1[%c294] : memref<332xf32, #tpu.memory_space<smem>>
    %1349 = vector.broadcast %1348 : f32 to vector<8x128xf32>
    %1350 = arith.mulf %1349, %1180 : vector<8x128xf32>
    %1351 = arith.addf %1347, %1350 : vector<8x128xf32>
    %c295 = arith.constant 295 : index
    %1352 = memref.load %arg1[%c295] : memref<332xf32, #tpu.memory_space<smem>>
    %1353 = vector.broadcast %1352 : f32 to vector<8x128xf32>
    %1354 = arith.mulf %1353, %1216 : vector<8x128xf32>
    %1355 = arith.addf %1351, %1354 : vector<8x128xf32>
    %c43_87 = arith.constant 43 : index
    %1356 = memref.load %arg2[%c43_87] : memref<53xf32, #tpu.memory_space<smem>>
    %1357 = vector.broadcast %1356 : f32 to vector<8x128xf32>
    %1358 = arith.addf %1355, %1357 : vector<8x128xf32>
    %cst_88 = arith.constant 0.000000e+00 : f32
    %1359 = vector.broadcast %cst_88 : f32 to vector<8x128xf32>
    %1360 = arith.maximumf %1358, %1359 : vector<8x128xf32>
    %c296 = arith.constant 296 : index
    %1361 = memref.load %arg1[%c296] : memref<332xf32, #tpu.memory_space<smem>>
    %1362 = vector.broadcast %1361 : f32 to vector<8x128xf32>
    %1363 = arith.mulf %1362, %1252 : vector<8x128xf32>
    %c297 = arith.constant 297 : index
    %1364 = memref.load %arg1[%c297] : memref<332xf32, #tpu.memory_space<smem>>
    %1365 = vector.broadcast %1364 : f32 to vector<8x128xf32>
    %1366 = arith.mulf %1365, %1288 : vector<8x128xf32>
    %1367 = arith.addf %1363, %1366 : vector<8x128xf32>
    %c298 = arith.constant 298 : index
    %1368 = memref.load %arg1[%c298] : memref<332xf32, #tpu.memory_space<smem>>
    %1369 = vector.broadcast %1368 : f32 to vector<8x128xf32>
    %1370 = arith.mulf %1369, %1324 : vector<8x128xf32>
    %1371 = arith.addf %1367, %1370 : vector<8x128xf32>
    %c299 = arith.constant 299 : index
    %1372 = memref.load %arg1[%c299] : memref<332xf32, #tpu.memory_space<smem>>
    %1373 = vector.broadcast %1372 : f32 to vector<8x128xf32>
    %1374 = arith.mulf %1373, %1360 : vector<8x128xf32>
    %1375 = arith.addf %1371, %1374 : vector<8x128xf32>
    %c44_89 = arith.constant 44 : index
    %1376 = memref.load %arg2[%c44_89] : memref<53xf32, #tpu.memory_space<smem>>
    %1377 = vector.broadcast %1376 : f32 to vector<8x128xf32>
    %1378 = arith.addf %1375, %1377 : vector<8x128xf32>
    %cst_90 = arith.constant 0.000000e+00 : f32
    %1379 = vector.broadcast %cst_90 : f32 to vector<8x128xf32>
    %1380 = arith.maximumf %1378, %1379 : vector<8x128xf32>
    %c300 = arith.constant 300 : index
    %1381 = memref.load %arg1[%c300] : memref<332xf32, #tpu.memory_space<smem>>
    %1382 = vector.broadcast %1381 : f32 to vector<8x128xf32>
    %1383 = arith.mulf %1382, %1252 : vector<8x128xf32>
    %c301 = arith.constant 301 : index
    %1384 = memref.load %arg1[%c301] : memref<332xf32, #tpu.memory_space<smem>>
    %1385 = vector.broadcast %1384 : f32 to vector<8x128xf32>
    %1386 = arith.mulf %1385, %1288 : vector<8x128xf32>
    %1387 = arith.addf %1383, %1386 : vector<8x128xf32>
    %c302 = arith.constant 302 : index
    %1388 = memref.load %arg1[%c302] : memref<332xf32, #tpu.memory_space<smem>>
    %1389 = vector.broadcast %1388 : f32 to vector<8x128xf32>
    %1390 = arith.mulf %1389, %1324 : vector<8x128xf32>
    %1391 = arith.addf %1387, %1390 : vector<8x128xf32>
    %c303 = arith.constant 303 : index
    %1392 = memref.load %arg1[%c303] : memref<332xf32, #tpu.memory_space<smem>>
    %1393 = vector.broadcast %1392 : f32 to vector<8x128xf32>
    %1394 = arith.mulf %1393, %1360 : vector<8x128xf32>
    %1395 = arith.addf %1391, %1394 : vector<8x128xf32>
    %c45_91 = arith.constant 45 : index
    %1396 = memref.load %arg2[%c45_91] : memref<53xf32, #tpu.memory_space<smem>>
    %1397 = vector.broadcast %1396 : f32 to vector<8x128xf32>
    %1398 = arith.addf %1395, %1397 : vector<8x128xf32>
    %cst_92 = arith.constant 0.000000e+00 : f32
    %1399 = vector.broadcast %cst_92 : f32 to vector<8x128xf32>
    %1400 = arith.maximumf %1398, %1399 : vector<8x128xf32>
    %c304 = arith.constant 304 : index
    %1401 = memref.load %arg1[%c304] : memref<332xf32, #tpu.memory_space<smem>>
    %1402 = vector.broadcast %1401 : f32 to vector<8x128xf32>
    %1403 = arith.mulf %1402, %1252 : vector<8x128xf32>
    %c305 = arith.constant 305 : index
    %1404 = memref.load %arg1[%c305] : memref<332xf32, #tpu.memory_space<smem>>
    %1405 = vector.broadcast %1404 : f32 to vector<8x128xf32>
    %1406 = arith.mulf %1405, %1288 : vector<8x128xf32>
    %1407 = arith.addf %1403, %1406 : vector<8x128xf32>
    %c306 = arith.constant 306 : index
    %1408 = memref.load %arg1[%c306] : memref<332xf32, #tpu.memory_space<smem>>
    %1409 = vector.broadcast %1408 : f32 to vector<8x128xf32>
    %1410 = arith.mulf %1409, %1324 : vector<8x128xf32>
    %1411 = arith.addf %1407, %1410 : vector<8x128xf32>
    %c307 = arith.constant 307 : index
    %1412 = memref.load %arg1[%c307] : memref<332xf32, #tpu.memory_space<smem>>
    %1413 = vector.broadcast %1412 : f32 to vector<8x128xf32>
    %1414 = arith.mulf %1413, %1360 : vector<8x128xf32>
    %1415 = arith.addf %1411, %1414 : vector<8x128xf32>
    %c46_93 = arith.constant 46 : index
    %1416 = memref.load %arg2[%c46_93] : memref<53xf32, #tpu.memory_space<smem>>
    %1417 = vector.broadcast %1416 : f32 to vector<8x128xf32>
    %1418 = arith.addf %1415, %1417 : vector<8x128xf32>
    %cst_94 = arith.constant 0.000000e+00 : f32
    %1419 = vector.broadcast %cst_94 : f32 to vector<8x128xf32>
    %1420 = arith.maximumf %1418, %1419 : vector<8x128xf32>
    %c308 = arith.constant 308 : index
    %1421 = memref.load %arg1[%c308] : memref<332xf32, #tpu.memory_space<smem>>
    %1422 = vector.broadcast %1421 : f32 to vector<8x128xf32>
    %1423 = arith.mulf %1422, %1252 : vector<8x128xf32>
    %c309 = arith.constant 309 : index
    %1424 = memref.load %arg1[%c309] : memref<332xf32, #tpu.memory_space<smem>>
    %1425 = vector.broadcast %1424 : f32 to vector<8x128xf32>
    %1426 = arith.mulf %1425, %1288 : vector<8x128xf32>
    %1427 = arith.addf %1423, %1426 : vector<8x128xf32>
    %c310 = arith.constant 310 : index
    %1428 = memref.load %arg1[%c310] : memref<332xf32, #tpu.memory_space<smem>>
    %1429 = vector.broadcast %1428 : f32 to vector<8x128xf32>
    %1430 = arith.mulf %1429, %1324 : vector<8x128xf32>
    %1431 = arith.addf %1427, %1430 : vector<8x128xf32>
    %c311 = arith.constant 311 : index
    %1432 = memref.load %arg1[%c311] : memref<332xf32, #tpu.memory_space<smem>>
    %1433 = vector.broadcast %1432 : f32 to vector<8x128xf32>
    %1434 = arith.mulf %1433, %1360 : vector<8x128xf32>
    %1435 = arith.addf %1431, %1434 : vector<8x128xf32>
    %c47_95 = arith.constant 47 : index
    %1436 = memref.load %arg2[%c47_95] : memref<53xf32, #tpu.memory_space<smem>>
    %1437 = vector.broadcast %1436 : f32 to vector<8x128xf32>
    %1438 = arith.addf %1435, %1437 : vector<8x128xf32>
    %cst_96 = arith.constant 0.000000e+00 : f32
    %1439 = vector.broadcast %cst_96 : f32 to vector<8x128xf32>
    %1440 = arith.maximumf %1438, %1439 : vector<8x128xf32>
    %c312 = arith.constant 312 : index
    %1441 = memref.load %arg1[%c312] : memref<332xf32, #tpu.memory_space<smem>>
    %1442 = vector.broadcast %1441 : f32 to vector<8x128xf32>
    %1443 = arith.mulf %1442, %1380 : vector<8x128xf32>
    %c313 = arith.constant 313 : index
    %1444 = memref.load %arg1[%c313] : memref<332xf32, #tpu.memory_space<smem>>
    %1445 = vector.broadcast %1444 : f32 to vector<8x128xf32>
    %1446 = arith.mulf %1445, %1400 : vector<8x128xf32>
    %1447 = arith.addf %1443, %1446 : vector<8x128xf32>
    %c314 = arith.constant 314 : index
    %1448 = memref.load %arg1[%c314] : memref<332xf32, #tpu.memory_space<smem>>
    %1449 = vector.broadcast %1448 : f32 to vector<8x128xf32>
    %1450 = arith.mulf %1449, %1420 : vector<8x128xf32>
    %1451 = arith.addf %1447, %1450 : vector<8x128xf32>
    %c315 = arith.constant 315 : index
    %1452 = memref.load %arg1[%c315] : memref<332xf32, #tpu.memory_space<smem>>
    %1453 = vector.broadcast %1452 : f32 to vector<8x128xf32>
    %1454 = arith.mulf %1453, %1440 : vector<8x128xf32>
    %1455 = arith.addf %1451, %1454 : vector<8x128xf32>
    %c48_97 = arith.constant 48 : index
    %1456 = memref.load %arg2[%c48_97] : memref<53xf32, #tpu.memory_space<smem>>
    %1457 = vector.broadcast %1456 : f32 to vector<8x128xf32>
    %1458 = arith.addf %1455, %1457 : vector<8x128xf32>
    %cst_98 = arith.constant 0.000000e+00 : f32
    %1459 = vector.broadcast %cst_98 : f32 to vector<8x128xf32>
    %1460 = arith.maximumf %1458, %1459 : vector<8x128xf32>
    %c316 = arith.constant 316 : index
    %1461 = memref.load %arg1[%c316] : memref<332xf32, #tpu.memory_space<smem>>
    %1462 = vector.broadcast %1461 : f32 to vector<8x128xf32>
    %1463 = arith.mulf %1462, %1380 : vector<8x128xf32>
    %c317 = arith.constant 317 : index
    %1464 = memref.load %arg1[%c317] : memref<332xf32, #tpu.memory_space<smem>>
    %1465 = vector.broadcast %1464 : f32 to vector<8x128xf32>
    %1466 = arith.mulf %1465, %1400 : vector<8x128xf32>
    %1467 = arith.addf %1463, %1466 : vector<8x128xf32>
    %c318 = arith.constant 318 : index
    %1468 = memref.load %arg1[%c318] : memref<332xf32, #tpu.memory_space<smem>>
    %1469 = vector.broadcast %1468 : f32 to vector<8x128xf32>
    %1470 = arith.mulf %1469, %1420 : vector<8x128xf32>
    %1471 = arith.addf %1467, %1470 : vector<8x128xf32>
    %c319 = arith.constant 319 : index
    %1472 = memref.load %arg1[%c319] : memref<332xf32, #tpu.memory_space<smem>>
    %1473 = vector.broadcast %1472 : f32 to vector<8x128xf32>
    %1474 = arith.mulf %1473, %1440 : vector<8x128xf32>
    %1475 = arith.addf %1471, %1474 : vector<8x128xf32>
    %c49_99 = arith.constant 49 : index
    %1476 = memref.load %arg2[%c49_99] : memref<53xf32, #tpu.memory_space<smem>>
    %1477 = vector.broadcast %1476 : f32 to vector<8x128xf32>
    %1478 = arith.addf %1475, %1477 : vector<8x128xf32>
    %cst_100 = arith.constant 0.000000e+00 : f32
    %1479 = vector.broadcast %cst_100 : f32 to vector<8x128xf32>
    %1480 = arith.maximumf %1478, %1479 : vector<8x128xf32>
    %c320 = arith.constant 320 : index
    %1481 = memref.load %arg1[%c320] : memref<332xf32, #tpu.memory_space<smem>>
    %1482 = vector.broadcast %1481 : f32 to vector<8x128xf32>
    %1483 = arith.mulf %1482, %1380 : vector<8x128xf32>
    %c321 = arith.constant 321 : index
    %1484 = memref.load %arg1[%c321] : memref<332xf32, #tpu.memory_space<smem>>
    %1485 = vector.broadcast %1484 : f32 to vector<8x128xf32>
    %1486 = arith.mulf %1485, %1400 : vector<8x128xf32>
    %1487 = arith.addf %1483, %1486 : vector<8x128xf32>
    %c322 = arith.constant 322 : index
    %1488 = memref.load %arg1[%c322] : memref<332xf32, #tpu.memory_space<smem>>
    %1489 = vector.broadcast %1488 : f32 to vector<8x128xf32>
    %1490 = arith.mulf %1489, %1420 : vector<8x128xf32>
    %1491 = arith.addf %1487, %1490 : vector<8x128xf32>
    %c323 = arith.constant 323 : index
    %1492 = memref.load %arg1[%c323] : memref<332xf32, #tpu.memory_space<smem>>
    %1493 = vector.broadcast %1492 : f32 to vector<8x128xf32>
    %1494 = arith.mulf %1493, %1440 : vector<8x128xf32>
    %1495 = arith.addf %1491, %1494 : vector<8x128xf32>
    %c50_101 = arith.constant 50 : index
    %1496 = memref.load %arg2[%c50_101] : memref<53xf32, #tpu.memory_space<smem>>
    %1497 = vector.broadcast %1496 : f32 to vector<8x128xf32>
    %1498 = arith.addf %1495, %1497 : vector<8x128xf32>
    %cst_102 = arith.constant 0.000000e+00 : f32
    %1499 = vector.broadcast %cst_102 : f32 to vector<8x128xf32>
    %1500 = arith.maximumf %1498, %1499 : vector<8x128xf32>
    %c324 = arith.constant 324 : index
    %1501 = memref.load %arg1[%c324] : memref<332xf32, #tpu.memory_space<smem>>
    %1502 = vector.broadcast %1501 : f32 to vector<8x128xf32>
    %1503 = arith.mulf %1502, %1380 : vector<8x128xf32>
    %c325 = arith.constant 325 : index
    %1504 = memref.load %arg1[%c325] : memref<332xf32, #tpu.memory_space<smem>>
    %1505 = vector.broadcast %1504 : f32 to vector<8x128xf32>
    %1506 = arith.mulf %1505, %1400 : vector<8x128xf32>
    %1507 = arith.addf %1503, %1506 : vector<8x128xf32>
    %c326 = arith.constant 326 : index
    %1508 = memref.load %arg1[%c326] : memref<332xf32, #tpu.memory_space<smem>>
    %1509 = vector.broadcast %1508 : f32 to vector<8x128xf32>
    %1510 = arith.mulf %1509, %1420 : vector<8x128xf32>
    %1511 = arith.addf %1507, %1510 : vector<8x128xf32>
    %c327 = arith.constant 327 : index
    %1512 = memref.load %arg1[%c327] : memref<332xf32, #tpu.memory_space<smem>>
    %1513 = vector.broadcast %1512 : f32 to vector<8x128xf32>
    %1514 = arith.mulf %1513, %1440 : vector<8x128xf32>
    %1515 = arith.addf %1511, %1514 : vector<8x128xf32>
    %c51_103 = arith.constant 51 : index
    %1516 = memref.load %arg2[%c51_103] : memref<53xf32, #tpu.memory_space<smem>>
    %1517 = vector.broadcast %1516 : f32 to vector<8x128xf32>
    %1518 = arith.addf %1515, %1517 : vector<8x128xf32>
    %cst_104 = arith.constant 0.000000e+00 : f32
    %1519 = vector.broadcast %cst_104 : f32 to vector<8x128xf32>
    %1520 = arith.maximumf %1518, %1519 : vector<8x128xf32>
    %c328 = arith.constant 328 : index
    %1521 = memref.load %arg1[%c328] : memref<332xf32, #tpu.memory_space<smem>>
    %1522 = vector.broadcast %1521 : f32 to vector<8x128xf32>
    %1523 = arith.mulf %1522, %1460 : vector<8x128xf32>
    %c329 = arith.constant 329 : index
    %1524 = memref.load %arg1[%c329] : memref<332xf32, #tpu.memory_space<smem>>
    %1525 = vector.broadcast %1524 : f32 to vector<8x128xf32>
    %1526 = arith.mulf %1525, %1480 : vector<8x128xf32>
    %1527 = arith.addf %1523, %1526 : vector<8x128xf32>
    %c330 = arith.constant 330 : index
    %1528 = memref.load %arg1[%c330] : memref<332xf32, #tpu.memory_space<smem>>
    %1529 = vector.broadcast %1528 : f32 to vector<8x128xf32>
    %1530 = arith.mulf %1529, %1500 : vector<8x128xf32>
    %1531 = arith.addf %1527, %1530 : vector<8x128xf32>
    %c331 = arith.constant 331 : index
    %1532 = memref.load %arg1[%c331] : memref<332xf32, #tpu.memory_space<smem>>
    %1533 = vector.broadcast %1532 : f32 to vector<8x128xf32>
    %1534 = arith.mulf %1533, %1520 : vector<8x128xf32>
    %1535 = arith.addf %1531, %1534 : vector<8x128xf32>
    %c52_105 = arith.constant 52 : index
    %1536 = memref.load %arg2[%c52_105] : memref<53xf32, #tpu.memory_space<smem>>
    %1537 = vector.broadcast %1536 : f32 to vector<8x128xf32>
    %1538 = arith.addf %1535, %1537 : vector<8x128xf32>
    %c0_106 = arith.constant 0 : index
    %c0_107 = arith.constant 0 : index
    %1539 = vector.load %arg4[%c0_106, %c0_107] : memref<8x128xf32, #tpu.memory_space<vmem>>, vector<8x128xf32>
    tpu.vector_store %arg4[%c0_106, %c0_107], %1538 {strides = array<i32>} : memref<8x128xf32, #tpu.memory_space<vmem>>, vector<8x128xf32>,
    return
  }
  func.func @transform_0(%arg0: i32) -> i32 {
    %c0_i32 = arith.constant 0 : i32
    %c0_i32_0 = arith.constant 0 : i32
    return %c0_i32 : i32
  }
  func.func @transform_1(%arg0: i32) -> i32 {
    %c0_i32 = arith.constant 0 : i32
    %c0_i32_0 = arith.constant 0 : i32
    return %c0_i32 : i32
  }
  func.func @transform_2(%arg0: i32) -> (i32, i32) {
    %c0_i32 = arith.constant 0 : i32
    %c0_i32_0 = arith.constant 0 : i32
    return %arg0, %c0_i32 : i32, i32
  }
  func.func @transform_3(%arg0: i32) -> (i32, i32) {
    %c0_i32 = arith.constant 0 : i32
    %c0_i32_0 = arith.constant 0 : i32
    return %arg0, %c0_i32 : i32, i32
  }
}

</mosaic_0001>

<bundles_post_ra>
// kernel: tpu_custom_call.1
= control target key start
LH: loop header
LB: loop body
LE: loop exit
PB: predicated region body
PF: predicated region fallthrough
CT: control target
= control target key end

     0   :  { %s3523_s0 = inlined_call_operand.hbm [shape: f32[332], index: 0, kind: input, shape index: {}]   ;;  %s3524_s1 = inlined_call_operand.hbm [shape: f32[53], index: 1, kind: input, shape index: {}]   ;;  %s3525_s2 = inlined_call_operand.hbm [shape: f32[8,128], index: 2, kind: input, shape index: {}]   ;;  %s3526_s3 = inlined_call_operand.hbm [shape: f32[8,128], index: 3, kind: output, shape index: {}]  }
   0x1   :  { %3532 = sst [smem:[#allocation49_spill]] %s3526_s3 }
   0x2   :  { %8 = vsyncpa [#allocation5], 0 }
   0x3   :  { %9 = vsyncpa [#allocation7], 0 }
   0x4   :  { %10 = vsyncpa [#allocation3], 0 }
   0x5   :  { %11 = vsyncpa [#allocation4], 0  ;;  %s17_s14 = sshll.u32 %s3523_s0, 4  ;;  %s26_s17 = sshll.u32 %s3524_s1, 4  ;;  %s18_s14 = int_to_ptr.hbm [resolvable:$true] %s17_s14  ;;  %s27_s17 = int_to_ptr.hbm [resolvable:$true] %s26_s17 }
   0x6   :  { %s2028_s18 = smov [#allocation2]   ;;  %s2029_s19 = smov [#allocation6]  }
   0x7   :  { %20 = dma.hbm_to_smem %s18_s14, 48, %s2028_s18, [#allocation5]  }
   0x8   :  { %29 = dma.hbm_to_smem %s27_s17, 16, %s2029_s19, [#allocation7]  }
   0x9   :  { %s35_s22 = sshll.u32 %s3525_s2, 4  ;;  %s2030_s23 = smov [#allocation8]   ;;  %s36_s22 = int_to_ptr.hbm [resolvable:$true] %s35_s22 }
   0xa   :  { %s37_s24 = sshll.u32 %s2030_s23, 4  ;;  %s38_s24 = int_to_ptr.vmem [resolvable:$true] %s37_s24 }
   0xb   :  { %40 = dma.hbm_to_vmem [thread:$0]  %s36_s22, 128, %s38_s24, [#allocation3]  }
   0xc   :  { %2020 = dma.done.wait [#allocation5], 48  }
   0xd   :  { %2021 = vsyncadd [#allocation5], 4294967248 }
   0xe   :  { %2022 = dma.done.wait [#allocation7], 16  }
   0xf   :  { %2023 = vsyncadd [#allocation7], 4294967280 }
  0x10   :  { %2024 = dma.done.wait [#allocation3], 128  }
  0x11   :  { %2025 = vsyncadd [#allocation3], 4294967168 }
  0x12   :  { %53 = sfence }
  0x13   :  { %s2061_s0 = sld [smem:[#allocation2]]  ;;  %v2169_v0 = vld [vmem:[#allocation8] sm:$0xff] }
  0x14   :  { %s2063_s1 = sld [smem:[#allocation6]] }
  0x15   :  { %s2065_s25 = sld [smem:[#allocation2 + $0x1]] }
  0x16   :  { %s2067_s26 = sld [smem:[#allocation6 + $0x1]] }
  0x17   :  { %s2069_s2 = sld [smem:[#allocation2 + $0x2]] }
  0x18   :  { %s2071_s27 = sld [smem:[#allocation6 + $0x2]] }
  0x19   :  { %s2073_s28 = sld [smem:[#allocation2 + $0x3]]  ;;  %v56_v1 = vstv %s2061_s0 }
  0x1a   :  { %s2075_s29 = sld [smem:[#allocation6 + $0x3]]  ;;  %v57_v3 = vmul.f32 %v56_v1, %v2169_v0  ;;  %v59_v6 = vstv %s2063_s1 }
  0x1b   :  { %s2077_s30 = sld [smem:[#allocation2 + $0x4]]  ;;  %v63_v2 = vstv %s2065_s25 }
  0x1c   :  { %s2079_s4 = sld [smem:[#allocation6 + $0x4]]  ;;  %v64_v4 = vmul.f32 %v63_v2, %v2169_v0  ;;  %v66_v7 = vstv %s2067_s26  ;;  %v60_v9 = vadd.f32 %v59_v6, %v57_v3 }
  0x1d   :  { %s2081_s5 = sld [smem:[#allocation2 + $0x5]]  ;;  %v70_v5 = vstv %s2069_s2 }
  0x1e   :  { %s2083_s6 = sld [smem:[#allocation6 + $0x5]]  ;;  %v71_v8 = vmul.f32 %v70_v5, %v2169_v0  ;;  %v67_v10 = vadd.f32 %v66_v7, %v64_v4  ;;  %v73_v11 = vstv %s2071_s27  ;;  %v2204_v15 = vmax.f32 %v60_v9, 0.0 }
  0x1f   :  { %s2085_s7 = sld [smem:[#allocation2 + $0x6]]  ;;  %v77_v12 = vstv %s2073_s28 }
  0x20   :  { %s2087_s8 = sld [smem:[#allocation6 + $0x6]]  ;;  %v74_v13 = vadd.f32 %v73_v11, %v71_v8  ;;  %v78_v14 = vmul.f32 %v77_v12, %v2169_v0  ;;  %v2206_v16 = vmax.f32 %v67_v10, 0.0  ;;  %v80_v17 = vstv %s2075_s29 }
  0x21   :  { %s2089_s9 = sld [smem:[#allocation2 + $0x7]]  ;;  %v84_v18 = vstv %s2077_s30 }
  0x22   :  { %s2091_s10 = sld [smem:[#allocation6 + $0x7]]  ;;  %v2218_v21 = vmax.f32 %v74_v13, 0.0  ;;  %v81_v22 = vadd.f32 %v80_v17, %v78_v14  ;;  %v85_v23 = vmul.f32 %v84_v18, %v2169_v0  ;;  %v87_v24 = vstv %s2079_s4 }
  0x23   :  { %s2093_s11 = sld [smem:[#allocation2 + $0x8]]  ;;  %v91_v25 = vstv %s2081_s5 }
  0x24   :  { %s2095_s12 = sld [smem:[#allocation2 + $0x9]]  ;;  %v88_v31 = vadd.f32 %v87_v24, %v85_v23  ;;  %v92_v32 = vmul.f32 %v91_v25, %v2169_v0  ;;  %v2239_v33 = vmax.f32 %v81_v22, 0.0  ;;  %v94_v34 = vstv %s2083_s6 }
  0x25   :  { %s2097_s13 = sld [smem:[#allocation2 + $0xa]]  ;;  %v98_v37 = vstv %s2085_s7 }
  0x26   :  { %3533 = sst [smem:[#allocation14_spill]] %s2087_s8  ;;  %v2254_v42 = vmax.f32 %v88_v31, 0.0  ;;  %v95_v43 = vadd.f32 %v94_v34, %v92_v32  ;;  %v99_v44 = vmul.f32 %v98_v37, %v2169_v0 }
  0x27   :  { %3534 = sst [smem:[#allocation15_spill]] %s2089_s9 }
  0x28   :  { %3535 = sst [smem:[#allocation16_spill]] %s2091_s10  ;;  %v2271_v53 = vmax.f32 %v95_v43, 0.0 }
  0x29   :  { %s2099_s14 = sld [smem:[#allocation2 + $0xb]]  ;;  %v112_v19 = vstv %s2093_s11 }
  0x2a   :  { %s2101_s15 = sld [smem:[#allocation2 + $0xc]]  ;;  %v115_v20 = vstv %s2095_s12  ;;  %v113_v26 = vmul.f32 %v112_v19, %v2204_v15 }
  0x2b   :  { %s2103_s16 = sld [smem:[#allocation2 + $0xd]]  ;;  %v116_v27 = vmul.f32 %v115_v20, %v2206_v16  ;;  %v119_v28 = vstv %s2097_s13 }
  0x2c   :  { %s2105_s17 = sld [smem:[#allocation2 + $0xe]]  ;;  %v120_v36 = vmul.f32 %v119_v28, %v2218_v21 }
  0x2d   :  { %s2107_s18 = sld [smem:[#allocation2 + $0xf]]  ;;  %v117_v35 = vadd.f32 %v116_v27, %v113_v26 }
  0x2e   :  { %s2109_s19 = sld [smem:[#allocation6 + $0x8]] }
  0x2f   :  { %s2111_s20 = sld [smem:[#allocation2 + $0x10]]  ;;  %v123_v38 = vstv %s2099_s14  ;;  %v121_v46 = vadd.f32 %v120_v36, %v117_v35 }
  0x30   :  { %3536 = sst [smem:[#allocation17_spill]] %s2101_s15  ;;  %v124_v47 = vmul.f32 %v123_v38, %v2239_v33 }
  0x31   :  { %3537 = sst [smem:[#allocation18_spill]] %s2103_s16 }
  0x32   :  { %3538 = sst [smem:[#allocation19_spill]] %s2105_s17  ;;  %v125_v57 = vadd.f32 %v124_v47, %v121_v46 }
  0x33   :  { %3539 = sst [smem:[#allocation20_spill]] %s2107_s18 }
  0x34   :  { %3540 = sst [smem:[#allocation21_spill]] %s2109_s19 }
  0x35   :  { %s2113_s21 = sld [smem:[#allocation2 + $0x11]]  ;;  %v147_v29 = vstv %s2111_s20 }
  0x36   :  { %s2115_s22 = sld [smem:[#allocation2 + $0x12]]  ;;  %v148_v39 = vmul.f32 %v147_v29, %v2204_v15 }
  0x37   :  { %s2117_s23 = sld [smem:[#allocation2 + $0x13]] }
  0x38   :  { %s2119_s24 = sld [smem:[#allocation2 + $0x14]] }
  0x39   :  { %s2121_s3 = sld [smem:[#allocation2 + $0x15]] }
  0x3a   :  { %s2123_s10 = sld [smem:[#allocation2 + $0x16]] }
  0x3b   :  { %s2125_s16 = sld [smem:[#allocation2 + $0x17]]  ;;  %v150_v30 = vstv %s2113_s21 }
  0x3c   :  { %s2127_s17 = sld [smem:[#allocation6 + $0x9]]  ;;  %v151_v40 = vmul.f32 %v150_v30, %v2206_v16  ;;  %v154_v41 = vstv %s2115_s22 }
  0x3d   :  { %3541 = sst [smem:[#allocation22_spill]] %s2117_s23  ;;  %v155_v51 = vmul.f32 %v154_v41, %v2218_v21 }
  0x3e   :  { %s2129_s18 = sld [smem:[#allocation2 + $0x18]]  ;;  %v152_v50 = vadd.f32 %v151_v40, %v148_v39  ;;  %v162_v62 = vstv %s2119_s24 }
  0x3f   :  { %3542 = sst [smem:[#allocation23_spill]] %s2121_s3  ;;  %v163_v7 = vmul.f32 %v162_v62, %v2254_v42 }
  0x40   :  { %3543 = sst [smem:[#allocation24_spill]] %s2123_s10  ;;  %v156_v60 = vadd.f32 %v155_v51, %v152_v50 }
  0x41   :  { %3544 = sst [smem:[#allocation25_spill]] %s2125_s16 }
  0x42   :  { %3545 = sst [smem:[#allocation26_spill]] %s2127_s17 }
  0x43   :  { %s2131_s19 = sld [smem:[#allocation2 + $0x19]] }
  0x44   :  { %3546 = sst [smem:[#allocation27_spill]] %s2129_s18 }
  0x45   :  { %s2133_s15 = sld [smem:[#allocation2 + $0x1a]] }
  0x46   :  { %s2135_s8 = sld [smem:[#allocation2 + $0x1b]] }
  0x47   :  { %s2137_s9 = sld [smem:[#allocation2 + $0x1c]] }
  0x48   :  { %s2139_s23 = sld [smem:[#allocation2 + $0x1d]] }
  0x49   :  { %3547 = sst [smem:[#allocation28_spill]] %s2131_s19 }
  0x4a   :  { %s2141_s3 = sld [smem:[#allocation2 + $0x1e]] }
  0x4b   :  { %3548 = sst [smem:[#allocation29_spill]] %s2133_s15 }
  0x4c   :  { %3549 = sst [smem:[#allocation30_spill]] %s2135_s8 }
  0x4d   :  { %3550 = sst [smem:[#allocation31_spill]] %s2137_s9 }
  0x4e   :  { %3551 = sst [smem:[#allocation32_spill]] %s2139_s23 }
  0x4f   :  { %s2143_s10 = sld [smem:[#allocation2 + $0x1f]] }
  0x50   :  { %3552 = sst [smem:[#allocation33_spill]] %s2141_s3 }
  0x51   :  { %s2145_s16 = sld [smem:[#allocation6 + $0xa]] }
  0x52   :  { %s2147_s17 = sld [smem:[#allocation2 + $0x20]] }
  0x53   :  { %s2149_s18 = sld [smem:[#allocation2 + $0x21]] }
  0x54   :  { %s2151_s19 = sld [smem:[#allocation2 + $0x22]] }
  0x55   :  { %3553 = sst [smem:[#allocation34_spill]] %s2143_s10 }
  0x56   :  { %s2153_s15 = sld [smem:[#allocation2 + $0x23]] }
  0x57   :  { %3554 = sst [smem:[#allocation35_spill]] %s2145_s16 }
  0x58   :  { %s2155_s9 = sld [smem:[#allocation2 + $0x24]]  ;;  %v217_v20 = vstv %s2147_s17 }
  0x59   :  { %3555 = sst [smem:[#allocation36_spill]] %s2149_s18  ;;  %v218_v29 = vmul.f32 %v217_v20, %v2204_v15 }
  0x5a   :  { %s2157_s23 = sld [smem:[#allocation2 + $0x25]]  ;;  %v224_v31 = vstv %s2151_s19 }
  0x5b   :  { %s2159_s3 = sld [smem:[#allocation2 + $0x26]] }
  0x5c   :  { %s2161_s10 = sld [smem:[#allocation2 + $0x27]]  ;;  %v228_v46 = vstv %s2153_s15 }
  0x5d   :  { %s2163_s16 = sld [smem:[#allocation6 + $0xb]] }
  0x5e   :  { %3556 = sst [smem:[#allocation37_spill]] %s2155_s9 }
  0x5f   :  { %s2165_s8 = sld [smem:[#allocation2 + $0x28]] }
  0x60   :  { %3557 = sst [smem:[#allocation38_spill]] %s2157_s23 }
  0x61   :  { %3558 = sst [smem:[#allocation39_spill]] %s2159_s3 }
  0x62   :  { %3559 = sst [smem:[#allocation40_spill]] %s2161_s10 }
  0x63   :  { %3560 = sst [smem:[#allocation41_spill]] %s2163_s16 }
  0x64   :  { %s2167_s18 = sld [smem:[#allocation2 + $0x29]] }
  0x65   :  { %s2173_s9 = sld [smem:[#allocation2 + $0x2a]]  ;;  %v252_v35 = vstv %s2165_s8 }
  0x66   :  { %s2175_s23 = sld [smem:[#allocation2 + $0x2b]]  ;;  %v253_v47 = vmul.f32 %v252_v35, %v2204_v15 }
  0x67   :  { %s2177_s3 = sld [smem:[#allocation2 + $0x2c]] }
  0x68   :  { %s2182_s16 = sld [smem:[#allocation2 + $0x2d]] }
  0x69   :  { %s2186_s10 = sld [smem:[#allocation2 + $0x2e]] }
  0x6a   :  { %s2188_s0 = sld [smem:[#allocation2 + $0x2f]]  ;;  %v255_v36 = vstv %s2167_s18 }
  0x6b   :  { %s2191_s25 = sld [smem:[#allocation6 + $0xc]] }
  0x6c   :  { %s2195_s2 = sld [smem:[#allocation2 + $0x30]] }
  0x6d   :  { %s2197_s1 = sld [smem:[#allocation2 + $0x31]] }
  0x6e   :  { %s2199_s26 = sld [smem:[#allocation2 + $0x32]] }
  0x6f   :  { %3561 = sst [smem:[#allocation42_spill]] %s2186_s10 }
  0x70   :  { %3562 = sst [smem:[#allocation43_spill]] %s2188_s0 }
  0x71   :  { %3563 = sst [smem:[#allocation44_spill]] %s2191_s25 }
  0x72   :  { %s2202_s0 = sld [smem:[#allocation2 + $0x33]] }
  0x73   :  { %s2210_s27 = sld [smem:[#allocation2 + $0x34]] }
  0x74   :  { %s2214_s28 = sld [smem:[#allocation2 + $0x35]] }
  0x75   :  { %s2216_s25 = sld [smem:[#allocation2 + $0x36]] }
  0x76   :  { %s2221_s10 = sld [smem:[#allocation2 + $0x37]] }
  0x77   :  { %s2227_s29 = sld [smem:[#allocation6 + $0xd]] }
  0x78   :  { %s2230_s30 = sld [smem:[#allocation2 + $0x38]] }
  0x79   :  { %s2234_s11 = sld [smem:[#allocation2 + $0x39]] }
  0x7a   :  { %3564 = sst [smem:[#allocation45_spill]] %s2214_s28 }
  0x7b   :  { %3565 = sst [smem:[#allocation46_spill]] %s2216_s25 }
  0x7c   :  { %3566 = sst [smem:[#allocation47_spill]] %s2221_s10 }
  0x7d   :  { %3567 = sst [smem:[#allocation48_spill]] %s2227_s29 }
  0x7e   :  { %s2237_s4 = sld [smem:[#allocation2 + $0x3a]] }
  0x7f   :  { %s3568_s5 = sld [smem:[#allocation15_spill]] }
  0x80   :  { %s2243_s12 = sld [smem:[#allocation2 + $0x3b]] }
  0x81   :  { %s3569_s13 = sld [smem:[#allocation14_spill]] }
  0x82   :  { %s3570_s20 = sld [smem:[#allocation17_spill]] }
  0x83   :  { %s2249_s21 = sld [smem:[#allocation2 + $0x3c]] }
  0x84   :  { %s3572_s29 = sld [smem:[#allocation22_spill]] }
  0x85   :  { %s2252_s10 = sld [smem:[#allocation2 + $0x3d]]  ;;  %v105_v45 = vstv %s3568_s5 }
  0x86   :  { %s2256_s6 = sld [smem:[#allocation2 + $0x3e]]  ;;  %v106_v54 = vmul.f32 %v105_v45, %v2169_v0 }
  0x87   :  { %s3575_s7 = sld [smem:[#allocation16_spill]]  ;;  %v101_v48 = vstv %s3569_s13 }
  0x88   :  { %s2261_s14 = sld [smem:[#allocation2 + $0x3f]]  ;;  %v127_v49 = vstv %s3570_s20  ;;  %v102_v55 = vadd.f32 %v101_v48, %v99_v44  ;;  %v225_v44 = vmul.f32 %v224_v31, %v2218_v21  ;;  %v256_v48 = vmul.f32 %v255_v36, %v2206_v16 }
  0x89   :  { %3571 = sst [smem:[#allocation15_spill]] %s2249_s21  ;;  %v128_v58 = vmul.f32 %v127_v49, %v2254_v42 }
  0x8a   :  { %s3577_s25 = sld [smem:[#allocation18_spill]]  ;;  %v158_v52 = vstv %s3572_s29  ;;  %v2291_v2 = vmax.f32 %v102_v55, 0.0 }
  0x8b   :  { %3573 = sst [smem:[#allocation14_spill]] %s2252_s10  ;;  %v159_v61 = vmul.f32 %v158_v52, %v2239_v33  ;;  %v129_v3 = vadd.f32 %v128_v58, %v125_v57  ;;  %v259_v52 = vstv %s2173_s9  ;;  %v290_v57 = vstv %s2197_s1 }
  0x8c   :  { %3574 = sst [smem:[#allocation17_spill]] %s2256_s6 }
  0x8d   :  { %s2266_s22 = sld [smem:[#allocation6 + $0xe]]  ;;  %v108_v56 = vstv %s3575_s7  ;;  %v160_v6 = vadd.f32 %v159_v61, %v156_v60  ;;  %v229_v61 = vmul.f32 %v228_v46, %v2239_v33  ;;  %v302_v46 = vstv %s2210_s27 }
  0x8e   :  { %3576 = sst [smem:[#allocation22_spill]] %s2261_s14  ;;  %v109_v63 = vadd.f32 %v108_v56, %v106_v54  ;;  %v287_v56 = vstv %s2195_s2 }
  0x8f   :  { %s2269_s6 = sld [smem:[#allocation2 + $0x40]]  ;;  %v164_v18 = vadd.f32 %v163_v7, %v160_v6  ;;  %v291_v6 = vmul.f32 %v290_v57, %v2206_v16 }
  0x90   :  { %s3579_s10 = sld [smem:[#allocation27_spill]]  ;;  %v131_v59 = vstv %s3577_s25  ;;  %v2305_v11 = vmax.f32 %v109_v63, 0.0 }
  0x91   :  { %s3580_s5 = sld [smem:[#allocation28_spill]]  ;;  %v132_v4 = vmul.f32 %v131_v59, %v2271_v53 }
  0x92   :  { %s2274_s21 = sld [smem:[#allocation2 + $0x41]] }
  0x93   :  { %3578 = sst [smem:[#allocation16_spill]] %s2266_s22  ;;  %v133_v13 = vadd.f32 %v132_v4, %v129_v3  ;;  %v263_v4 = vstv %s2175_s23 }
  0x94   :  { %s3581_s13 = sld [smem:[#allocation19_spill]]  ;;  %v264_v20 = vmul.f32 %v263_v4, %v2239_v33 }
  0x95   :  { %s2278_s20 = sld [smem:[#allocation2 + $0x42]] }
  0x96   :  { %s3583_s29 = sld [smem:[#allocation23_spill]]  ;;  %v182_v0 = vstv %s3579_s10 }
  0x97   :  { %s2282_s22 = sld [smem:[#allocation2 + $0x43]]  ;;  %v185_v1 = vstv %s3580_s5  ;;  %v183_v9 = vmul.f32 %v182_v0, %v2204_v15  ;;  %v257_v0 = vadd.f32 %v256_v48, %v253_v47  ;;  %v333_v47 = vstv %s2243_s12 }
  0x98   :  { %s2285_s14 = sld [smem:[#allocation2 + $0x44]]  ;;  %v186_v10 = vmul.f32 %v185_v1, %v2206_v16  ;;  %v260_v1 = vmul.f32 %v259_v52, %v2218_v21  ;;  %v360_v35 = vstv %s2274_s21 }
  0x99   :  { %s3585_s28 = sld [smem:[#allocation29_spill]] }
  0x9a   :  { %s2289_s7 = sld [smem:[#allocation2 + $0x45]]  ;;  %v135_v5 = vstv %s3581_s13  ;;  %v187_v24 = vadd.f32 %v186_v10, %v183_v9  ;;  %v322_v9 = vstv %s2230_s30  ;;  %v325_v10 = vstv %s2234_s11 }
  0x9b   :  { %3582 = sst [smem:[#allocation18_spill]] %s2278_s20  ;;  %v136_v14 = vmul.f32 %v135_v5, %v2291_v2  ;;  %v288_v5 = vmul.f32 %v287_v56, %v2204_v15 }
  0x9c   :  { %s3587_s25 = sld [smem:[#allocation20_spill]]  ;;  %v166_v8 = vstv %s3583_s29 }
  0x9d   :  { %s2294_s20 = sld [smem:[#allocation2 + $0x46]]  ;;  %v167_v19 = vmul.f32 %v166_v8, %v2271_v53  ;;  %v137_v28 = vadd.f32 %v136_v14, %v133_v13  ;;  %v294_v8 = vstv %s2199_s26 }
  0x9e   :  { %3584 = sst [smem:[#allocation27_spill]] %s2285_s14 }
  0x9f   :  { %s3589_s24 = sld [smem:[#allocation36_spill]]  ;;  %v189_v12 = vstv %s3585_s28  ;;  %v168_v32 = vadd.f32 %v167_v19, %v164_v18  ;;  %v261_v19 = vadd.f32 %v260_v1, %v257_v0 }
  0xa0   :  { %3586 = sst [smem:[#allocation28_spill]] %s2289_s7  ;;  %v190_v25 = vmul.f32 %v189_v12, %v2218_v21 }
  0xa1   :  { %s2298_s14 = sld [smem:[#allocation2 + $0x47]] }
  0xa2   :  { %s3591_s10 = sld [smem:[#allocation24_spill]]  ;;  %v139_v17 = vstv %s3587_s25  ;;  %v191_v38 = vadd.f32 %v190_v25, %v187_v24  ;;  %v295_v24 = vmul.f32 %v294_v8, %v2218_v21  ;;  %v323_v25 = vmul.f32 %v322_v9, %v2204_v15 }
  0xa3   :  { %3588 = sst [smem:[#allocation19_spill]] %s2294_s20  ;;  %v140_v26 = vmul.f32 %v139_v17, %v2305_v11  ;;  %v368_v8 = vstv %s2282_s22 }
  0xa4   :  { %s2303_s5 = sld [smem:[#allocation6 + $0xf]] }
  0xa5   :  { %s3593_s20 = sld [smem:[#allocation30_spill]]  ;;  %v220_v22 = vstv %s3589_s24  ;;  %v2352_v49 = vadd.f32 %v140_v26, %v137_v28  ;;  %v326_v26 = vmul.f32 %v325_v10, %v2206_v16 }
  0xa6   :  { %s2308_s13 = sld [smem:[#allocation2 + $0x48]]  ;;  %v221_v30 = vmul.f32 %v220_v22, %v2206_v16  ;;  %v267_v22 = vstv %s2177_s3 }
  0xa7   :  { %3590 = sst [smem:[#allocation23_spill]] %s2298_s14 }
  0xa8   :  { %s2312_s7 = sld [smem:[#allocation2 + $0x49]]  ;;  %v170_v23 = vstv %s3591_s10  ;;  %v222_v45 = vadd.f32 %v221_v30, %v218_v29  ;;  %v298_v29 = vstv %s2202_s0  ;;  %v329_v30 = vstv %s2237_s4 }
  0xa9   :  { %s2317_s29 = sld [smem:[#allocation2 + $0x4a]]  ;;  %v171_v34 = vmul.f32 %v170_v23, %v2291_v2  ;;  %v292_v23 = vadd.f32 %v291_v6, %v288_v5 }
  0xaa   :  { %3592 = sst [smem:[#allocation29_spill]] %s2303_s5  ;;  %v226_v62 = vadd.f32 %v225_v44, %v222_v45  ;;  %v327_v44 = vadd.f32 %v326_v26, %v323_v25  ;;  %v330_v45 = vmul.f32 %v329_v30, %v2218_v21 }
  0xab   :  { %s3595_s28 = sld [smem:[#allocation25_spill]]  ;;  %v193_v27 = vstv %s3593_s20  ;;  %v172_v50 = vadd.f32 %v171_v34, %v168_v32  ;;  %v357_v34 = vstv %s2269_s6 }
  0xac   :  { %s2321_s5 = sld [smem:[#allocation2 + $0x4b]]  ;;  %v194_v39 = vmul.f32 %v193_v27, %v2239_v33  ;;  %v230_v18 = vadd.f32 %v229_v61, %v226_v62  ;;  %v358_v48 = vmul.f32 %v357_v34, %v2204_v15  ;;  %v331_v61 = vadd.f32 %v330_v45, %v327_v44 }
  0xad   :  { %s3596_s25 = sld [smem:[#allocation21_spill]]  ;;  %v334_v62 = vmul.f32 %v333_v47, %v2239_v33 }
  0xae   :  { %3594 = sst [smem:[#allocation20_spill]] %s2312_s7  ;;  %v195_v54 = vadd.f32 %v194_v39, %v191_v38  ;;  %v268_v38 = vmul.f32 %v267_v22, %v2254_v42  ;;  %v271_v39 = vstv %s2182_s16 }
  0xaf   :  { %s2325_s14 = sld [smem:[#allocation2 + $0x4c]] }
  0xb0   :  { %s3597_s7 = sld [smem:[#allocation31_spill]] }
  0xb1   :  { %s3598_s17 = sld [smem:[#allocation32_spill]]  ;;  %v174_v37 = vstv %s3595_s28 }
  0xb2   :  { %s2330_s24 = sld [smem:[#allocation2 + $0x4d]]  ;;  %v175_v51 = vmul.f32 %v174_v37, %v2305_v11  ;;  %v265_v37 = vadd.f32 %v264_v20, %v261_v19 }
  0xb3   :  { %s2335_s20 = sld [smem:[#allocation2 + $0x4e]]  ;;  %v143_v40 = vstv %s3596_s25 }
  0xb4   :  { %s2339_s10 = sld [smem:[#allocation2 + $0x4f]]  ;;  %v2373_v3 = vadd.f32 %v175_v51, %v172_v50  ;;  %v361_v50 = vmul.f32 %v360_v35, %v2206_v16  ;;  %v269_v57 = vadd.f32 %v268_v38, %v265_v37 }
  0xb5   :  { %s2345_s19 = sld [smem:[#allocation6 + $0x10]] }
  0xb6   :  { %v197_v41 = vstv %s3597_s7  ;;  %s3601_s8 = sld [smem:[#allocation26_spill]]  ;;  %v362_v1 = vadd.f32 %v361_v50, %v358_v48 }
  0xb7   :  { %v201_v43 = vstv %s3598_s17  ;;  %s3602_s18 = sld [smem:[#allocation33_spill]]  ;;  %v198_v55 = vmul.f32 %v197_v41, %v2254_v42  ;;  %v296_v41 = vadd.f32 %v295_v24, %v292_v23  ;;  %v369_v23 = vmul.f32 %v368_v8, %v2239_v33 }
  0xb8   :  { %s2350_s28 = sld [smem:[#allocation2 + $0x50]]  ;;  %v202_v59 = vmul.f32 %v201_v43, %v2271_v53  ;;  %v299_v43 = vmul.f32 %v298_v29, %v2239_v33  ;;  %v144_v24 = vadd.f32 %v143_v40, %v2352_v49  ;;  %v403_v8 = vstv %s2321_s5 }
  0xb9   :  { %s3603_s7 = sld [smem:[#allocation37_spill]]  ;;  %v199_v7 = vadd.f32 %v198_v55, %v195_v54 }
  0xba   :  { %3599 = sst [smem:[#allocation36_spill]] %s2339_s10  ;;  %v300_v16 = vadd.f32 %v299_v43, %v296_v41  ;;  %v392_v43 = vstv %s2308_s13 }
  0xbb   :  { %3600 = sst [smem:[#allocation24_spill]] %s2345_s19  ;;  %v203_v27 = vadd.f32 %v202_v59, %v199_v7  ;;  %v272_v59 = vmul.f32 %v271_v39, %v2271_v53 }
  0xbc   :  { %s2356_s17 = sld [smem:[#allocation2 + $0x51]]  ;;  %v178_v58 = vstv %s3601_s8 }
  0xbd   :  { %s2361_s15 = sld [smem:[#allocation2 + $0x52]]  ;;  %v205_v60 = vstv %s3602_s18  ;;  %v273_v10 = vadd.f32 %v272_v59, %v269_v57  ;;  %v179_v25 = vadd.f32 %v178_v58, %v2373_v3 }
  0xbe   :  { %s2367_s9 = sld [smem:[#allocation2 + $0x53]]  ;;  %v206_v12 = vmul.f32 %v205_v60, %v2291_v2  ;;  %v303_v60 = vmul.f32 %v302_v46, %v2254_v42 }
  0xbf   :  { %s3604_s19 = sld [smem:[#allocation34_spill]]  ;;  %v232_v63 = vstv %s3603_s7  ;;  %v2485_v37 = vmax.f32 %v179_v25, 0.0 }
  0xc0   :  { %s3605_s2 = sld [smem:[#allocation38_spill]]  ;;  %v233_v14 = vmul.f32 %v232_v63, %v2254_v42  ;;  %v207_v51 = vadd.f32 %v206_v12, %v203_v27 }
  0xc1   :  { %s2371_s1 = sld [smem:[#allocation2 + $0x54]] }
  0xc2   :  { %s2378_s18 = sld [smem:[#allocation2 + $0x55]]  ;;  %v234_v36 = vadd.f32 %v233_v14, %v230_v18 }
  0xc3   :  { %s2383_s7 = sld [smem:[#allocation2 + $0x56]] }
  0xc4   :  { %s2389_s23 = sld [smem:[#allocation2 + $0x57]] }
  0xc5   :  { %v209_v13 = vstv %s3604_s19  ;;  %s3607_s10 = sld [smem:[#allocation39_spill]] }
  0xc6   :  { %v236_v17 = vstv %s3605_s2  ;;  %s2393_s26 = sld [smem:[#allocation6 + $0x11]]  ;;  %v210_v28 = vmul.f32 %v209_v13, %v2305_v11  ;;  %v304_v13 = vadd.f32 %v303_v60, %v300_v16 }
  0xc7   :  { %s2398_s30 = sld [smem:[#allocation2 + $0x58]]  ;;  %v237_v31 = vmul.f32 %v236_v17, %v2271_v53  ;;  %v335_v17 = vadd.f32 %v334_v62, %v331_v61 }
  0xc8   :  { %s2403_s11 = sld [smem:[#allocation2 + $0x59]]  ;;  %v211_v5 = vadd.f32 %v210_v28, %v207_v51 }
  0xc9   :  { %s2409_s3 = sld [smem:[#allocation2 + $0x5a]]  ;;  %v238_v56 = vadd.f32 %v237_v31, %v234_v36  ;;  %v2483_v36 = vmax.f32 %v144_v24, 0.0 }
  0xca   :  { %3606 = sst [smem:[#allocation30_spill]] %s2389_s23 }
  0xcb   :  { %v240_v32 = vstv %s3607_s10  ;;  %s3609_s19 = sld [smem:[#allocation40_spill]] }
  0xcc   :  { %3608 = sst [smem:[#allocation25_spill]] %s2393_s26  ;;  %v241_v52 = vmul.f32 %v240_v32, %v2291_v2 }
  0xcd   :  { %s3610_s2 = sld [smem:[#allocation18_spill]] }
  0xce   :  { %s2413_s0 = sld [smem:[#allocation2 + $0x5b]]  ;;  %v242_v9 = vadd.f32 %v241_v52, %v238_v56  ;;  %v393_v56 = vmul.f32 %v392_v43, %v2483_v36 }
  0xcf   :  { %s3611_s4 = sld [smem:[#allocation42_spill]] }
  0xd0   :  { %s2417_s6 = sld [smem:[#allocation2 + $0x5c]] }
  0xd1   :  { %s2423_s21 = sld [smem:[#allocation2 + $0x5d]]  ;;  %v244_v54 = vstv %s3609_s19 }
  0xd2   :  { %s3614_s16 = sld [smem:[#allocation45_spill]]  ;;  %v245_v7 = vmul.f32 %v244_v54, %v2305_v11 }
  0xd3   :  { %s3615_s10 = sld [smem:[#allocation15_spill]]  ;;  %v364_v55 = vstv %s3610_s2 }
  0xd4   :  { %s2428_s26 = sld [smem:[#allocation2 + $0x5e]]  ;;  %v365_v4 = vmul.f32 %v364_v55, %v2218_v21  ;;  %v246_v29 = vadd.f32 %v245_v7, %v242_v9  ;;  %v430_v7 = vstv %s2356_s17 }
  0xd5   :  { %s3617_s23 = sld [smem:[#allocation35_spill]]  ;;  %v275_v15 = vstv %s3611_s4 }
  0xd6   :  { %3612 = sst [smem:[#allocation21_spill]] %s2417_s6  ;;  %v276_v12 = vmul.f32 %v275_v15, %v2291_v2  ;;  %v366_v22 = vadd.f32 %v365_v4, %v362_v1  ;;  %v399_v15 = vstv %s2317_s29 }
  0xd7   :  { %3613 = sst [smem:[#allocation31_spill]] %s2423_s21 }
  0xd8   :  { %s2432_s27 = sld [smem:[#allocation2 + $0x5f]]  ;;  %v306_v63 = vstv %s3614_s16  ;;  %v277_v30 = vadd.f32 %v276_v12, %v273_v10  ;;  %v370_v34 = vadd.f32 %v369_v23, %v366_v22  ;;  %v407_v22 = vstv %s2325_s14 }
  0xd9   :  { %s3619_s12 = sld [smem:[#allocation43_spill]]  ;;  %v337_v0 = vstv %s3615_s10  ;;  %v307_v14 = vmul.f32 %v306_v63, %v2271_v53 }
  0xda   :  { %3616 = sst [smem:[#allocation32_spill]] %s2428_s26  ;;  %v338_v18 = vmul.f32 %v337_v0, %v2254_v42 }
  0xdb   :  { %s2436_s19 = sld [smem:[#allocation6 + $0x12]]  ;;  %v213_v6 = vstv %s3617_s23  ;;  %v308_v31 = vadd.f32 %v307_v14, %v304_v13  ;;  %v431_v14 = vmul.f32 %v430_v7, %v2485_v37 }
  0xdc   :  { %s2441_s2 = sld [smem:[#allocation2 + $0x60]]  ;;  %v214_v28 = vadd.f32 %v213_v6, %v211_v5  ;;  %v339_v49 = vadd.f32 %v338_v18, %v335_v17  ;;  %v427_v6 = vstv %s2350_s28 }
  0xdd   :  { %s3621_s26 = sld [smem:[#allocation46_spill]]  ;;  %v428_v13 = vmul.f32 %v427_v6, %v2483_v36 }
  0xde   :  { %3618 = sst [smem:[#allocation26_spill]] %s2432_s27  ;;  %v2490_v39 = vmax.f32 %v214_v28, 0.0 }
  0xdf   :  { %s3622_s4 = sld [smem:[#allocation14_spill]]  ;;  %v279_v21 = vstv %s3619_s12  ;;  %v432_v25 = vadd.f32 %v431_v14, %v428_v13 }
  0xe0   :  { %s2446_s27 = sld [smem:[#allocation2 + $0x61]]  ;;  %v280_v33 = vmul.f32 %v279_v21, %v2305_v11  ;;  %v400_v5 = vmul.f32 %v399_v15, %v2490_v39 }
  0xe1   :  { %3620 = sst [smem:[#allocation33_spill]] %s2436_s19 }
  0xe2   :  { %s3623_s16 = sld [smem:[#allocation41_spill]]  ;;  %v281_v48 = vadd.f32 %v280_v33, %v277_v30  ;;  %v438_v30 = vstv %s2367_s9  ;;  %v411_v33 = vstv %s2330_s24 }
  0xe3   :  { %s3624_s10 = sld [smem:[#allocation27_spill]]  ;;  %v310_v19 = vstv %s3621_s26 }
  0xe4   :  { %s2450_s19 = sld [smem:[#allocation2 + $0x62]]  ;;  %v311_v40 = vmul.f32 %v310_v19, %v2291_v2 }
  0xe5   :  { %s2454_s22 = sld [smem:[#allocation2 + $0x63]]  ;;  %v341_v20 = vstv %s3622_s4 }
  0xe6   :  { %s2459_s23 = sld [smem:[#allocation2 + $0x64]]  ;;  %v342_v58 = vmul.f32 %v341_v20, %v2271_v53  ;;  %v434_v20 = vstv %s2361_s15 }
  0xe7   :  { %s3626_s12 = sld [smem:[#allocation47_spill]] }
  0xe8   :  { %s3627_s21 = sld [smem:[#allocation17_spill]]  ;;  %v248_v26 = vstv %s3623_s16  ;;  %v343_v46 = vadd.f32 %v342_v58, %v339_v49  ;;  %v415_v49 = vstv %s2335_s20 }
  0xe9   :  { %v372_v27 = vstv %s3624_s10  ;;  %s2469_s6 = sld [smem:[#allocation2 + $0x65]]  ;;  %v249_v41 = vadd.f32 %v248_v26, %v246_v29  ;;  %v435_v26 = vmul.f32 %v434_v20, %v2490_v39 }
  0xea   :  { %s3629_s26 = sld [smem:[#allocation28_spill]]  ;;  %v373_v35 = vmul.f32 %v372_v27, %v2254_v42  ;;  %v312_v42 = vadd.f32 %v311_v40, %v308_v31 }
  0xeb   :  { %s2472_s4 = sld [smem:[#allocation2 + $0x66]]  ;;  %v2510_v59 = vmax.f32 %v249_v41, 0.0  ;;  %v436_v58 = vadd.f32 %v435_v26, %v432_v25  ;;  %v465_v41 = vstv %s2403_s11  ;;  %v508_v20 = vstv %s2454_s22 }
  0xec   :  { %3625 = sst [smem:[#allocation37_spill]] %s2459_s23  ;;  %v374_v51 = vadd.f32 %v373_v35, %v370_v34  ;;  %v442_v35 = vstv %s2371_s1 }
  0xed   :  { %s3631_s25 = sld [smem:[#allocation20_spill]]  ;;  %v314_v3 = vstv %s3626_s12  ;;  %v404_v19 = vmul.f32 %v403_v8, %v2510_v59 }
  0xee   :  { %s2476_s8 = sld [smem:[#allocation2 + $0x67]]  ;;  %v345_v32 = vstv %s3627_s21  ;;  %v315_v45 = vmul.f32 %v314_v3, %v2305_v11  ;;  %v439_v3 = vmul.f32 %v438_v30, %v2510_v59 }
  0xef   :  { %3628 = sst [smem:[#allocation34_spill]] %s2469_s6  ;;  %v346_v47 = vmul.f32 %v345_v32, %v2291_v2 }
  0xf0   :  { %s2481_s16 = sld [smem:[#allocation6 + $0x13]]  ;;  %v376_v38 = vstv %s3629_s26 }
  0xf1   :  { %3630 = sst [smem:[#allocation38_spill]] %s2472_s4  ;;  %v377_v52 = vmul.f32 %v376_v38, %v2271_v53  ;;  %v316_v53 = vadd.f32 %v315_v45, %v312_v42  ;;  %v347_v60 = vadd.f32 %v346_v47, %v343_v46  ;;  %v462_v38 = vstv %s2398_s30 }
  0xf2   :  { %s3634_s10 = sld [smem:[#allocation22_spill]]  ;;  %v440_v45 = vadd.f32 %v439_v3, %v436_v58  ;;  %v509_v58 = vmul.f32 %v508_v20, %v2510_v59 }
  0xf3   :  { %s2488_s4 = sld [smem:[#allocation2 + $0x68]]  ;;  %v395_v44 = vstv %s3631_s25  ;;  %v378_v63 = vadd.f32 %v377_v52, %v374_v51  ;;  %v466_v51 = vmul.f32 %v465_v41, %v2485_v37  ;;  %v469_v52 = vstv %s2409_s3 }
  0xf4   :  { %3632 = sst [smem:[#allocation39_spill]] %s2476_s8  ;;  %v396_v57 = vmul.f32 %v395_v44, %v2485_v37 }
  0xf5   :  { %s3635_s6 = sld [smem:[#allocation44_spill]] }
  0xf6   :  { %3633 = sst [smem:[#allocation40_spill]] %s2481_s16  ;;  %v397_v4 = vadd.f32 %v396_v57, %v393_v56 }
  0xf7   :  { %s3636_s23 = sld [smem:[#allocation19_spill]] }
  0xf8   :  { %s2494_s21 = sld [smem:[#allocation2 + $0x69]]  ;;  %v349_v50 = vstv %s3634_s10  ;;  %v401_v18 = vadd.f32 %v400_v5, %v397_v4  ;;  %v504_v4 = vstv %s2450_s19 }
  0xf9   :  { %s3637_s12 = sld [smem:[#allocation48_spill]]  ;;  %v350_v61 = vmul.f32 %v349_v50, %v2305_v11  ;;  %v463_v50 = vmul.f32 %v462_v38, %v2483_v36  ;;  %v532_v7 = vstv %s2488_s4 }
  0xfa   :  { %s2498_s26 = sld [smem:[#allocation2 + $0x6a]]  ;;  %v405_v28 = vadd.f32 %v404_v19, %v401_v18  ;;  %v505_v18 = vmul.f32 %v504_v4, %v2490_v39 }
  0xfb   :  { %s2502_s16 = sld [smem:[#allocation2 + $0x6b]]  ;;  %v283_v54 = vstv %s3635_s6  ;;  %v351_v10 = vadd.f32 %v350_v61, %v347_v60  ;;  %v467_v60 = vadd.f32 %v466_v51, %v463_v50  ;;  %v470_v61 = vmul.f32 %v469_v52, %v2490_v39 }
  0xfc   :  { %s3638_s13 = sld [smem:[#allocation23_spill]]  ;;  %v284_v62 = vadd.f32 %v283_v54, %v281_v48  ;;  %v446_v48 = vstv %s2378_s18  ;;  %v497_v54 = vstv %s2441_s2 }
  0xfd   :  { %v380_v55 = vstv %s3636_s23  ;;  %s2508_s25 = sld [smem:[#allocation2 + $0x6c]] }
  0xfe   :  { %s2513_s10 = sld [smem:[#allocation2 + $0x6d]]  ;;  %v381_v0 = vmul.f32 %v380_v55, %v2291_v2  ;;  %v2539_v17 = vmax.f32 %v284_v62, 0.0  ;;  %v500_v55 = vstv %s2446_s27  ;;  %v473_v62 = vstv %s2413_s0 }
  0xff   :  { %v318_v16 = vstv %s3637_s12  ;;  %s3639_s6 = sld [smem:[#allocation16_spill]]  ;;  %v535_v8 = vstv %s2494_s21 }
 0x100   :  { %s2517_s23 = sld [smem:[#allocation2 + $0x6e]]  ;;  %v319_v9 = vadd.f32 %v318_v16, %v316_v53  ;;  %v382_v2 = vadd.f32 %v381_v0, %v378_v63  ;;  %v408_v29 = vmul.f32 %v407_v22, %v2539_v17  ;;  %v443_v46 = vmul.f32 %v442_v35, %v2539_v17 }
 0x101   :  { %s2521_s8 = sld [smem:[#allocation2 + $0x6f]]  ;;  %v450_v16 = vstv %s2383_s7  ;;  %v498_v63 = vmul.f32 %v497_v54, %v2483_v36  ;;  %v501_v0 = vmul.f32 %v500_v55, %v2485_v37  ;;  %v533_v22 = vmul.f32 %v532_v7, %v2483_v36 }
 0x102   :  { %v384_v1 = vstv %s3638_s13  ;;  %s2526_s29 = sld [smem:[#allocation6 + $0x14]]  ;;  %v2550_v23 = vmax.f32 %v319_v9, 0.0  ;;  %v409_v32 = vadd.f32 %v408_v29, %v405_v28  ;;  %v444_v57 = vadd.f32 %v443_v46, %v440_v45 }
 0x103   :  { %s2529_s12 = sld [smem:[#allocation2 + $0x70]]  ;;  %v385_v21 = vmul.f32 %v384_v1, %v2305_v11  ;;  %v502_v14 = vadd.f32 %v501_v0, %v498_v63  ;;  %v539_v25 = vstv %s2498_s26 }
 0x104   :  { %s3643_s28 = sld [smem:[#allocation29_spill]]  ;;  %v412_v34 = vmul.f32 %v411_v33, %v2550_v23  ;;  %v447_v15 = vmul.f32 %v446_v48, %v2550_v23 }
 0x105   :  { %v353_v12 = vstv %s3639_s6  ;;  %s2537_s17 = sld [smem:[#allocation2 + $0x72]]  ;;  %v386_v24 = vadd.f32 %v385_v21, %v382_v2  ;;  %v474_v2 = vmul.f32 %v473_v62, %v2510_v59 }
 0x106   :  { %3640 = sst [smem:[#allocation18_spill]] %s2517_s23  ;;  %v354_v11 = vadd.f32 %v353_v12, %v351_v10  ;;  %v413_v47 = vadd.f32 %v412_v34, %v409_v32  ;;  %v448_v5 = vadd.f32 %v447_v15, %v444_v57  ;;  %v471_v12 = vadd.f32 %v470_v61, %v467_v60 }
 0x107   :  { %3641 = sst [smem:[#allocation42_spill]] %s2521_s8  ;;  %v540_v34 = vmul.f32 %v539_v25, %v2490_v39 }
 0x108   :  { %3642 = sst [smem:[#allocation45_spill]] %s2526_s29  ;;  %v2563_v31 = vmax.f32 %v354_v11, 0.0  ;;  %v536_v11 = vmul.f32 %v535_v8, %v2485_v37  ;;  %v475_v29 = vadd.f32 %v474_v2, %v471_v12 }
 0x109   :  { %s2532_s23 = sld [smem:[#allocation2 + $0x71]]  ;;  %v567_v26 = vstv %s2529_s12 }
 0x10a   :  { %s2543_s5 = sld [smem:[#allocation2 + $0x73]]  ;;  %v388_v27 = vstv %s3643_s28  ;;  %v416_v43 = vmul.f32 %v415_v49, %v2563_v31  ;;  %v451_v6 = vmul.f32 %v450_v16, %v2563_v31  ;;  %v506_v49 = vadd.f32 %v505_v18, %v502_v14 }
 0x10b   :  { %s2546_s13 = sld [smem:[#allocation2 + $0x74]]  ;;  %v389_v40 = vadd.f32 %v388_v27, %v386_v24  ;;  %v537_v32 = vadd.f32 %v536_v11, %v533_v22  ;;  %v568_v35 = vmul.f32 %v567_v26, %v2483_v36  ;;  %v574_v45 = vstv %s2537_s17 }
 0x10c   :  { %s2548_s6 = sld [smem:[#allocation2 + $0x75]]  ;;  %v417_v53 = vadd.f32 %v416_v43, %v413_v47  ;;  %v452_v24 = vadd.f32 %v451_v6, %v448_v5  ;;  %v510_v52 = vadd.f32 %v509_v58, %v506_v49  ;;  %v547_v16 = vstv %s2508_s25 }
 0x10d   :  { %s2553_s29 = sld [smem:[#allocation2 + $0x76]]  ;;  %v2582_v44 = vmax.f32 %v389_v40, 0.0 }
 0x10e   :  { %s2558_s14 = sld [smem:[#allocation2 + $0x77]] }
 0x10f   :  { %s2561_s15 = sld [smem:[#allocation6 + $0x15]]  ;;  %v570_v27 = vstv %s2532_s23 }
 0x110   :  { %s2565_s8 = sld [smem:[#allocation2 + $0x78]]  ;;  %v571_v38 = vmul.f32 %v570_v27, %v2485_v37  ;;  %v578_v60 = vstv %s2543_s5 }
 0x111   :  { %s2569_s28 = sld [smem:[#allocation2 + $0x79]]  ;;  %v579_v2 = vmul.f32 %v578_v60, %v2510_v59 }
 0x112   :  { %3644 = sst [smem:[#allocation15_spill]] %s2548_s6  ;;  %v572_v15 = vadd.f32 %v571_v38, %v568_v35 }
 0x113   :  { %s3646_s6 = sld [smem:[#allocation36_spill]] }
 0x114   :  { %s2573_s24 = sld [smem:[#allocation2 + $0x7a]] }
 0x115   :  { %3645 = sst [smem:[#allocation35_spill]] %s2561_s15 }
 0x116   :  { %s2577_s9 = sld [smem:[#allocation2 + $0x7b]]  ;;  %v602_v48 = vstv %s2565_s8 }
 0x117   :  { %s2580_s20 = sld [smem:[#allocation2 + $0x7c]]  ;;  %v605_v50 = vstv %s2569_s28  ;;  %v603_v61 = vmul.f32 %v602_v48, %v2483_v36 }
 0x118   :  { %s2586_s1 = sld [smem:[#allocation2 + $0x7d]]  ;;  %v606_v62 = vmul.f32 %v605_v50, %v2485_v37 }
 0x119   :  { %v419_v42 = vstv %s3646_s6  ;;  %s2591_s30 = sld [smem:[#allocation2 + $0x7e]] }
 0x11a   :  { %s2594_s11 = sld [smem:[#allocation2 + $0x7f]]  ;;  %v420_v56 = vmul.f32 %v419_v42, %v2582_v44  ;;  %v543_v42 = vstv %s2502_s16  ;;  %v609_v4 = vstv %s2573_s24  ;;  %v607_v14 = vadd.f32 %v606_v62, %v603_v61 }
 0x11b   :  { %s3649_s6 = sld [smem:[#allocation30_spill]]  ;;  %v544_v57 = vmul.f32 %v543_v42, %v2510_v59  ;;  %v610_v18 = vmul.f32 %v609_v4, %v2490_v39 }
 0x11c   :  { %s2598_s15 = sld [smem:[#allocation6 + $0x16]]  ;;  %v421_v9 = vadd.f32 %v420_v56, %v417_v53  ;;  %v541_v56 = vadd.f32 %v540_v34, %v537_v32  ;;  %v575_v53 = vmul.f32 %v574_v45, %v2490_v39  ;;  %v613_v22 = vstv %s2577_s9 }
 0x11d   :  { %s2602_s18 = sld [smem:[#allocation2 + $0x80]]  ;;  %v611_v58 = vadd.f32 %v610_v18, %v607_v14  ;;  %v617_v34 = vstv %s2580_s20 }
 0x11e   :  { %s3651_s3 = sld [smem:[#allocation24_spill]]  ;;  %v576_v12 = vadd.f32 %v575_v53, %v572_v15 }
 0x11f   :  { %3647 = sst [smem:[#allocation43_spill]] %s2591_s30 }
 0x120   :  { %3648 = sst [smem:[#allocation46_spill]] %s2594_s11 }
 0x121   :  { %s2606_s2 = sld [smem:[#allocation2 + $0x81]]  ;;  %v454_v1 = vstv %s3649_s6 }
 0x122   :  { %3650 = sst [smem:[#allocation14_spill]] %s2598_s15  ;;  %v455_v21 = vmul.f32 %v454_v1, %v2582_v44 }
 0x123   :  { %s3652_s27 = sld [smem:[#allocation21_spill]]  ;;  %v637_v7 = vstv %s2602_s18 }
 0x124   :  { %s2611_s15 = sld [smem:[#allocation2 + $0x82]]  ;;  %v423_v10 = vstv %s3651_s3  ;;  %v2658_v41 = vadd.f32 %v455_v21, %v452_v24  ;;  %v551_v21 = vstv %s2513_s10  ;;  %v638_v11 = vmul.f32 %v637_v7, %v2483_v36 }
 0x125   :  { %s2615_s11 = sld [smem:[#allocation2 + $0x83]]  ;;  %v2642_v28 = vadd.f32 %v423_v10, %v421_v9  ;;  %v545_v9 = vadd.f32 %v544_v57, %v541_v56  ;;  %v548_v10 = vmul.f32 %v547_v16, %v2539_v17  ;;  %v621_v57 = vstv %s2586_s1 }
 0x126   :  { %s3653_s30 = sld [smem:[#allocation25_spill]]  ;;  %v622_v4 = vmul.f32 %v621_v57, %v2550_v23 }
 0x127   :  { %s2620_s7 = sld [smem:[#allocation2 + $0x84]]  ;;  %v640_v8 = vstv %s2606_s2  ;;  %v2749_v16 = vmax.f32 %v2642_v28, 0.0  ;;  %v594_v28 = vstv %s2558_s14 }
 0x128   :  { %s2624_s0 = sld [smem:[#allocation2 + $0x85]]  ;;  %v641_v24 = vmul.f32 %v640_v8, %v2485_v37  ;;  %v595_v18 = vmul.f32 %v594_v28, %v2582_v44 }
 0x129   :  { %v477_v13 = vstv %s3652_s27  ;;  %s3654_s19 = sld [smem:[#allocation31_spill]] }
 0x12a   :  { %s2629_s4 = sld [smem:[#allocation2 + $0x86]]  ;;  %v478_v30 = vmul.f32 %v477_v13, %v2539_v17  ;;  %v582_v13 = vstv %s2546_s13  ;;  %v642_v35 = vadd.f32 %v641_v24, %v638_v11 }
 0x12b   :  { %s3655_s21 = sld [smem:[#allocation32_spill]]  ;;  %v583_v36 = vmul.f32 %v582_v13, %v2539_v17 }
 0x12c   :  { %v458_v19 = vstv %s3653_s30  ;;  %s3656_s6 = sld [smem:[#allocation37_spill]]  ;;  %v479_v46 = vadd.f32 %v478_v30, %v475_v29  ;;  %v644_v29 = vstv %s2611_s15  ;;  %v549_v30 = vadd.f32 %v548_v10, %v545_v9 }
 0x12d   :  { %s2635_s3 = sld [smem:[#allocation2 + $0x87]]  ;;  %v645_v38 = vmul.f32 %v644_v29, %v2490_v39  ;;  %v459_v56 = vadd.f32 %v458_v19, %v2658_v41  ;;  %v652_v62 = vstv %s2620_s7 }
 0x12e   :  { %s2640_s27 = sld [smem:[#allocation6 + $0x17]]  ;;  %v653_v8 = vmul.f32 %v652_v62, %v2539_v17  ;;  %v656_v10 = vstv %s2624_s0 }
 0x12f   :  { %v481_v33 = vstv %s3654_s19  ;;  %s2646_s22 = sld [smem:[#allocation2 + $0x88]]  ;;  %v646_v15 = vadd.f32 %v645_v38, %v642_v35 }
 0x130   :  { %s2651_s26 = sld [smem:[#allocation2 + $0x89]]  ;;  %v482_v43 = vmul.f32 %v481_v33, %v2550_v23  ;;  %v552_v33 = vmul.f32 %v551_v21, %v2550_v23  ;;  %v660_v29 = vstv %s2629_s4 }
 0x131   :  { %v485_v40 = vstv %s3655_s21  ;;  %s3658_s23 = sld [smem:[#allocation26_spill]] }
 0x132   :  { %v512_v3 = vstv %s3656_s6  ;;  %s3659_s12 = sld [smem:[#allocation34_spill]]  ;;  %v486_v47 = vmul.f32 %v485_v40, %v2563_v31  ;;  %v483_v63 = vadd.f32 %v482_v43, %v479_v46  ;;  %v580_v40 = vadd.f32 %v579_v2, %v576_v12 }
 0x133   :  { %s2656_s19 = sld [smem:[#allocation2 + $0x8a]]  ;;  %v513_v54 = vmul.f32 %v512_v3, %v2539_v17  ;;  %v614_v3 = vmul.f32 %v613_v22, %v2510_v59  ;;  %v648_v46 = vstv %s2615_s11 }
 0x134   :  { %3657 = sst [smem:[#allocation41_spill]] %s2640_s27  ;;  %v487_v20 = vadd.f32 %v486_v47, %v483_v63  ;;  %v553_v47 = vadd.f32 %v552_v33, %v549_v30  ;;  %v584_v50 = vadd.f32 %v583_v36, %v580_v40  ;;  %v649_v53 = vmul.f32 %v648_v46, %v2510_v59 }
 0x135   :  { %s2663_s21 = sld [smem:[#allocation2 + $0x8b]]  ;;  %v514_v5 = vadd.f32 %v513_v54, %v510_v52  ;;  %v590_v52 = vstv %s2553_s29  ;;  %v615_v54 = vadd.f32 %v614_v3, %v611_v58  ;;  %v672_v12 = vstv %s2646_s22 }
 0x136   :  { %s2668_s6 = sld [smem:[#allocation2 + $0x8c]]  ;;  %v591_v59 = vmul.f32 %v590_v52, %v2563_v31  ;;  %v650_v7 = vadd.f32 %v649_v53, %v646_v15  ;;  %v675_v2 = vstv %s2651_s26 }
 0x137   :  { %v489_v51 = vstv %s3658_s23  ;;  %s2673_s27 = sld [smem:[#allocation2 + $0x8d]] }
 0x138   :  { %v516_v55 = vstv %s3659_s12  ;;  %s3660_s16 = sld [smem:[#allocation38_spill]]  ;;  %v490_v0 = vmul.f32 %v489_v51, %v2582_v44  ;;  %v654_v24 = vadd.f32 %v653_v8, %v650_v7 }
 0x139   :  { %s2677_s8 = sld [smem:[#allocation2 + $0x8e]]  ;;  %v517_v1 = vmul.f32 %v516_v55, %v2550_v23  ;;  %v618_v55 = vmul.f32 %v617_v34, %v2539_v17  ;;  %v679_v30 = vstv %s2656_s19  ;;  %v661_v34 = vmul.f32 %v660_v29, %v2563_v31 }
 0x13a   :  { %s2683_s17 = sld [smem:[#allocation2 + $0x8f]]  ;;  %v491_v43 = vadd.f32 %v490_v0, %v487_v20 }
 0x13b   :  { %s2688_s28 = sld [smem:[#allocation6 + $0x18]]  ;;  %v518_v25 = vadd.f32 %v517_v1, %v514_v5  ;;  %v619_v1 = vadd.f32 %v618_v55, %v615_v54  ;;  %v2763_v5 = vmax.f32 %v459_v56, 0.0 }
 0x13c   :  { %s2693_s25 = sld [smem:[#allocation2 + $0x90]]  ;;  %v687_v56 = vstv %s2668_s6 }
 0x13d   :  { %s3662_s5 = sld [smem:[#allocation39_spill]]  ;;  %v623_v17 = vadd.f32 %v622_v4, %v619_v1 }
 0x13e   :  { %v520_v6 = vstv %s3660_s16  ;;  %s2697_s23 = sld [smem:[#allocation2 + $0x91]] }
 0x13f   :  { %s2702_s24 = sld [smem:[#allocation2 + $0x92]]  ;;  %v521_v26 = vmul.f32 %v520_v6, %v2563_v31 }
 0x140   :  { %s3663_s18 = sld [smem:[#allocation18_spill]] }
 0x141   :  { %3661 = sst [smem:[#allocation27_spill]] %s2688_s28  ;;  %v522_v42 = vadd.f32 %v521_v26, %v518_v25  ;;  %v657_v25 = vmul.f32 %v656_v10, %v2550_v23  ;;  %v673_v26 = vmul.f32 %v672_v12, %v2749_v16  ;;  %v695_v12 = vstv %s2677_s8 }
 0x142   :  { %s3664_s2 = sld [smem:[#allocation15_spill]]  ;;  %v707_v58 = vstv %s2693_s25 }
 0x143   :  { %s2707_s12 = sld [smem:[#allocation2 + $0x93]]  ;;  %v524_v27 = vstv %s3662_s5  ;;  %v708_v46 = vmul.f32 %v707_v58, %v2749_v16 }
 0x144   :  { %s3665_s16 = sld [smem:[#allocation33_spill]]  ;;  %v525_v45 = vmul.f32 %v524_v27, %v2582_v44  ;;  %v676_v27 = vmul.f32 %v675_v2, %v2763_v5  ;;  %v710_v3 = vstv %s2697_s23 }
 0x145   :  { %s2712_s10 = sld [smem:[#allocation2 + $0x94]] }
 0x146   :  { %s2716_s13 = sld [smem:[#allocation2 + $0x95]]  ;;  %v555_v37 = vstv %s3663_s18  ;;  %v526_v61 = vadd.f32 %v525_v45, %v522_v42  ;;  %v677_v35 = vadd.f32 %v676_v27, %v673_v26  ;;  %v683_v42 = vstv %s2663_s21 }
 0x147   :  { %s2721_s9 = sld [smem:[#allocation2 + $0x96]]  ;;  %v556_v48 = vmul.f32 %v555_v37, %v2563_v31 }
 0x148   :  { %v586_v49 = vstv %s3664_s2  ;;  %s3666_s5 = sld [smem:[#allocation42_spill]] }
 0x149   :  { %s2726_s15 = sld [smem:[#allocation2 + $0x97]]  ;;  %v587_v51 = vmul.f32 %v586_v49, %v2550_v23  ;;  %v557_v63 = vadd.f32 %v556_v48, %v553_v47  ;;  %v711_v47 = vmul.f32 %v710_v3, %v2763_v5 }
 0x14a   :  { %v493_v32 = vstv %s3665_s16  ;;  %s2730_s18 = sld [smem:[#allocation6 + $0x19]] }
 0x14b   :  { %s2734_s20 = sld [smem:[#allocation2 + $0x98]]  ;;  %v494_v60 = vadd.f32 %v493_v32, %v491_v43  ;;  %v588_v41 = vadd.f32 %v587_v51, %v584_v50  ;;  %v658_v32 = vadd.f32 %v657_v25, %v654_v24  ;;  %v664_v43 = vstv %s2635_s3 }
 0x14c   :  { %s2739_s2 = sld [smem:[#allocation2 + $0x99]]  ;;  %v714_v51 = vstv %s2702_s24  ;;  %v665_v52 = vmul.f32 %v664_v43, %v2582_v44  ;;  %v712_v57 = vadd.f32 %v711_v47, %v708_v46  ;;  %v722_v4 = vstv %s2712_s10 }
 0x14d   :  { %s3668_s11 = sld [smem:[#allocation40_spill]]  ;;  %v2769_v9 = vmax.f32 %v494_v60, 0.0  ;;  %v592_v14 = vadd.f32 %v591_v59, %v588_v41  ;;  %v699_v24 = vstv %s2683_s17  ;;  %v730_v27 = vstv %s2721_s9 }
 0x14e   :  { %v559_v39 = vstv %s3666_s5  ;;  %s2746_s16 = sld [smem:[#allocation2 + $0x9a]] }
 0x14f   :  { %s3669_s29 = sld [smem:[#allocation43_spill]]  ;;  %v560_v19 = vmul.f32 %v559_v39, %v2582_v44  ;;  %v596_v36 = vadd.f32 %v595_v18, %v592_v14  ;;  %v680_v38 = vmul.f32 %v679_v30, %v2769_v9  ;;  %v662_v39 = vadd.f32 %v661_v34, %v658_v32 }
 0x150   :  { %3667 = sst [smem:[#allocation47_spill]] %s2730_s18  ;;  %v715_v15 = vmul.f32 %v714_v51, %v2769_v9  ;;  %v734_v58 = vstv %s2726_s15 }
 0x151   :  { %s2752_s5 = sld [smem:[#allocation2 + $0x9b]]  ;;  %v561_v13 = vadd.f32 %v560_v19, %v557_v63  ;;  %v681_v54 = vadd.f32 %v680_v38, %v677_v35  ;;  %v691_v19 = vstv %s2673_s27  ;;  %v742_v8 = vstv %s2734_s20 }
 0x152   :  { %s2756_s1 = sld [smem:[#allocation2 + $0x9c]]  ;;  %v716_v59 = vadd.f32 %v715_v15, %v712_v57  ;;  %v745_v10 = vstv %s2739_s2  ;;  %v743_v14 = vmul.f32 %v742_v8, %v2749_v16 }
 0x153   :  { %v528_v0 = vstv %s3668_s11  ;;  %s2761_s30 = sld [smem:[#allocation2 + $0x9d]]  ;;  %v746_v18 = vmul.f32 %v745_v10, %v2763_v5 }
 0x154   :  { %s3670_s7 = sld [smem:[#allocation45_spill]]  ;;  %v529_v21 = vadd.f32 %v528_v0, %v526_v61  ;;  %v666_v61 = vadd.f32 %v665_v52, %v662_v39 }
 0x155   :  { %v625_v6 = vstv %s3669_s29  ;;  %s3671_s18 = sld [smem:[#allocation46_spill]]  ;;  %v747_v29 = vadd.f32 %v746_v18, %v743_v14 }
 0x156   :  { %s2767_s28 = sld [smem:[#allocation2 + $0x9e]]  ;;  %v626_v22 = vmul.f32 %v625_v6, %v2563_v31  ;;  %v2793_v33 = vmax.f32 %v529_v21, 0.0 }
 0x157   :  { %s2774_s14 = sld [smem:[#allocation2 + $0x9f]] }
 0x158   :  { %s2777_s11 = sld [smem:[#allocation6 + $0x1a]]  ;;  %v627_v23 = vadd.f32 %v626_v22, %v623_v17  ;;  %v684_v55 = vmul.f32 %v683_v42, %v2793_v33  ;;  %v757_v47 = vstv %s2756_s1 }
 0x159   :  { %s3673_s29 = sld [smem:[#allocation35_spill]] }
 0x15a   :  { %v563_v20 = vstv %s3670_s7  ;;  %s2782_s0 = sld [smem:[#allocation2 + $0xa0]]  ;;  %v685_v62 = vadd.f32 %v684_v55, %v681_v54 }
 0x15b   :  { %v629_v11 = vstv %s3671_s18  ;;  %s2787_s22 = sld [smem:[#allocation2 + $0xa1]]  ;;  %v564_v40 = vadd.f32 %v563_v20, %v561_v13  ;;  %v726_v13 = vstv %s2716_s13 }
 0x15c   :  { %s2791_s26 = sld [smem:[#allocation2 + $0xa2]]  ;;  %v630_v49 = vmul.f32 %v629_v11, %v2582_v44  ;;  %v718_v44 = vstv %s2707_s12  ;;  %v749_v11 = vstv %s2746_s16 }
 0x15d   :  { %s2796_s18 = sld [smem:[#allocation2 + $0xa3]]  ;;  %v2811_v45 = vmax.f32 %v564_v40, 0.0  ;;  %v719_v0 = vmul.f32 %v718_v44, %v2793_v33  ;;  %v750_v30 = vmul.f32 %v749_v11, %v2769_v9  ;;  %v769_v10 = vstv %s2774_s14 }
 0x15e   :  { %3672 = sst [smem:[#allocation17_spill]] %s2777_s11  ;;  %v631_v31 = vadd.f32 %v630_v49, %v627_v23 }
 0x15f   :  { %v598_v37 = vstv %s3673_s29  ;;  %s3674_s7 = sld [smem:[#allocation14_spill]]  ;;  %v688_v63 = vmul.f32 %v687_v56, %v2811_v45  ;;  %v720_v2 = vadd.f32 %v719_v0, %v716_v59  ;;  %v723_v21 = vmul.f32 %v722_v4, %v2811_v45 }
 0x160   :  { %s2801_s11 = sld [smem:[#allocation2 + $0xa4]]  ;;  %v599_v48 = vadd.f32 %v598_v37, %v596_v36  ;;  %v753_v37 = vstv %s2752_s5  ;;  %v777_v3 = vstv %s2782_s0  ;;  %v751_v34 = vadd.f32 %v750_v30, %v747_v29 }
 0x161   :  { %s2805_s4 = sld [smem:[#allocation2 + $0xa5]]  ;;  %v689_v7 = vadd.f32 %v688_v63, %v685_v62  ;;  %v724_v25 = vadd.f32 %v723_v21, %v720_v2  ;;  %v780_v32 = vstv %s2787_s22  ;;  %v754_v35 = vmul.f32 %v753_v37, %v2793_v33 }
 0x162   :  { %s2809_s19 = sld [smem:[#allocation2 + $0xa6]]  ;;  %v2831_v53 = vmax.f32 %v599_v48, 0.0  ;;  %v781_v51 = vmul.f32 %v780_v32, %v2763_v5  ;;  %v784_v52 = vstv %s2791_s26  ;;  %v758_v57 = vmul.f32 %v757_v47, %v2811_v45 }
 0x163   :  { %s2815_s25 = sld [smem:[#allocation2 + $0xa7]]  ;;  %v755_v56 = vadd.f32 %v754_v35, %v751_v34  ;;  %v765_v62 = vstv %s2767_s28 }
 0x164   :  { %s2819_s23 = sld [smem:[#allocation6 + $0x1b]]  ;;  %v692_v1 = vmul.f32 %v691_v19, %v2831_v53  ;;  %v727_v26 = vmul.f32 %v726_v13, %v2831_v53  ;;  %v785_v19 = vmul.f32 %v784_v52, %v2769_v9 }
 0x165   :  { %v633_v50 = vstv %s3674_s7  ;;  %s3677_s3 = sld [smem:[#allocation41_spill]] }
 0x166   :  { %s2823_s21 = sld [smem:[#allocation2 + $0xa8]]  ;;  %v634_v60 = vadd.f32 %v633_v50, %v631_v31  ;;  %v693_v17 = vadd.f32 %v692_v1, %v689_v7  ;;  %v728_v49 = vadd.f32 %v727_v26, %v724_v25  ;;  %v761_v31 = vstv %s2761_s30 }
 0x167   :  { %s2826_s29 = sld [smem:[#allocation2 + $0xa9]]  ;;  %v778_v50 = vmul.f32 %v777_v3, %v2749_v16  ;;  %v788_v1 = vstv %s2796_s18  ;;  %v759_v7 = vadd.f32 %v758_v57, %v755_v56  ;;  %v796_v32 = vstv %s2805_s4 }
 0x168   :  { %s2829_s7 = sld [smem:[#allocation2 + $0xaa]]  ;;  %v2846_v28 = vmax.f32 %v634_v60, 0.0  ;;  %v797_v57 = vmul.f32 %v796_v32, %v2831_v53 }
 0x169   :  { %3675 = sst [smem:[#allocation28_spill]] %s2815_s25  ;;  %v782_v63 = vadd.f32 %v781_v51, %v778_v50 }
 0x16a   :  { %3676 = sst [smem:[#allocation20_spill]] %s2819_s23  ;;  %v696_v22 = vmul.f32 %v695_v12, %v2846_v28  ;;  %v731_v23 = vmul.f32 %v730_v27, %v2846_v28  ;;  %v766_v8 = vmul.f32 %v765_v62, %v2846_v28 }
 0x16b   :  { %s2834_s24 = sld [smem:[#allocation2 + $0xab]]  ;;  %v668_v41 = vstv %s3677_s3  ;;  %v786_v18 = vadd.f32 %v785_v19, %v782_v63 }
 0x16c   :  { %s2838_s6 = sld [smem:[#allocation2 + $0xac]]  ;;  %v669_v6 = vadd.f32 %v668_v41, %v666_v61  ;;  %v697_v40 = vadd.f32 %v696_v22, %v693_v17  ;;  %v812_v38 = vstv %s2823_s21  ;;  %v732_v39 = vadd.f32 %v731_v23, %v728_v49 }
 0x16d   :  { %s2841_s23 = sld [smem:[#allocation2 + $0xad]]  ;;  %v815_v43 = vstv %s2826_s29  ;;  %v813_v54 = vmul.f32 %v812_v38, %v2749_v16  ;;  %v762_v61 = vmul.f32 %v761_v31, %v2831_v53  ;;  %v789_v17 = vmul.f32 %v788_v1, %v2793_v33 }
 0x16e   :  { %s2844_s12 = sld [smem:[#allocation2 + $0xae]]  ;;  %v2867_v20 = vmax.f32 %v669_v6, 0.0  ;;  %v816_v55 = vmul.f32 %v815_v43, %v2763_v5  ;;  %v819_v15 = vstv %s2829_s7  ;;  %v792_v22 = vstv %s2801_s11 }
 0x16f   :  { %s2850_s25 = sld [smem:[#allocation2 + $0xaf]]  ;;  %v820_v6 = vmul.f32 %v819_v15, %v2769_v9  ;;  %v763_v29 = vadd.f32 %v762_v61, %v759_v7  ;;  %v793_v37 = vmul.f32 %v792_v22, %v2811_v45  ;;  %v790_v3 = vadd.f32 %v789_v17, %v786_v18 }
 0x170   :  { %s2854_s27 = sld [smem:[#allocation6 + $0x1c]]  ;;  %v700_v36 = vmul.f32 %v699_v24, %v2867_v20  ;;  %v735_v48 = vmul.f32 %v734_v58, %v2867_v20  ;;  %v817_v4 = vadd.f32 %v816_v55, %v813_v54  ;;  %v770_v24 = vmul.f32 %v769_v10, %v2867_v20 }
 0x171   :  { %s2857_s3 = sld [smem:[#allocation2 + $0xb0]]  ;;  %v823_v12 = vstv %s2834_s24  ;;  %v767_v55 = vadd.f32 %v766_v8, %v763_v29  ;;  %v794_v56 = vadd.f32 %v793_v37, %v790_v3 }
 0x172   :  { %s2865_s10 = sld [smem:[#allocation2 + $0xb2]]  ;;  %v701_v42 = vadd.f32 %v700_v36, %v697_v40  ;;  %v2931_v0 = vadd.f32 %v735_v48, %v732_v39  ;;  %v821_v26 = vadd.f32 %v820_v6, %v817_v4  ;;  %v824_v27 = vmul.f32 %v823_v12, %v2793_v33 }
 0x173   :  { %s2871_s8 = sld [smem:[#allocation2 + $0xb3]]  ;;  %v827_v30 = vstv %s2838_s6  ;;  %v771_v8 = vadd.f32 %v770_v24, %v767_v55  ;;  %v798_v10 = vadd.f32 %v797_v57, %v794_v56 }
 0x174   :  { %3678 = sst [smem:[#allocation22_spill]] %s2844_s12  ;;  %v825_v38 = vadd.f32 %v824_v27, %v821_v26  ;;  %v828_v43 = vmul.f32 %v827_v30, %v2811_v45 }
 0x175   :  { %s2860_s12 = sld [smem:[#allocation2 + $0xb1]] }
 0x176   :  { %3679 = sst [smem:[#allocation44_spill]] %s2854_s27 }
 0x177   :  { %s2874_s20 = sld [smem:[#allocation2 + $0xb4]]  ;;  %v847_v41 = vstv %s2857_s3 }
 0x178   :  { %s2878_s13 = sld [smem:[#allocation2 + $0xb5]]  ;;  %v848_v2 = vmul.f32 %v847_v41, %v2749_v16  ;;  %v854_v11 = vstv %s2865_s10 }
 0x179   :  { %s2881_s2 = sld [smem:[#allocation2 + $0xb6]]  ;;  %v855_v49 = vmul.f32 %v854_v11, %v2769_v9  ;;  %v858_v34 = vstv %s2871_s8 }
 0x17a   :  { %s3680_s17 = sld [smem:[#allocation27_spill]]  ;;  %v859_v39 = vmul.f32 %v858_v34, %v2793_v33 }
 0x17b   :  { %s2885_s16 = sld [smem:[#allocation2 + $0xb7]]  ;;  %v850_v59 = vstv %s2860_s12 }
 0x17c   :  { %s2888_s9 = sld [smem:[#allocation6 + $0x1d]]  ;;  %v851_v21 = vmul.f32 %v850_v59, %v2763_v5 }
 0x17d   :  { %s2893_s27 = sld [smem:[#allocation2 + $0xb8]]  ;;  %v862_v15 = vstv %s2874_s20 }
 0x17e   :  { %s2898_s5 = sld [smem:[#allocation2 + $0xb9]]  ;;  %v852_v23 = vadd.f32 %v851_v21, %v848_v2  ;;  %v863_v4 = vmul.f32 %v862_v15, %v2811_v45  ;;  %v866_v2 = vstv %s2878_s13 }
 0x17f   :  { %s3682_s15 = sld [smem:[#allocation47_spill]]  ;;  %v867_v26 = vmul.f32 %v866_v2, %v2831_v53  ;;  %v870_v37 = vstv %s2881_s2 }
 0x180   :  { %v703_v46 = vstv %s3680_s17  ;;  %s2908_s0 = sld [smem:[#allocation2 + $0xbb]]  ;;  %v856_v51 = vadd.f32 %v855_v49, %v852_v23 }
 0x181   :  { %s2913_s1 = sld [smem:[#allocation2 + $0xbc]]  ;;  %v2919_v60 = vadd.f32 %v703_v46, %v701_v42  ;;  %v831_v42 = vstv %s2841_s23 }
 0x182   :  { %3681 = sst [smem:[#allocation19_spill]] %s2888_s9  ;;  %v832_v61 = vmul.f32 %v831_v42, %v2831_v53  ;;  %v860_v1 = vadd.f32 %v859_v39, %v856_v51 }
 0x183   :  { %s2902_s9 = sld [smem:[#allocation2 + $0xba]]  ;;  %v882_v13 = vstv %s2893_s27 }
 0x184   :  { %s2917_s30 = sld [smem:[#allocation2 + $0xbd]]  ;;  %v885_v14 = vstv %s2898_s5  ;;  %v883_v40 = vmul.f32 %v882_v13, %v2749_v16  ;;  %v864_v24 = vadd.f32 %v863_v4, %v860_v1 }
 0x185   :  { %v738_v44 = vstv %s3682_s15  ;;  %s2924_s22 = sld [smem:[#allocation2 + $0xbe]]  ;;  %v886_v36 = vmul.f32 %v885_v14, %v2763_v5  ;;  %v839_v14 = vstv %s2850_s25 }
 0x186   :  { %s2929_s26 = sld [smem:[#allocation2 + $0xbf]]  ;;  %v893_v52 = vstv %s2908_s0  ;;  %v739_v30 = vadd.f32 %v738_v44, %v2931_v0 }
 0x187   :  { %s2935_s28 = sld [smem:[#allocation6 + $0x1e]]  ;;  %v887_v47 = vadd.f32 %v886_v36, %v883_v40  ;;  %v894_v19 = vmul.f32 %v893_v52, %v2793_v33  ;;  %v897_v6 = vstv %s2913_s1 }
 0x188   :  { %s3683_s21 = sld [smem:[#allocation17_spill]]  ;;  %v898_v17 = vmul.f32 %v897_v6, %v2811_v45 }
 0x189   :  { %s2940_s29 = sld [smem:[#allocation2 + $0xc0]]  ;;  %v889_v58 = vstv %s2902_s9 }
 0x18a   :  { %s2946_s18 = sld [smem:[#allocation2 + $0xc1]]  ;;  %v890_v48 = vmul.f32 %v889_v58, %v2769_v9  ;;  %v901_v27 = vstv %s2917_s30  ;;  %v840_v58 = vmul.f32 %v839_v14, %v2867_v20 }
 0x18b   :  { %s2951_s7 = sld [smem:[#allocation2 + $0xc2]]  ;;  %v902_v0 = vmul.f32 %v901_v27, %v2831_v53  ;;  %v905_v34 = vstv %s2924_s22 }
 0x18c   :  { %s2956_s14 = sld [smem:[#allocation2 + $0xc3]]  ;;  %v891_v63 = vadd.f32 %v890_v48, %v887_v47  ;;  %v906_v51 = vmul.f32 %v905_v34, %v2846_v28  ;;  %v909_v56 = vstv %s2929_s26 }
 0x18d   :  { %s2961_s11 = sld [smem:[#allocation2 + $0xc4]]  ;;  %v913_v14 = vstv %s2935_s28 }
 0x18e   :  { %v773_v25 = vstv %s3683_s21  ;;  %s2966_s24 = sld [smem:[#allocation2 + $0xc5]]  ;;  %v895_v18 = vadd.f32 %v894_v19, %v891_v63  ;;  %v910_v63 = vmul.f32 %v909_v56, %v2867_v20 }
 0x18f   :  { %v917_v35 = vstv %s2940_s29  ;;  %s2971_s6 = sld [smem:[#allocation2 + $0xc6]]  ;;  %v774_v23 = vadd.f32 %v773_v25, %v771_v8  ;;  %v871_v25 = vmul.f32 %v870_v37, %v2846_v28 }
 0x190   :  { %v920_v46 = vstv %s2946_s18  ;;  %s2976_s12 = sld [smem:[#allocation2 + $0xc7]]  ;;  %v918_v31 = vmul.f32 %v917_v35, %v2749_v16  ;;  %v800_v16 = vstv %s2809_s19  ;;  %v899_v44 = vadd.f32 %v898_v17, %v895_v18 }
 0x191   :  { %s3684_s4 = sld [smem:[#allocation22_spill]]  ;;  %v921_v50 = vmul.f32 %v920_v46, %v2763_v5  ;;  %v924_v54 = vstv %s2951_s7  ;;  %v829_v5 = vadd.f32 %v828_v43, %v825_v38  ;;  %v801_v12 = vmul.f32 %v800_v16, %v2846_v28 }
 0x192   :  { %s2981_s27 = sld [smem:[#allocation6 + $0x1f]]  ;;  %v925_v59 = vmul.f32 %v924_v54, %v2769_v9  ;;  %v928_v7 = vstv %s2956_s14  ;;  %v3048_v38 = vmax.f32 %v739_v30, 0.0  ;;  %v874_v46 = vstv %s2885_s16 }
 0x193   :  { %s2986_s23 = sld [smem:[#allocation2 + $0xc8]]  ;;  %v922_v41 = vadd.f32 %v921_v50, %v918_v31  ;;  %v833_v21 = vadd.f32 %v832_v61, %v829_v5  ;;  %v929_v11 = vmul.f32 %v928_v7, %v2793_v33  ;;  %v932_v29 = vstv %s2961_s11 }
 0x194   :  { %s2990_s3 = sld [smem:[#allocation2 + $0xc9]]  ;;  %v802_v40 = vadd.f32 %v801_v12, %v798_v10  ;;  %v3032_v33 = vmax.f32 %v2919_v60, 0.0  ;;  %v933_v32 = vmul.f32 %v932_v29, %v2811_v45  ;;  %v868_v60 = vadd.f32 %v867_v26, %v864_v24 }
 0x195   :  { %s2995_s10 = sld [smem:[#allocation2 + $0xca]]  ;;  %v926_v22 = vadd.f32 %v925_v59, %v922_v41  ;;  %v936_v35 = vstv %s2966_s24  ;;  %v3054_v47 = vmax.f32 %v774_v23, 0.0  ;;  %v903_v50 = vadd.f32 %v902_v0, %v899_v44 }
 0x196   :  { %s3685_s8 = sld [smem:[#allocation28_spill]]  ;;  %v937_v52 = vmul.f32 %v936_v35, %v2831_v53  ;;  %v872_v54 = vadd.f32 %v871_v25, %v868_v60  ;;  %v875_v55 = vmul.f32 %v874_v46, %v2867_v20  ;;  %v940_v57 = vstv %s2971_s6 }
 0x197   :  { %v835_v62 = vstv %s3684_s4  ;;  %s2999_s17 = sld [smem:[#allocation2 + $0xcb]]  ;;  %v930_v3 = vadd.f32 %v929_v11, %v926_v22  ;;  %v941_v41 = vmul.f32 %v940_v57, %v2846_v28  ;;  %v944_v4 = vstv %s2976_s12 }
 0x198   :  { %s3004_s19 = sld [smem:[#allocation2 + $0xcc]]  ;;  %v836_v13 = vmul.f32 %v835_v62, %v2846_v28  ;;  %v907_v62 = vadd.f32 %v906_v51, %v903_v50  ;;  %v876_v1 = vadd.f32 %v875_v55, %v872_v54  ;;  %v948_v29 = vstv %s2981_s27 }
 0x199   :  { %s3008_s20 = sld [smem:[#allocation2 + $0xcd]]  ;;  %v952_v48 = vstv %s2986_s23  ;;  %v934_v39 = vadd.f32 %v933_v32, %v930_v3 }
 0x19a   :  { %s3013_s9 = sld [smem:[#allocation2 + $0xce]]  ;;  %v837_v49 = vadd.f32 %v836_v13, %v833_v21  ;;  %v955_v31 = vstv %s2990_s3  ;;  %v953_v5 = vmul.f32 %v952_v48, %v3032_v33  ;;  %v911_v12 = vadd.f32 %v910_v63, %v907_v62 }
 0x19b   :  { %s3017_s5 = sld [smem:[#allocation2 + $0xcf]]  ;;  %v956_v61 = vmul.f32 %v955_v31, %v3048_v38  ;;  %v959_v53 = vstv %s2995_s10  ;;  %v938_v19 = vadd.f32 %v937_v52, %v934_v39 }
 0x19c   :  { %v804_v9 = vstv %s3685_s8  ;;  %s3022_s13 = sld [smem:[#allocation6 + $0x20]]  ;;  %v841_v45 = vadd.f32 %v840_v58, %v837_v49  ;;  %v960_v10 = vmul.f32 %v959_v53, %v3054_v47  ;;  %v914_v24 = vadd.f32 %v913_v14, %v911_v12 }
 0x19d   :  { %v805_v36 = vmul.f32 %v804_v9, %v2867_v20  ;;  %s3029_s25 = sld [smem:[#allocation2 + $0xd0]]  ;;  %v957_v8 = vadd.f32 %v956_v61, %v953_v5  ;;  %v963_v28 = vstv %s2999_s17  ;;  %v942_v2 = vadd.f32 %v941_v41, %v938_v19 }
 0x19e   :  { %s3686_s0 = sld [smem:[#allocation20_spill]]  ;;  %v945_v9 = vmul.f32 %v944_v4, %v2867_v20  ;;  %v967_v20 = vstv %s3004_s19  ;;  %v3127_v0 = vmax.f32 %v914_v24, 0.0 }
 0x19f   :  { %s3037_s15 = sld [smem:[#allocation2 + $0xd1]]  ;;  %v806_v43 = vadd.f32 %v805_v36, %v802_v40  ;;  %v961_v18 = vadd.f32 %v960_v10, %v957_v8  ;;  %v971_v23 = vstv %s3008_s20 }
 0x1a0   :  { %s3041_s2 = sld [smem:[#allocation2 + $0xd2]]  ;;  %v946_v26 = vadd.f32 %v945_v9, %v942_v2  ;;  %v975_v60 = vstv %s3013_s9 }
 0x1a1   :  { %s3046_s1 = sld [smem:[#allocation2 + $0xd3]]  ;;  %v976_v31 = vmul.f32 %v975_v60, %v3127_v0  ;;  %v979_v50 = vstv %s3017_s5 }
 0x1a2   :  { %s3052_s30 = sld [smem:[#allocation2 + $0xd4]]  ;;  %v949_v3 = vadd.f32 %v948_v29, %v946_v26  ;;  %v983_v29 = vstv %s3022_s13 }
 0x1a3   :  { %s3687_s21 = sld [smem:[#allocation44_spill]]  ;;  %v987_v22 = vstv %s3029_s25 }
 0x1a4   :  { %v808_v42 = vstv %s3686_s0  ;;  %s3058_s29 = sld [smem:[#allocation2 + $0xd5]]  ;;  %v988_v30 = vmul.f32 %v987_v22, %v3032_v33  ;;  %v3144_v48 = vmax.f32 %v949_v3, 0.0 }
 0x1a5   :  { %s3062_s22 = sld [smem:[#allocation2 + $0xd6]]  ;;  %v809_v15 = vadd.f32 %v808_v42, %v806_v43  ;;  %v990_v11 = vstv %s3037_s15 }
 0x1a6   :  { %s3067_s16 = sld [smem:[#allocation2 + $0xd7]]  ;;  %v991_v40 = vmul.f32 %v990_v11, %v3048_v38  ;;  %v994_v49 = vstv %s3041_s2  ;;  %v980_v53 = vmul.f32 %v979_v50, %v3144_v48 }
 0x1a7   :  { %s3688_s18 = sld [smem:[#allocation19_spill]]  ;;  %v3084_v6 = vmax.f32 %v809_v15, 0.0  ;;  %v995_v34 = vmul.f32 %v994_v49, %v3054_v47  ;;  %v998_v43 = vstv %s3046_s1 }
 0x1a8   :  { %s3072_s7 = sld [smem:[#allocation6 + $0x21]]  ;;  %v992_v25 = vadd.f32 %v991_v40, %v988_v30  ;;  %v1002_v56 = vstv %s3052_s30 }
 0x1a9   :  { %v843_v16 = vstv %s3687_s21  ;;  %s3075_s14 = sld [smem:[#allocation2 + $0xd8]]  ;;  %v964_v17 = vmul.f32 %v963_v28, %v3084_v6  ;;  %v999_v39 = vmul.f32 %v998_v43, %v3084_v6 }
 0x1aa   :  { %s3079_s26 = sld [smem:[#allocation2 + $0xd9]]  ;;  %v844_v59 = vadd.f32 %v843_v16, %v841_v45  ;;  %v996_v51 = vadd.f32 %v995_v34, %v992_v25 }
 0x1ab   :  { %s3082_s11 = sld [smem:[#allocation2 + $0xda]]  ;;  %v965_v36 = vadd.f32 %v964_v17, %v961_v18  ;;  %v1010_v18 = vstv %s3062_s22 }
 0x1ac   :  { %s3088_s24 = sld [smem:[#allocation2 + $0xdb]]  ;;  %v3096_v21 = vmax.f32 %v844_v59, 0.0  ;;  %v1000_v62 = vadd.f32 %v999_v39, %v996_v51  ;;  %v1006_v59 = vstv %s3058_s29  ;;  %v1014_v11 = vstv %s3067_s16 }
 0x1ad   :  { %v878_v7 = vstv %s3688_s18  ;;  %s3091_s6 = sld [smem:[#allocation2 + $0xdc]] }
 0x1ae   :  { %s3094_s12 = sld [smem:[#allocation2 + $0xdd]]  ;;  %v879_v13 = vadd.f32 %v878_v7, %v876_v1  ;;  %v968_v37 = vmul.f32 %v967_v20, %v3096_v21  ;;  %v1003_v63 = vmul.f32 %v1002_v56, %v3096_v21 }
 0x1af   :  { %s3099_s4 = sld [smem:[#allocation2 + $0xde]]  ;;  %v1022_v58 = vstv %s3075_s14 }
 0x1b0   :  { %s3104_s23 = sld [smem:[#allocation2 + $0xdf]]  ;;  %v3111_v27 = vmax.f32 %v879_v13, 0.0  ;;  %v1025_v44 = vstv %s3079_s26  ;;  %v969_v35 = vadd.f32 %v968_v37, %v965_v36  ;;  %v1023_v42 = vmul.f32 %v1022_v58, %v3032_v33 }
 0x1b1   :  { %s3107_s3 = sld [smem:[#allocation6 + $0x22]]  ;;  %v1026_v46 = vmul.f32 %v1025_v44, %v3048_v38  ;;  %v1029_v45 = vstv %s3082_s11  ;;  %v1004_v2 = vadd.f32 %v1003_v63, %v1000_v62  ;;  %v1015_v58 = vmul.f32 %v1014_v11, %v3144_v48 }
 0x1b2   :  { %s3109_s10 = sld [smem:[#allocation2 + $0xe0]]  ;;  %v972_v32 = vmul.f32 %v971_v23, %v3111_v27  ;;  %v1030_v15 = vmul.f32 %v1029_v45, %v3054_v47  ;;  %v1033_v16 = vstv %s3088_s24  ;;  %v1007_v9 = vmul.f32 %v1006_v59, %v3111_v27 }
 0x1b3   :  { %s3116_s28 = sld [smem:[#allocation2 + $0xe1]]  ;;  %v1027_v57 = vadd.f32 %v1026_v46, %v1023_v42  ;;  %v1034_v4 = vmul.f32 %v1033_v16, %v3084_v6  ;;  %v1037_v7 = vstv %s3091_s6  ;;  %v1011_v23 = vmul.f32 %v1010_v18, %v3127_v0 }
 0x1b4   :  { %s3121_s8 = sld [smem:[#allocation2 + $0xe2]]  ;;  %v973_v55 = vadd.f32 %v972_v32, %v969_v35  ;;  %v1038_v22 = vmul.f32 %v1037_v7, %v3096_v21  ;;  %v1041_v20 = vstv %s3094_s12  ;;  %v1008_v37 = vadd.f32 %v1007_v9, %v1004_v2 }
 0x1b5   :  { %s3125_s17 = sld [smem:[#allocation2 + $0xe3]]  ;;  %v1031_v1 = vadd.f32 %v1030_v15, %v1027_v57  ;;  %v1042_v3 = vmul.f32 %v1041_v20, %v3111_v27  ;;  %v1045_v60 = vstv %s3099_s4  ;;  %v1018_v63 = vstv %s3072_s7 }
 0x1b6   :  { %s3129_s27 = sld [smem:[#allocation2 + $0xe4]]  ;;  %v977_v41 = vadd.f32 %v976_v31, %v973_v55  ;;  %v1012_v45 = vadd.f32 %v1011_v23, %v1008_v37 }
 0x1b7   :  { %s3134_s19 = sld [smem:[#allocation2 + $0xe5]]  ;;  %v1035_v17 = vadd.f32 %v1034_v4, %v1031_v1 }
 0x1b8   :  { %s3139_s20 = sld [smem:[#allocation2 + $0xe6]]  ;;  %v1057_v52 = vstv %s3109_s10  ;;  %v981_v14 = vadd.f32 %v980_v53, %v977_v41  ;;  %v1016_v4 = vadd.f32 %v1015_v58, %v1012_v45 }
 0x1b9   :  { %s3142_s25 = sld [smem:[#allocation2 + $0xe7]]  ;;  %v1060_v54 = vstv %s3116_s28  ;;  %v1058_v5 = vmul.f32 %v1057_v52, %v3032_v33  ;;  %v1039_v44 = vadd.f32 %v1038_v22, %v1035_v17  ;;  %v1046_v52 = vmul.f32 %v1045_v60, %v3127_v0 }
 0x1ba   :  { %s3148_s9 = sld [smem:[#allocation6 + $0x23]]  ;;  %v1061_v61 = vmul.f32 %v1060_v54, %v3048_v38  ;;  %v1064_v19 = vstv %s3121_s8  ;;  %v984_v32 = vadd.f32 %v983_v29, %v981_v14 }
 0x1bb   :  { %s3153_s0 = sld [smem:[#allocation2 + $0xe8]]  ;;  %v1065_v10 = vmul.f32 %v1064_v19, %v3054_v47  ;;  %v1068_v13 = vstv %s3125_s17  ;;  %v1043_v39 = vadd.f32 %v1042_v3, %v1039_v44  ;;  %v1049_v19 = vstv %s3104_s23 }
 0x1bc   :  { %s3157_s15 = sld [smem:[#allocation2 + $0xe9]]  ;;  %v1062_v8 = vadd.f32 %v1061_v61, %v1058_v5  ;;  %v1069_v40 = vmul.f32 %v1068_v13, %v3084_v6  ;;  %v1072_v49 = vstv %s3129_s27  ;;  %v3244_v1 = vmax.f32 %v984_v32, 0.0 }
 0x1bd   :  { %s3160_s5 = sld [smem:[#allocation2 + $0xea]]  ;;  %v1073_v43 = vmul.f32 %v1072_v49, %v3096_v21  ;;  %v1076_v31 = vstv %s3134_s19  ;;  %v1047_v9 = vadd.f32 %v1046_v52, %v1043_v39  ;;  %v1050_v13 = vmul.f32 %v1049_v19, %v3144_v48 }
 0x1be   :  { %s3164_s2 = sld [smem:[#allocation2 + $0xeb]]  ;;  %v1066_v30 = vadd.f32 %v1065_v10, %v1062_v8  ;;  %v1077_v61 = vmul.f32 %v1076_v31, %v3111_v27  ;;  %v1080_v41 = vstv %s3139_s20  ;;  %v1019_v39 = vadd.f32 %v1018_v63, %v1016_v4 }
 0x1bf   :  { %s3169_s1 = sld [smem:[#allocation2 + $0xec]]  ;;  %v1084_v10 = vstv %s3142_s25  ;;  %v1081_v18 = vmul.f32 %v1080_v41, %v3127_v0  ;;  %v1051_v52 = vadd.f32 %v1050_v13, %v1047_v9 }
 0x1c0   :  { %s3173_s30 = sld [smem:[#allocation2 + $0xed]]  ;;  %v1070_v35 = vadd.f32 %v1069_v40, %v1066_v30 }
 0x1c1   :  { %s3176_s21 = sld [smem:[#allocation2 + $0xee]]  ;;  %v1092_v28 = vstv %s3153_s0 }
 0x1c2   :  { %v1095_v12 = vstv %s3157_s15  ;;  %s3181_s18 = sld [smem:[#allocation2 + $0xef]]  ;;  %v1093_v24 = vmul.f32 %v1092_v28, %v3032_v33  ;;  %v1074_v5 = vadd.f32 %v1073_v43, %v1070_v35  ;;  %v1053_v35 = vstv %s3107_s3 }
 0x1c3   :  { %s3185_s29 = sld [smem:[#allocation6 + $0x24]]  ;;  %v1096_v26 = vmul.f32 %v1095_v12, %v3048_v38  ;;  %v1099_v36 = vstv %s3160_s5  ;;  %v1054_v4 = vadd.f32 %v1053_v35, %v1051_v52 }
 0x1c4   :  { %s3189_s14 = sld [smem:[#allocation2 + $0xf0]]  ;;  %v1100_v34 = vmul.f32 %v1099_v36, %v3054_v47  ;;  %v1103_v42 = vstv %s3164_s2  ;;  %v1078_v14 = vadd.f32 %v1077_v61, %v1074_v5 }
 0x1c5   :  { %s3195_s26 = sld [smem:[#allocation2 + $0xf1]]  ;;  %v1097_v25 = vadd.f32 %v1096_v26, %v1093_v24  ;;  %v1104_v57 = vmul.f32 %v1103_v42, %v3084_v6  ;;  %v1107_v53 = vstv %s3169_s1  ;;  %v1085_v24 = vmul.f32 %v1084_v10, %v3144_v48 }
 0x1c6   :  { %s3200_s22 = sld [smem:[#allocation2 + $0xf2]]  ;;  %v1108_v12 = vmul.f32 %v1107_v53, %v3096_v21  ;;  %v1111_v2 = vstv %s3173_s30  ;;  %v1082_v49 = vadd.f32 %v1081_v18, %v1078_v14 }
 0x1c7   :  { %s3204_s16 = sld [smem:[#allocation2 + $0xf3]]  ;;  %v1101_v56 = vadd.f32 %v1100_v34, %v1097_v25  ;;  %v1112_v26 = vmul.f32 %v1111_v2, %v3111_v27  ;;  %v1115_v36 = vstv %s3176_s21 }
 0x1c8   :  { %s3208_s13 = sld [smem:[#allocation2 + $0xf4]]  ;;  %v1116_v43 = vmul.f32 %v1115_v36, %v3127_v0  ;;  %v1119_v42 = vstv %s3181_s18 }
 0x1c9   :  { %s3212_s11 = sld [smem:[#allocation2 + $0xf5]]  ;;  %v1105_v28 = vadd.f32 %v1104_v57, %v1101_v56  ;;  %v1120_v5 = vmul.f32 %v1119_v42, %v3144_v48 }
 0x1ca   :  { %v1127_v46 = vstv %s3189_s14  ;;  %s3217_s24 = sld [smem:[#allocation2 + $0xf6]] }
 0x1cb   :  { %v1128_v50 = vmul.f32 %v1127_v46, %v3032_v33  ;;  %v1130_v51 = vstv %s3195_s26  ;;  %s3222_s6 = sld [smem:[#allocation2 + $0xf7]]  ;;  %v1109_v40 = vadd.f32 %v1108_v12, %v1105_v28 }
 0x1cc   :  { %v1131_v54 = vmul.f32 %v1130_v51, %v3048_v38  ;;  %v1134_v55 = vstv %s3200_s22  ;;  %s3227_s12 = sld [smem:[#allocation6 + $0x25]] }
 0x1cd   :  { %v1135_v15 = vmul.f32 %v1134_v55, %v3054_v47  ;;  %v1138_v16 = vstv %s3204_s16  ;;  %s3232_s4 = sld [smem:[#allocation2 + $0xf8]]  ;;  %v1113_v45 = vadd.f32 %v1112_v26, %v1109_v40  ;;  %v1088_v55 = vstv %s3148_s9 }
 0x1ce   :  { %v1132_v62 = vadd.f32 %v1131_v54, %v1128_v50  ;;  %s3236_s10 = sld [smem:[#allocation2 + $0xf9]]  ;;  %v1139_v59 = vmul.f32 %v1138_v16, %v3084_v6  ;;  %v1142_v8 = vstv %s3208_s13  ;;  %v1086_v54 = vadd.f32 %v1085_v24, %v1082_v49 }
 0x1cf   :  { %s3242_s28 = sld [smem:[#allocation2 + $0xfa]]  ;;  %v1143_v22 = vmul.f32 %v1142_v8, %v3096_v21  ;;  %v1146_v11 = vstv %s3212_s11  ;;  %v1117_v63 = vadd.f32 %v1116_v43, %v1113_v45 }
 0x1d0   :  { %v1136_v7 = vadd.f32 %v1135_v15, %v1132_v62  ;;  %s3247_s8 = sld [smem:[#allocation2 + $0xfb]]  ;;  %v1147_v58 = vmul.f32 %v1146_v11, %v3111_v27  ;;  %v1150_v46 = vstv %s3217_s24  ;;  %v1089_v18 = vadd.f32 %v1088_v55, %v1086_v54 }
 0x1d1   :  { %s3252_s7 = sld [smem:[#allocation2 + $0xfc]]  ;;  %v1151_v57 = vmul.f32 %v1150_v46, %v3127_v0  ;;  %v1154_v15 = vstv %s3222_s6 }
 0x1d2   :  { %s3256_s23 = sld [smem:[#allocation2 + $0xfd]]  ;;  %v1140_v17 = vadd.f32 %v1139_v59, %v1136_v7  ;;  %v1155_v7 = vmul.f32 %v1154_v15, %v3144_v48  ;;  %v1158_v40 = vstv %s3227_s12  ;;  %v3344_v49 = vmax.f32 %v1089_v18, 0.0 }
 0x1d3   :  { %v1162_v20 = vstv %s3232_s4  ;;  %s3261_s17 = sld [smem:[#allocation2 + $0xfe]] }
 0x1d4   :  { %v1163_v29 = vmul.f32 %v1162_v20, %v3032_v33  ;;  %v1165_v30 = vstv %s3236_s10  ;;  %s3267_s27 = sld [smem:[#allocation2 + $0xff]]  ;;  %v1144_v32 = vadd.f32 %v1143_v22, %v1140_v17  ;;  %v1121_v17 = vadd.f32 %v1120_v5, %v1117_v63 }
 0x1d5   :  { %v1166_v37 = vmul.f32 %v1165_v30, %v3048_v38  ;;  %v1169_v23 = vstv %s3242_s28  ;;  %s3272_s19 = sld [smem:[#allocation6 + $0x26]]  ;;  %v1123_v20 = vstv %s3185_s29 }
 0x1d6   :  { %v1170_v44 = vmul.f32 %v1169_v23, %v3054_v47  ;;  %v1173_v3 = vstv %s3247_s8  ;;  %s3277_s20 = sld [smem:[#allocation2 + $0x100]]  ;;  %v1148_v56 = vadd.f32 %v1147_v58, %v1144_v32  ;;  %v1124_v58 = vadd.f32 %v1123_v20, %v1121_v17 }
 0x1d7   :  { %v1167_v60 = vadd.f32 %v1166_v37, %v1163_v29  ;;  %v1174_v25 = vmul.f32 %v1173_v3, %v3084_v6  ;;  %v1177_v34 = vstv %s3252_s7  ;;  %s3281_s25 = sld [smem:[#allocation2 + $0x101]]  ;;  %v3333_v29 = vmax.f32 %v1019_v39, 0.0 }
 0x1d8   :  { %s3287_s0 = sld [smem:[#allocation2 + $0x102]]  ;;  %v1178_v50 = vmul.f32 %v1177_v34, %v3096_v21  ;;  %v1181_v51 = vstv %s3256_s23  ;;  %v1152_v28 = vadd.f32 %v1151_v57, %v1148_v56  ;;  %v3363_v39 = vmax.f32 %v1124_v58, 0.0 }
 0x1d9   :  { %v1171_v31 = vadd.f32 %v1170_v44, %v1167_v60  ;;  %s3291_s15 = sld [smem:[#allocation2 + $0x103]]  ;;  %v1182_v61 = vmul.f32 %v1181_v51, %v3111_v27  ;;  %v1185_v53 = vstv %s3261_s17 }
 0x1da   :  { %s3294_s3 = sld [smem:[#allocation2 + $0x104]]  ;;  %v1186_v12 = vmul.f32 %v1185_v53, %v3127_v0  ;;  %v1189_v22 = vstv %s3267_s27  ;;  %v1156_v30 = vadd.f32 %v1155_v7, %v1152_v28 }
 0x1db   :  { %v1175_v16 = vadd.f32 %v1174_v25, %v1171_v31  ;;  %s3298_s5 = sld [smem:[#allocation2 + $0x105]]  ;;  %v1190_v37 = vmul.f32 %v1189_v22, %v3144_v48  ;;  %v1193_v31 = vstv %s3272_s19 }
 0x1dc   :  { %v1197_v62 = vstv %s3277_s20  ;;  %s3304_s2 = sld [smem:[#allocation2 + $0x106]] }
 0x1dd   :  { %v1179_v19 = vadd.f32 %v1178_v50, %v1175_v16  ;;  %v1198_v41 = vmul.f32 %v1197_v62, %v3032_v33  ;;  %v1200_v59 = vstv %s3281_s25  ;;  %s3308_s9 = sld [smem:[#allocation2 + $0x107]] }
 0x1de   :  { %v1201_v8 = vmul.f32 %v1200_v59, %v3048_v38  ;;  %v1204_v10 = vstv %s3287_s0  ;;  %s3313_s1 = sld [smem:[#allocation6 + $0x27]] }
 0x1df   :  { %v1205_v33 = vmul.f32 %v1204_v10, %v3054_v47  ;;  %v1208_v2 = vstv %s3291_s15  ;;  %s3318_s30 = sld [smem:[#allocation2 + $0x108]]  ;;  %v1183_v9 = vadd.f32 %v1182_v61, %v1179_v19 }
 0x1e0   :  { %v1202_v13 = vadd.f32 %v1201_v8, %v1198_v41  ;;  %v1209_v14 = vmul.f32 %v1208_v2, %v3084_v6  ;;  %v1212_v38 = vstv %s3294_s3  ;;  %s3322_s21 = sld [smem:[#allocation2 + $0x109]]  ;;  %v3335_v6 = vmax.f32 %v1054_v4, 0.0 }
 0x1e1   :  { %v1216_v11 = vstv %s3298_s5  ;;  %s3326_s18 = sld [smem:[#allocation2 + $0x10a]]  ;;  %v1213_v24 = vmul.f32 %v1212_v38, %v3096_v21  ;;  %v1187_v36 = vadd.f32 %v1186_v12, %v1183_v9 }
 0x1e2   :  { %v1206_v47 = vadd.f32 %v1205_v33, %v1202_v13  ;;  %v1220_v26 = vstv %s3304_s2  ;;  %s3331_s14 = sld [smem:[#allocation2 + $0x10b]]  ;;  %v1217_v21 = vmul.f32 %v1216_v11, %v3111_v27  ;;  %v1159_v27 = vadd.f32 %v1158_v40, %v1156_v30 }
 0x1e3   :  { %s3338_s26 = sld [smem:[#allocation2 + $0x10c]]  ;;  %v1221_v44 = vmul.f32 %v1220_v26, %v3127_v0  ;;  %v1224_v60 = vstv %s3308_s9  ;;  %v1191_v42 = vadd.f32 %v1190_v37, %v1187_v36 }
 0x1e4   :  { %v1210_v23 = vadd.f32 %v1209_v14, %v1206_v47  ;;  %s3342_s29 = sld [smem:[#allocation2 + $0x10d]]  ;;  %v1225_v50 = vmul.f32 %v1224_v60, %v3144_v48  ;;  %v3367_v57 = vmax.f32 %v1159_v27, 0.0  ;;  %v1228_v48 = vstv %s3313_s1 }
 0x1e5   :  { %v1232_v3 = vstv %s3318_s30  ;;  %s3348_s22 = sld [smem:[#allocation2 + $0x10e]]  ;;  %v1194_v15 = vadd.f32 %v1193_v31, %v1191_v42 }
 0x1e6   :  { %v1214_v32 = vadd.f32 %v1213_v24, %v1210_v23  ;;  %v1233_v25 = vmul.f32 %v1232_v3, %v3244_v1  ;;  %v1235_v34 = vstv %s3322_s21  ;;  %s3353_s16 = sld [smem:[#allocation2 + $0x10f]] }
 0x1e7   :  { %v1236_v35 = vmul.f32 %v1235_v34, %v3333_v29  ;;  %v1239_v43 = vstv %s3326_s18  ;;  %s3357_s13 = sld [smem:[#allocation6 + $0x28]]  ;;  %v3379_v41 = vmax.f32 %v1194_v15, 0.0 }
 0x1e8   :  { %v1218_v0 = vadd.f32 %v1217_v21, %v1214_v32  ;;  %v1240_v46 = vmul.f32 %v1239_v43, %v3335_v6  ;;  %v1243_v45 = vstv %s3331_s14  ;;  %s1872_s11 = sld [smem:[#allocation2 + $0x110]] }
 0x1e9   :  { %v1237_v51 = vadd.f32 %v1236_v35, %v1233_v25  ;;  %s1873_s24 = sld [smem:[#allocation2 + $0x111]]  ;;  %v1244_v54 = vmul.f32 %v1243_v45, %v3344_v49  ;;  %v1247_v56 = vstv %s3338_s26 }
 0x1ea   :  { %v1222_v52 = vadd.f32 %v1221_v44, %v1218_v0  ;;  %s1874_s6 = sld [smem:[#allocation2 + $0x112]]  ;;  %v1251_v5 = vstv %s3342_s29  ;;  %v1248_v53 = vmul.f32 %v1247_v56, %v3363_v39 }
 0x1eb   :  { %v1241_v55 = vadd.f32 %v1240_v46, %v1237_v51  ;;  %s1875_s12 = sld [smem:[#allocation2 + $0x113]]  ;;  %v1252_v59 = vmul.f32 %v1251_v5, %v3367_v57  ;;  %v1255_v10 = vstv %s3348_s22 }
 0x1ec   :  { %s1876_s4 = sld [smem:[#allocation2 + $0x114]]  ;;  %v1226_v16 = vadd.f32 %v1225_v50, %v1222_v52  ;;  %v1256_v11 = vmul.f32 %v1255_v10, %v3379_v41  ;;  %v1259_v47 = vstv %s3353_s16 }
 0x1ed   :  { %s3370_s10 = sld [smem:[#allocation2 + $0x115]]  ;;  %v1245_v61 = vadd.f32 %v1244_v54, %v1241_v55  ;;  %v1263_v51 = vstv %s3357_s13 }
 0x1ee   :  { %v1267_v62 = vstv %s1872_s11  ;;  %s3374_s28 = sld [smem:[#allocation2 + $0x116]]  ;;  %v1229_v8 = vadd.f32 %v1228_v48, %v1226_v16 }
 0x1ef   :  { %v1268_v63 = vmul.f32 %v1267_v62, %v3244_v1  ;;  %v1270_v19 = vstv %s1873_s24  ;;  %s3377_s8 = sld [smem:[#allocation2 + $0x117]]  ;;  %v1249_v33 = vadd.f32 %v1248_v53, %v1245_v61 }
 0x1f0   :  { %v1271_v4 = vmul.f32 %v1270_v19, %v3333_v29  ;;  %v1274_v7 = vstv %s1874_s6  ;;  %s3383_s7 = sld [smem:[#allocation6 + $0x29]]  ;;  %v3391_v22 = vmax.f32 %v1229_v8, 0.0 }
 0x1f1   :  { %v1275_v28 = vmul.f32 %v1274_v7, %v3335_v6  ;;  %v1278_v12 = vstv %s1875_s12  ;;  %s1881_s23 = sld [smem:[#allocation2 + $0x118]]  ;;  %v1253_v20 = vadd.f32 %v1252_v59, %v1249_v33 }
 0x1f2   :  { %v1272_v2 = vadd.f32 %v1271_v4, %v1268_v63  ;;  %v1279_v9 = vmul.f32 %v1278_v12, %v3344_v49  ;;  %v1282_v13 = vstv %s1876_s4  ;;  %s1882_s17 = sld [smem:[#allocation2 + $0x119]]  ;;  %v1260_v58 = vmul.f32 %v1259_v47, %v3391_v22 }
 0x1f3   :  { %v1286_v14 = vstv %s3370_s10  ;;  %s1883_s27 = sld [smem:[#allocation2 + $0x11a]]  ;;  %v1283_v18 = vmul.f32 %v1282_v13, %v3363_v39  ;;  %v1257_v32 = vadd.f32 %v1256_v11, %v1253_v20 }
 0x1f4   :  { %v1276_v38 = vadd.f32 %v1275_v28, %v1272_v2  ;;  %v1290_v17 = vstv %s3374_s28  ;;  %s1884_s19 = sld [smem:[#allocation2 + $0x11b]]  ;;  %v1287_v26 = vmul.f32 %v1286_v14, %v3367_v57 }
 0x1f5   :  { %s3394_s20 = sld [smem:[#allocation2 + $0x11c]]  ;;  %v1291_v30 = vmul.f32 %v1290_v17, %v3379_v41  ;;  %v1294_v37 = vstv %s3377_s8  ;;  %v1261_v50 = vadd.f32 %v1260_v58, %v1257_v32 }
 0x1f6   :  { %v1280_v24 = vadd.f32 %v1279_v9, %v1276_v38  ;;  %s3398_s25 = sld [smem:[#allocation2 + $0x11d]]  ;;  %v1295_v27 = vmul.f32 %v1294_v37, %v3391_v22  ;;  %v1298_v16 = vstv %s3383_s7 }
 0x1f7   :  { %v1302_v40 = vstv %s1881_s23  ;;  %s3401_s0 = sld [smem:[#allocation2 + $0x11e]]  ;;  %v1264_v63 = vadd.f32 %v1263_v51, %v1261_v50 }
 0x1f8   :  { %v1284_v36 = vadd.f32 %v1283_v18, %v1280_v24  ;;  %v1303_v23 = vmul.f32 %v1302_v40, %v3244_v1  ;;  %v1305_v21 = vstv %s1882_s17  ;;  %s3405_s15 = sld [smem:[#allocation2 + $0x11f]] }
 0x1f9   :  { %v1306_v44 = vmul.f32 %v1305_v21, %v3333_v29  ;;  %v1309_v3 = vstv %s1883_s27  ;;  %s3409_s3 = sld [smem:[#allocation6 + $0x2a]] }
 0x1fa   :  { %v1288_v60 = vadd.f32 %v1287_v26, %v1284_v36  ;;  %v1310_v25 = vmul.f32 %v1309_v3, %v3335_v6  ;;  %v1313_v34 = vstv %s1884_s19  ;;  %s1890_s5 = sld [smem:[#allocation2 + $0x120]] }
 0x1fb   :  { %v1307_v35 = vadd.f32 %v1306_v44, %v1303_v23  ;;  %v1314_v43 = vmul.f32 %v1313_v34, %v3344_v49  ;;  %v1317_v42 = vstv %s3394_s20  ;;  %s1891_s2 = sld [smem:[#allocation2 + $0x121]] }
 0x1fc   :  { %v1292_v0 = vadd.f32 %v1291_v30, %v1288_v60  ;;  %v1321_v46 = vstv %s3398_s25  ;;  %s1892_s9 = sld [smem:[#allocation2 + $0x122]]  ;;  %v1318_v31 = vmul.f32 %v1317_v42, %v3363_v39 }
 0x1fd   :  { %v1311_v45 = vadd.f32 %v1310_v25, %v1307_v35  ;;  %s1893_s1 = sld [smem:[#allocation2 + $0x123]]  ;;  %v1325_v52 = vstv %s3401_s0  ;;  %v1322_v56 = vmul.f32 %v1321_v46, %v3367_v57 }
 0x1fe   :  { %s3419_s30 = sld [smem:[#allocation2 + $0x124]]  ;;  %v1296_v54 = vadd.f32 %v1295_v27, %v1292_v0  ;;  %v1329_v15 = vstv %s3405_s15  ;;  %v1326_v61 = vmul.f32 %v1325_v52, %v3379_v41 }
 0x1ff   :  { %v1315_v55 = vadd.f32 %v1314_v43, %v1311_v45  ;;  %s3423_s21 = sld [smem:[#allocation2 + $0x125]]  ;;  %v1330_v19 = vmul.f32 %v1329_v15, %v3391_v22 }
 0x200   :  { %v1337_v5 = vstv %s1890_s5  ;;  %s3426_s18 = sld [smem:[#allocation2 + $0x126]]  ;;  %v1299_v7 = vadd.f32 %v1298_v16, %v1296_v54 }
 0x201   :  { %v1319_v48 = vadd.f32 %v1318_v31, %v1315_v55  ;;  %v1338_v53 = vmul.f32 %v1337_v5, %v3244_v1  ;;  %v1340_v62 = vstv %s1891_s2  ;;  %s3430_s14 = sld [smem:[#allocation2 + $0x127]] }
 0x202   :  { %v1341_v59 = vmul.f32 %v1340_v62, %v3333_v29  ;;  %v1344_v4 = vstv %s1892_s9  ;;  %s3434_s26 = sld [smem:[#allocation6 + $0x2b]]  ;;  %v1333_v29 = vstv %s3409_s3  ;;  %v3448_v38 = vmax.f32 %v1299_v7, 0.0 }
 0x203   :  { %v1323_v8 = vadd.f32 %v1322_v56, %v1319_v48  ;;  %v1345_v10 = vmul.f32 %v1344_v4, %v3335_v6  ;;  %v1348_v28 = vstv %s1893_s1  ;;  %s1899_s29 = sld [smem:[#allocation2 + $0x128]]  ;;  %v3446_v6 = vmax.f32 %v1264_v63, 0.0 }
 0x204   :  { %v1342_v1 = vadd.f32 %v1341_v59, %v1338_v53  ;;  %v1349_v12 = vmul.f32 %v1348_v28, %v3344_v49  ;;  %v1352_v33 = vstv %s3419_s30  ;;  %s1900_s22 = sld [smem:[#allocation2 + $0x129]] }
 0x205   :  { %v1327_v2 = vadd.f32 %v1326_v61, %v1323_v8  ;;  %v1356_v9 = vstv %s3423_s21  ;;  %s3440_s16 = sld [smem:[#allocation2 + $0x12a]]  ;;  %v1353_v14 = vmul.f32 %v1352_v33, %v3363_v39 }
 0x206   :  { %v1346_v13 = vadd.f32 %v1345_v10, %v1342_v1  ;;  %s3444_s13 = sld [smem:[#allocation2 + $0x12b]]  ;;  %v1360_v17 = vstv %s3426_s18  ;;  %v1357_v11 = vmul.f32 %v1356_v9, %v3367_v57 }
 0x207   :  { %v1331_v18 = vadd.f32 %v1330_v19, %v1327_v2  ;;  %s3451_s11 = sld [smem:[#allocation6 + $0x2c]]  ;;  %v1364_v47 = vstv %s3430_s14  ;;  %v1361_v26 = vmul.f32 %v1360_v17, %v3379_v41 }
 0x208   :  { %v1350_v49 = vadd.f32 %v1349_v12, %v1346_v13  ;;  %s1904_s24 = sld [smem:[#allocation2 + $0x12c]]  ;;  %v1365_v23 = vmul.f32 %v1364_v47, %v3391_v22  ;;  %v1368_v44 = vstv %s3434_s26 }
 0x209   :  { %v1334_v20 = vadd.f32 %v1333_v29, %v1331_v18  ;;  %v1372_v24 = vstv %s1899_s29  ;;  %s1905_s6 = sld [smem:[#allocation2 + $0x12d]] }
 0x20a   :  { %v1354_v39 = vadd.f32 %v1353_v14, %v1350_v49  ;;  %v1375_v30 = vstv %s1900_s22  ;;  %s1906_s12 = sld [smem:[#allocation2 + $0x12e]]  ;;  %v1373_v36 = vmul.f32 %v1372_v24, %v3446_v6 }
 0x20b   :  { %v3456_v40 = vmax.f32 %v1334_v20, 0.0  ;;  %v1376_v37 = vmul.f32 %v1375_v30, %v3448_v38  ;;  %s3460_s4 = sld [smem:[#allocation2 + $0x12f]]  ;;  %v1379_v21 = vstv %s3440_s16 }
 0x20c   :  { %v1358_v57 = vadd.f32 %v1357_v11, %v1354_v39  ;;  %s3464_s10 = sld [smem:[#allocation6 + $0x2d]]  ;;  %v1383_v46 = vstv %s3444_s13 }
 0x20d   :  { %s1909_s28 = sld [smem:[#allocation2 + $0x130]]  ;;  %v1377_v3 = vadd.f32 %v1376_v37, %v1373_v36  ;;  %v1380_v32 = vmul.f32 %v1379_v21, %v3456_v40  ;;  %v1387_v61 = vstv %s3451_s11 }
 0x20e   :  { %v1362_v58 = vadd.f32 %v1361_v26, %v1358_v57  ;;  %v1391_v41 = vstv %s1904_s24  ;;  %s1910_s8 = sld [smem:[#allocation2 + $0x131]] }
 0x20f   :  { %v1392_v60 = vmul.f32 %v1391_v41, %v3446_v6  ;;  %v1394_v25 = vstv %s1905_s6  ;;  %s1911_s7 = sld [smem:[#allocation2 + $0x132]]  ;;  %v1381_v0 = vadd.f32 %v1380_v32, %v1377_v3 }
 0x210   :  { %v1366_v34 = vadd.f32 %v1365_v23, %v1362_v58  ;;  %v1395_v22 = vmul.f32 %v1394_v25, %v3448_v38  ;;  %v1398_v27 = vstv %s1906_s12  ;;  %s1912_s23 = sld [smem:[#allocation2 + $0x133]] }
 0x211   :  { %v1399_v35 = vmul.f32 %v1398_v27, %v3456_v40  ;;  %s3471_s17 = sld [smem:[#allocation6 + $0x2e]]  ;;  %v1402_v45 = vstv %s3460_s4 }
 0x212   :  { %v1369_v43 = vadd.f32 %v1368_v44, %v1366_v34  ;;  %v1396_v42 = vadd.f32 %v1395_v22, %v1392_v60  ;;  %s3473_s27 = sld [smem:[#allocation2 + $0x134]]  ;;  %v1406_v53 = vstv %s3464_s10 }
 0x213   :  { %v1410_v31 = vstv %s1909_s28  ;;  %s1915_s19 = sld [smem:[#allocation2 + $0x135]] }
 0x214   :  { %v1370_v50 = vmax.f32 %v1369_v43, 0.0  ;;  %v1400_v51 = vadd.f32 %v1399_v35, %v1396_v42  ;;  %v1411_v52 = vmul.f32 %v1410_v31, %v3446_v6  ;;  %v1413_v54 = vstv %s1910_s8  ;;  %s1916_s20 = sld [smem:[#allocation2 + $0x136]] }
 0x215   :  { %v1414_v55 = vmul.f32 %v1413_v54, %v3448_v38  ;;  %v1417_v56 = vstv %s1911_s7  ;;  %s3479_s25 = sld [smem:[#allocation2 + $0x137]] }
 0x216   :  { %v1384_v15 = vmul.f32 %v1383_v46, %v1370_v50  ;;  %v1403_v16 = vmul.f32 %v1402_v45, %v1370_v50  ;;  %v1418_v5 = vmul.f32 %v1417_v56, %v3456_v40  ;;  %v1421_v48 = vstv %s1912_s23  ;;  %s3482_s0 = sld [smem:[#allocation6 + $0x2f]] }
 0x217   :  { %v1415_v62 = vadd.f32 %v1414_v55, %v1411_v52  ;;  %v1422_v63 = vmul.f32 %v1421_v48, %v1370_v50  ;;  %s1919_s15 = sld [smem:[#allocation2 + $0x138]]  ;;  %v1425_v8 = vstv %s3471_s17  ;;  %s2031_s17 = smov [#allocation9]  }
 0x218   :  { %v1385_v19 = vadd.f32 %v1384_v15, %v1381_v0  ;;  %v1404_v59 = vadd.f32 %v1403_v16, %v1400_v51  ;;  %v1429_v4 = vstv %s3473_s27  ;;  %s1920_s3 = sld [smem:[#allocation2 + $0x139]]  ;;  %s1547_s27 = sshll.u32 %s2031_s17, 4  ;;  %s1548_s27 = int_to_ptr.vmem [resolvable:$true] %s1547_s27 }
 0x219   :  { %v1419_v7 = vadd.f32 %v1418_v5, %v1415_v62  ;;  %v1430_v10 = vmul.f32 %v1429_v4, %v3446_v6  ;;  %v1432_v28 = vstv %s1915_s19  ;;  %s1921_s5 = sld [smem:[#allocation2 + $0x13a]] }
 0x21a   :  { %v1388_v1 = vadd.f32 %v1387_v61, %v1385_v19  ;;  %v1407_v12 = vadd.f32 %v1406_v53, %v1404_v59  ;;  %v1433_v33 = vmul.f32 %v1432_v28, %v3448_v38  ;;  %v1436_v2 = vstv %s1916_s20  ;;  %s3490_s2 = sld [smem:[#allocation2 + $0x13b]] }
 0x21b   :  { %v1423_v9 = vadd.f32 %v1422_v63, %v1419_v7  ;;  %v1437_v29 = vmul.f32 %v1436_v2, %v3456_v40  ;;  %v1440_v13 = vstv %s3479_s25  ;;  %s3494_s9 = sld [smem:[#allocation6 + $0x30]] }
 0x21c   :  { %v3496_v14 = vmax.f32 %v1388_v1, 0.0  ;;  %v3498_v18 = vmax.f32 %v1407_v12, 0.0  ;;  %v1434_v6 = vadd.f32 %v1433_v33, %v1430_v10  ;;  %v1441_v17 = vmul.f32 %v1440_v13, %v1370_v50  ;;  %s1924_s1 = sld [smem:[#allocation2 + $0x13c]] }
 0x21d   :  { %v1426_v49 = vadd.f32 %v1425_v8, %v1423_v9  ;;  %v1448_v11 = vstv %s1919_s15  ;;  %s1925_s30 = sld [smem:[#allocation2 + $0x13d]]  ;;  %v1444_v39 = vstv %s3482_s0 }
 0x21e   :  { %v1438_v38 = vadd.f32 %v1437_v29, %v1434_v6  ;;  %v1449_v20 = vmul.f32 %v1448_v11, %v3496_v14  ;;  %v1451_v47 = vstv %s1920_s3  ;;  %s1926_s21 = sld [smem:[#allocation2 + $0x13e]] }
 0x21f   :  { %v1427_v24 = vmax.f32 %v1426_v49, 0.0  ;;  %v1452_v26 = vmul.f32 %v1451_v47, %v3498_v18  ;;  %v1455_v30 = vstv %s1921_s5  ;;  %s1927_s18 = sld [smem:[#allocation2 + $0x13f]] }
 0x220   :  { %v1442_v40 = vadd.f32 %v1441_v17, %v1438_v38  ;;  %s3503_s14 = sld [smem:[#allocation6 + $0x31]]  ;;  %v1459_v21 = vstv %s3490_s2 }
 0x221   :  { %v1453_v36 = vadd.f32 %v1452_v26, %v1449_v20  ;;  %v1456_v37 = vmul.f32 %v1455_v30, %v1427_v24  ;;  %s1929_s26 = sld [smem:[#allocation2 + $0x140]]  ;;  %v1463_v43 = vstv %s3494_s9 }
 0x222   :  { %v1445_v57 = vadd.f32 %v1444_v39, %v1442_v40  ;;  %v1467_v23 = vstv %s1924_s1  ;;  %s1930_s29 = sld [smem:[#allocation2 + $0x141]] }
 0x223   :  { %v1468_v58 = vmul.f32 %v1467_v23, %v3496_v14  ;;  %v1470_v44 = vstv %s1925_s30  ;;  %s1931_s22 = sld [smem:[#allocation2 + $0x142]]  ;;  %v1457_v3 = vadd.f32 %v1456_v37, %v1453_v36 }
 0x224   :  { %v1446_v41 = vmax.f32 %v1445_v57, 0.0  ;;  %v1471_v32 = vmul.f32 %v1470_v44, %v3498_v18  ;;  %v1474_v60 = vstv %s1926_s21  ;;  %s1932_s16 = sld [smem:[#allocation2 + $0x143]] }
 0x225   :  { %v1475_v25 = vmul.f32 %v1474_v60, %v1427_v24  ;;  %v1478_v34 = vstv %s1927_s18  ;;  %s3508_s13 = sld [smem:[#allocation6 + $0x32]] }
 0x226   :  { %v1460_v22 = vmul.f32 %v1459_v21, %v1446_v41  ;;  %v1472_v27 = vadd.f32 %v1471_v32, %v1468_v58  ;;  %v1479_v35 = vmul.f32 %v1478_v34, %v1446_v41  ;;  %s1934_s11 = sld [smem:[#allocation2 + $0x144]]  ;;  %v1482_v50 = vstv %s3503_s14 }
 0x227   :  { %v1486_v42 = vstv %s1929_s26  ;;  %s1935_s24 = sld [smem:[#allocation2 + $0x145]] }
 0x228   :  { %v1461_v0 = vadd.f32 %v1460_v22, %v1457_v3  ;;  %v1476_v46 = vadd.f32 %v1475_v25, %v1472_v27  ;;  %v1487_v45 = vmul.f32 %v1486_v42, %v3496_v14  ;;  %v1489_v31 = vstv %s1930_s29  ;;  %s1936_s6 = sld [smem:[#allocation2 + $0x146]] }
 0x229   :  { %v1490_v51 = vmul.f32 %v1489_v31, %v3498_v18  ;;  %v1493_v52 = vstv %s1931_s22  ;;  %s1937_s12 = sld [smem:[#allocation2 + $0x147]] }
 0x22a   :  { %v1464_v54 = vadd.f32 %v1463_v43, %v1461_v0  ;;  %v1480_v55 = vadd.f32 %v1479_v35, %v1476_v46  ;;  %v1494_v56 = vmul.f32 %v1493_v52, %v1427_v24  ;;  %v1497_v15 = vstv %s1932_s16  ;;  %s3514_s4 = sld [smem:[#allocation6 + $0x33]] }
 0x22b   :  { %v1491_v16 = vadd.f32 %v1490_v51, %v1487_v45  ;;  %v1498_v5 = vmul.f32 %v1497_v15, %v1446_v41  ;;  %s1939_s10 = sld [smem:[#allocation2 + $0x148]]  ;;  %v1501_v59 = vstv %s3508_s13 }
 0x22c   :  { %v1483_v48 = vadd.f32 %v1482_v50, %v1480_v55  ;;  %v1505_v61 = vstv %s1934_s11  ;;  %s1940_s28 = sld [smem:[#allocation2 + $0x149]]  ;;  %v1465_v19 = vmax.f32 %v1464_v54, 0.0 }
 0x22d   :  { %v1495_v53 = vadd.f32 %v1494_v56, %v1491_v16  ;;  %v1506_v62 = vmul.f32 %v1505_v61, %v3496_v14  ;;  %v1508_v63 = vstv %s1935_s24  ;;  %s1941_s8 = sld [smem:[#allocation2 + $0x14a]] }
 0x22e   :  { %v1509_v4 = vmul.f32 %v1508_v63, %v3498_v18  ;;  %v1512_v7 = vstv %s1936_s6  ;;  %v1484_v8 = vmax.f32 %v1483_v48, 0.0  ;;  %s1942_s7 = sld [smem:[#allocation2 + $0x14b]] }
 0x22f   :  { %v1499_v10 = vadd.f32 %v1498_v5, %v1495_v53  ;;  %v1513_v28 = vmul.f32 %v1512_v7, %v1427_v24  ;;  %v1516_v1 = vstv %s1937_s12  ;;  %s1943_s23 = sld [smem:[#allocation6 + $0x34]] }
 0x230   :  { %v1510_v12 = vadd.f32 %v1509_v4, %v1506_v62  ;;  %v1517_v33 = vmul.f32 %v1516_v1, %v1446_v41  ;;  %v1520_v17 = vstv %s3514_s4  ;;  %s3689_s25 = sld [smem:[#allocation49_spill]] }
 0x231   :  { %v1502_v2 = vadd.f32 %v1501_v59, %v1499_v10  ;;  %v1524_v9 = vstv %s1939_s10 }
 0x232   :  { %v1514_v29 = vadd.f32 %v1513_v28, %v1510_v12  ;;  %v1525_v13 = vmul.f32 %v1524_v9, %v1465_v19  ;;  %v1527_v14 = vstv %s1940_s28 }
 0x233   :  { %v1503_v6 = vmax.f32 %v1502_v2, 0.0  ;;  %v1528_v49 = vmul.f32 %v1527_v14, %v1484_v8  ;;  %v1531_v11 = vstv %s1941_s8 }
 0x234   :  { %v1518_v38 = vadd.f32 %v1517_v33, %v1514_v29  ;;  %v1535_v39 = vstv %s1942_s7 }
 0x235   :  { %v1529_v18 = vadd.f32 %v1528_v49, %v1525_v13  ;;  %v1532_v20 = vmul.f32 %v1531_v11, %v1503_v6  ;;  %v1539_v40 = vstv %s1943_s23 }
 0x236   :  { %v1521_v47 = vadd.f32 %v1520_v17, %v1518_v38  ;;  %s1549_s0 = sshll.u32 %s3689_s25, 4  ;;  %s1550_s0 = int_to_ptr.hbm [resolvable:$true] %s1549_s0 }
 0x237   :  { %v1533_v26 = vadd.f32 %v1532_v20, %v1529_v18 }
 0x238   :  { %v1522_v24 = vmax.f32 %v1521_v47, 0.0 }
 0x23a   :  { %v1536_v30 = vmul.f32 %v1535_v39, %v1522_v24 }
 0x23c   :  { %v1537_v36 = vadd.f32 %v1536_v30, %v1533_v26 }
 0x23e   :  { %v1540_v37 = vadd.f32 %v1539_v40, %v1537_v36 }
 0x240   :  { %1541 = vst [vmem:[#allocation9] sm:$0xff] %v1540_v37 }
 0x241   :  { %1552 = dma.vmem_to_hbm [thread:$0]  %s1548_s27, 128, %s1550_s0, [#allocation4]  }
 0x242   :  { %2026 = dma.done.wait [#allocation4], 128  }
 0x243   :  { %2027 = vsyncadd [#allocation4], 4294967168 }
 0x244   :  { %1557 = vsyncpa [#allocation3], 1 }
 0x245   :  { %1558 = vsyncpa [#allocation4], 1 }
 0x246   :  { %1559 = vsyncpa [#allocation5], 1 }
 0x247   :  { %1560 = vsyncpa [#allocation7], 1 }

</bundles_post_ra>
